<compile_context>
chip_gen: v7x
topology: tpu7x:2x2x1
jax: 0.10.0
libtpu: 0.0.40
codegen_flags: <defaults>
</compile_context>

<pallas_src>
import functools

import jax
import jax.numpy as jnp
from jax.experimental import pallas as pl
from jax.experimental.pallas import tpu as pltpu

LANE = 128  # TPU lane width; channel padding target.


# ---------------------------------------------------------------------------
# Fused whole-backbone Pallas kernel
# ---------------------------------------------------------------------------
def _make_fused_kernel(cfg, extract_mask):
    """Build the fused conv-chain kernel.

    cfg:          tuple of (stride, hin, win, hout, wout) per layer, run order.
    extract_mask: tuple of bool per layer; True -> layer output is a kernel output.
    """
    num_layers = len(cfg)
    n_out = sum(extract_mask)

    def kernel(*refs):
        x_ref = refs[0]                                       # (1, H, W, 128) bf16
        w_refs = refs[1:1 + num_layers]                       # (9, 128, 128) bf16
        b_refs = refs[1 + num_layers:1 + 2 * num_layers]      # (1, 128) f32
        out_refs = refs[1 + 2 * num_layers:1 + 2 * num_layers + n_out]
        pad_refs = refs[1 + 2 * num_layers + n_out:
                        1 + 2 * num_layers + n_out + num_layers]
        acc_ref = refs[-1]                                    # (M_max, 128) f32

        # Stage this image into layer 0's zero-bordered f32 pad buffer.
        _, hin0, win0, _ = x_ref.shape
        pad_refs[0][...] = jnp.zeros_like(pad_refs[0])
        pad_refs[0][:, 1:hin0 + 1, 1:win0 + 1, :] = x_ref[...].astype(jnp.float32)

        out_i = 0
        for l, (stride, hin, win, hout, wout) in enumerate(cfg):
            m = hout * wout
            pad = pad_refs[l]
            w9 = w_refs[l]

            # 3x3 conv as 9 accumulating MXU matmuls; each tap is a ref-level
            # (strided for stride-2) view -> no materialized im2col buffer.
            for t in range(9):
                kh, kw = t // 3, t % 3
                if stride == 1:
                    tap = pad[:, kh:kh + hout, kw:kw + wout, :]
                else:
                    tap = pad[:, pl.ds(kh, hout, stride),
                              pl.ds(kw, wout, stride), :]
                tap = tap.reshape(m, LANE).astype(jnp.bfloat16)
                part = jnp.dot(tap, w9[t], preferred_element_type=jnp.float32)
                if t == 0:
                    acc_ref[0:m, :] = part
                else:
                    acc_ref[0:m, :] += part

            # Bias + ReLU in f32; round activations to bf16 (matches reference).
            y = jnp.maximum(acc_ref[0:m, :] + b_refs[l][...], 0.0)
            y = y.reshape(1, hout, wout, LANE).astype(jnp.bfloat16)

            if extract_mask[l]:
                out_refs[out_i][...] = y          # lane-dense (.., 128) bf16 store
                out_i += 1

            if l + 1 < num_layers:
                # Next layer's zero-bordered input: stays in VMEM, no HBM trip.
                nxt = pad_refs[l + 1]
                nxt[...] = jnp.zeros_like(nxt)
                nxt[:, 1:hout + 1, 1:wout + 1, :] = y.astype(jnp.float32)

    return kernel


def _fused_forward(images, ws, bs, meta, extract_names):
    """Run the fused backbone. All shape/config decisions are trace-time static.

    images: (N, Cin, H, W) f32 NCHW.
    ws:     tuple of (9, 128, 128) bf16 weights for the run-order layers.
    bs:     tuple of (1, 128) f32 biases.
    meta:   tuple of (name, stride, cout) per run-order layer.
    Returns {name: (N, cout, Ho, Wo) f32} for extracted layers.
    """
    n, cin, h, w = images.shape
    x = jnp.transpose(images, (0, 2, 3, 1))                      # NCHW -> NHWC once
    x = jnp.pad(x, ((0, 0), (0, 0), (0, 0), (0, LANE - cin)))    # channels -> 128
    x = x.astype(jnp.bfloat16)

    # Per-layer static geometry.
    cfg, out_hw = [], []
    hin, win = h, w
    for (_, stride, _) in meta:
        hout = (hin + 2 - 3) // stride + 1
        wout = (win + 2 - 3) // stride + 1
        cfg.append((stride, hin, win, hout, wout))
        out_hw.append((hout, wout))
        hin, win = hout, wout
    cfg = tuple(cfg)
    extract_mask = tuple(name in extract_names for (name, _, _) in meta)
    num_layers = len(meta)
    m_max = max(ho * wo for (ho, wo) in out_hw)

    in_specs = [pl.BlockSpec((1, h, w, LANE), lambda i: (i, 0, 0, 0))]
    in_specs += [pl.BlockSpec((9, LANE, LANE), lambda i: (0, 0, 0))
                 for _ in range(num_layers)]
    in_specs += [pl.BlockSpec((1, LANE), lambda i: (0, 0))
                 for _ in range(num_layers)]

    out_shapes, out_specs = [], []
    for l, (ho, wo) in enumerate(out_hw):
        if extract_mask[l]:
            out_shapes.append(jax.ShapeDtypeStruct((n, ho, wo, LANE), jnp.bfloat16))
            out_specs.append(pl.BlockSpec((1, ho, wo, LANE), lambda i: (i, 0, 0, 0)))

    scratch_shapes = [pltpu.VMEM((1, hi + 2, wi + 2, LANE), jnp.float32)
                      for (_, hi, wi, _, _) in cfg]
    scratch_shapes.append(pltpu.VMEM((m_max, LANE), jnp.float32))

    outs = pl.pallas_call(
        _make_fused_kernel(cfg, extract_mask),
        out_shape=tuple(out_shapes),
        grid=(n,),
        in_specs=in_specs,
        out_specs=tuple(out_specs),
        scratch_shapes=scratch_shapes,
        compiler_params=pltpu.CompilerParams(
            dimension_semantics=("parallel",)),   # batch split across TCs on v7x
    )(x, *ws, *bs)

    # Extracted-layer post-processing (real channels, f32, NCHW) fused by XLA.
    results = {}
    oi = 0
    for l, (name, _, cout) in enumerate(meta):
        if extract_mask[l]:
            feat = outs[oi][..., :cout].astype(jnp.float32)
            results[name] = jnp.transpose(feat, (0, 3, 1, 2))    # NHWC -> NCHW
            oi += 1
    return results


# ---------------------------------------------------------------------------
# Synthetic backbone + NetworkFeatureAggregator equivalent
# ---------------------------------------------------------------------------
def make_backbone(key, in_channels):
    """Deterministic tiny backbone: named 3x3 conv+ReLU stages (PyTorch OIHW)."""
    cfg = [
        ("layer1", in_channels, 8, 1),
        ("layer2", 8, 16, 2),
        ("layer3", 16, 32, 2),
        ("layer4", 32, 64, 2),
    ]
    layers = []
    for name, cin, cout, stride in cfg:
        key, kw_, kb = jax.random.split(key, 3)
        w = 0.1 * jax.random.normal(kw_, (cout, cin, 3, 3), jnp.float32)  # OIHW
        b = 0.1 * jax.random.normal(kb, (cout,), jnp.float32)
        layers.append((name, w, b, stride))
    return layers


class NetworkFeatureAggregator:
    """JAX/Pallas equivalent of the PyTorch NetworkFeatureAggregator.

    Runs the backbone only up to the last layer in `layers_to_extract_from`
    (mirrors the hook + LastLayerToExtractReachedException early-exit) inside
    a single fused Pallas kernel and returns {layer_name: NCHW f32 features}.
    """

    def __init__(self, backbone, layers_to_extract_from):
        self.backbone = backbone
        self.layers_to_extract_from = list(layers_to_extract_from)
        self.outputs = {}

        # Precompute channel-padded bf16 weights / f32 biases for the layers
        # that actually run (early exit at the last requested layer).
        last = self.layers_to_extract_from[-1]
        ws, bs, meta = [], [], []
        for name, w, b, stride in backbone:
            cout, cin = int(w.shape[0]), int(w.shape[1])
            assert cin <= LANE and cout <= LANE
            w_hwio = jnp.transpose(w, (2, 3, 1, 0))                 # OIHW -> HWIO
            w_pad = jnp.zeros((3, 3, LANE, LANE), jnp.float32)
            w_pad = w_pad.at[:, :, :cin, :cout].set(w_hwio)         # zero-filled pad
            ws.append(w_pad.reshape(9, LANE, LANE).astype(jnp.bfloat16))
            bs.append(jnp.zeros((1, LANE), jnp.float32).at[0, :cout].set(b))
            meta.append((name, stride, cout))
            if name == last:
                break
        self._ws, self._bs = tuple(ws), tuple(bs)
        self._meta = tuple(meta)

        # TODO(synk): torch forward-hook registration / hook_handle bookkeeping
        # and .cuda() placement have no JAX/Pallas equivalent; the early-exit
        # semantics are reproduced structurally above instead.
        self._forward = jax.jit(functools.partial(
            _fused_forward, meta=self._meta,
            extract_names=tuple(self.layers_to_extract_from)))

    def __call__(self, images):  # images: NCHW f32 (PyTorch convention)
        outs = self._forward(images, self._ws, self._bs)
        self.outputs = dict(outs)
        return self.outputs

    def feature_dimensions(self, input_shape):
        _input = jnp.ones([1] + list(input_shape), jnp.float32)
        _output = self(_input)
        return [_output[layer].shape[1] for layer in self.layers_to_extract_from]


# ---------------------------------------------------------------------------
# Reference chain (pure JAX, matching the kernel's bf16-operand / f32-acc path)
# ---------------------------------------------------------------------------
def _ref_forward(images, backbone, layers_to_extract_from):
    outs = {}
    x = images
    last = layers_to_extract_from[-1]
    for name, w, b, stride in backbone:
        y = jax.lax.conv_general_dilated(
            x.astype(jnp.bfloat16), w.astype(jnp.bfloat16),
            window_strides=(stride, stride),
            padding=((1, 1), (1, 1)),
            dimension_numbers=("NCHW", "OIHW", "NCHW"),
            preferred_element_type=jnp.float32,
        )
        y = jnp.maximum(y + b[None, :, None, None], 0.0)
        x = y.astype(jnp.bfloat16).astype(jnp.float32)  # match kernel bf16 storage
        if name in layers_to_extract_from:
            outs[name] = x
        if name == last:
            break
    return outs


if __name__ == "__main__":
    key = jax.random.PRNGKey(0)
    k_img, k_bb = jax.random.split(key)

    batch, channels, spatial = 2, 4, 16
    images = jax.random.normal(k_img, (batch, channels, spatial, spatial), jnp.float32)

    backbone = make_backbone(k_bb, channels)
    layers_to_extract_from = ["layer2", "layer3"]

    aggregator = NetworkFeatureAggregator(backbone, layers_to_extract_from)
    outputs = aggregator(images)
    for v in outputs.values():
        jax.block_until_ready(v)

    # Reference check (same early-exit path, same bf16 operand rounding).
    ref_outputs = _ref_forward(images, backbone, layers_to_extract_from)
    for layer in layers_to_extract_from:
        assert outputs[layer].shape == ref_outputs[layer].shape, layer
        assert jnp.allclose(outputs[layer], ref_outputs[layer],
                            atol=2e-2, rtol=2e-2), layer

    # feature_dimensions sanity (channel dims: layer2 -> 16, layer3 -> 32)
    dims = aggregator.feature_dimensions([channels, spatial, spatial])
    assert dims == [16, 32], dims

    print("KERNEL_OK")
</pallas_src>

<mosaic_0001>
module attributes {stable_mosaic.version = 11 : i64} {
  func.func @kernel(%arg0: i32, %arg1: memref<1x16x16x128xbf16, #tpu.memory_space<vmem>>, %arg2: memref<9x128x128xbf16, #tpu.memory_space<vmem>>, %arg3: memref<9x128x128xbf16, #tpu.memory_space<vmem>>, %arg4: memref<9x128x128xbf16, #tpu.memory_space<vmem>>, %arg5: memref<1x128xf32, #tpu.memory_space<vmem>>, %arg6: memref<1x128xf32, #tpu.memory_space<vmem>>, %arg7: memref<1x128xf32, #tpu.memory_space<vmem>>, %arg8: memref<1x8x8x128xbf16, #tpu.memory_space<vmem>>, %arg9: memref<1x4x4x128xbf16, #tpu.memory_space<vmem>>, %arg10: memref<1x18x18x128xf32, #tpu.memory_space<vmem>>, %arg11: memref<1x18x18x128xf32, #tpu.memory_space<vmem>>, %arg12: memref<1x10x10x128xf32, #tpu.memory_space<vmem>>, %arg13: memref<256x128xf32, #tpu.memory_space<vmem>>) attributes {dimension_semantics = [#tpu.dimension_semantics<parallel>], iteration_bounds = array<i64: 2>, scalar_prefetch = 0 : i64, scratch_operands = 4 : i64, tpu.core_type = #tpu.core_type<tc>, window_params = [{transform_indices = @transform_0, window_bounds = array<i64: 1, 16, 16, 128>}, {pipeline_mode = #tpu.pipeline_mode<synchronous>, transform_indices = @transform_1, window_bounds = array<i64: 9, 128, 128>}, {pipeline_mode = #tpu.pipeline_mode<synchronous>, transform_indices = @transform_2, window_bounds = array<i64: 9, 128, 128>}, {pipeline_mode = #tpu.pipeline_mode<synchronous>, transform_indices = @transform_3, window_bounds = array<i64: 9, 128, 128>}, {pipeline_mode = #tpu.pipeline_mode<synchronous>, transform_indices = @transform_4, window_bounds = array<i64: 1, 128>}, {pipeline_mode = #tpu.pipeline_mode<synchronous>, transform_indices = @transform_5, window_bounds = array<i64: 1, 128>}, {pipeline_mode = #tpu.pipeline_mode<synchronous>, transform_indices = @transform_6, window_bounds = array<i64: 1, 128>}, {transform_indices = @transform_7, window_bounds = array<i64: 1, 8, 8, 128>}, {transform_indices = @transform_8, window_bounds = array<i64: 1, 4, 4, 128>}]} {
    %cst = arith.constant 0.000000e+00 : f32
    %0 = vector.broadcast %cst : f32 to vector<1x18x18x128xf32>
    %c0 = arith.constant 0 : index
    %c0_0 = arith.constant 0 : index
    %c0_1 = arith.constant 0 : index
    %c0_2 = arith.constant 0 : index
    %1 = vector.load %arg10[%c0, %c0_0, %c0_1, %c0_2] : memref<1x18x18x128xf32, #tpu.memory_space<vmem>>, vector<1x18x18x128xf32>
    tpu.vector_store %arg10[%c0, %c0_0, %c0_1, %c0_2], %0 {strides = array<i32>} : memref<1x18x18x128xf32, #tpu.memory_space<vmem>>, vector<1x18x18x128xf32>,
    %c0_3 = arith.constant 0 : index
    %c0_4 = arith.constant 0 : index
    %c0_5 = arith.constant 0 : index
    %c0_6 = arith.constant 0 : index
    %2 = vector.load %arg1[%c0_3, %c0_4, %c0_5, %c0_6] : memref<1x16x16x128xbf16, #tpu.memory_space<vmem>>, vector<1x16x16x128xbf16>
    %3 = arith.extf %2 : vector<1x16x16x128xbf16> to vector<1x16x16x128xf32>
    %c0_7 = arith.constant 0 : index
    %c1 = arith.constant 1 : index
    %c1_8 = arith.constant 1 : index
    %c0_9 = arith.constant 0 : index
    %4 = vector.load %arg10[%c0_7, %c1, %c1_8, %c0_9] : memref<1x18x18x128xf32, #tpu.memory_space<vmem>>, vector<1x16x16x128xf32>
    tpu.vector_store %arg10[%c0_7, %c1, %c1_8, %c0_9], %3 {strides = array<i32>} : memref<1x18x18x128xf32, #tpu.memory_space<vmem>>, vector<1x16x16x128xf32>,
    %c0_10 = arith.constant 0 : index
    %c0_11 = arith.constant 0 : index
    %c0_12 = arith.constant 0 : index
    %c0_13 = arith.constant 0 : index
    %5 = vector.load %arg10[%c0_10, %c0_11, %c0_12, %c0_13] : memref<1x18x18x128xf32, #tpu.memory_space<vmem>>, vector<1x16x16x128xf32>
    %6 = vector.shape_cast %5 : vector<1x16x16x128xf32> to vector<256x128xf32>
    %7 = arith.truncf %6 : vector<256x128xf32> to vector<256x128xbf16>
    %c0_14 = arith.constant 0 : index
    %c0_15 = arith.constant 0 : index
    %c0_16 = arith.constant 0 : index
    %8 = vector.load %arg2[%c0_14, %c0_15, %c0_16] : memref<9x128x128xbf16, #tpu.memory_space<vmem>>, vector<1x128x128xbf16>
    %9 = vector.shape_cast %8 : vector<1x128x128xbf16> to vector<128x128xbf16>
    %cst_17 = arith.constant dense<0.000000e+00> : vector<256x128xf32>
    %10 = tpu.matmul %7, %9, %cst_17 {dimension_numbers = #tpu.dot_dimension_numbers<[1], [0], [0], [1], [0, 0, 1, 1], [], []>} : vector<256x128xbf16>, vector<128x128xbf16>, vector<256x128xf32> -> vector<256x128xf32>
    %c0_18 = arith.constant 0 : index
    %c0_19 = arith.constant 0 : index
    %11 = vector.load %arg13[%c0_18, %c0_19] : memref<256x128xf32, #tpu.memory_space<vmem>>, vector<256x128xf32>
    tpu.vector_store %arg13[%c0_18, %c0_19], %10 {strides = array<i32>} : memref<256x128xf32, #tpu.memory_space<vmem>>, vector<256x128xf32>,
    %c0_20 = arith.constant 0 : index
    %c0_21 = arith.constant 0 : index
    %c1_22 = arith.constant 1 : index
    %c0_23 = arith.constant 0 : index
    %12 = vector.load %arg10[%c0_20, %c0_21, %c1_22, %c0_23] : memref<1x18x18x128xf32, #tpu.memory_space<vmem>>, vector<1x16x16x128xf32>
    %13 = vector.shape_cast %12 : vector<1x16x16x128xf32> to vector<256x128xf32>
    %14 = arith.truncf %13 : vector<256x128xf32> to vector<256x128xbf16>
    %c1_24 = arith.constant 1 : index
    %c0_25 = arith.constant 0 : index
    %c0_26 = arith.constant 0 : index
    %15 = vector.load %arg2[%c1_24, %c0_25, %c0_26] : memref<9x128x128xbf16, #tpu.memory_space<vmem>>, vector<1x128x128xbf16>
    %16 = vector.shape_cast %15 : vector<1x128x128xbf16> to vector<128x128xbf16>
    %cst_27 = arith.constant dense<0.000000e+00> : vector<256x128xf32>
    %17 = tpu.matmul %14, %16, %cst_27 {dimension_numbers = #tpu.dot_dimension_numbers<[1], [0], [0], [1], [0, 0, 1, 1], [], []>} : vector<256x128xbf16>, vector<128x128xbf16>, vector<256x128xf32> -> vector<256x128xf32>
    %c0_28 = arith.constant 0 : index
    %c0_29 = arith.constant 0 : index
    %18 = vector.load %arg13[%c0_28, %c0_29] : memref<256x128xf32, #tpu.memory_space<vmem>>, vector<256x128xf32>
    %19 = arith.addf %18, %17 : vector<256x128xf32>
    %c0_30 = arith.constant 0 : index
    %c0_31 = arith.constant 0 : index
    %20 = vector.load %arg13[%c0_30, %c0_31] : memref<256x128xf32, #tpu.memory_space<vmem>>, vector<256x128xf32>
    tpu.vector_store %arg13[%c0_30, %c0_31], %19 {strides = array<i32>} : memref<256x128xf32, #tpu.memory_space<vmem>>, vector<256x128xf32>,
    %c0_32 = arith.constant 0 : index
    %c0_33 = arith.constant 0 : index
    %c2 = arith.constant 2 : index
    %c0_34 = arith.constant 0 : index
    %21 = vector.load %arg10[%c0_32, %c0_33, %c2, %c0_34] : memref<1x18x18x128xf32, #tpu.memory_space<vmem>>, vector<1x16x16x128xf32>
    %22 = vector.shape_cast %21 : vector<1x16x16x128xf32> to vector<256x128xf32>
    %23 = arith.truncf %22 : vector<256x128xf32> to vector<256x128xbf16>
    %c2_35 = arith.constant 2 : index
    %c0_36 = arith.constant 0 : index
    %c0_37 = arith.constant 0 : index
    %24 = vector.load %arg2[%c2_35, %c0_36, %c0_37] : memref<9x128x128xbf16, #tpu.memory_space<vmem>>, vector<1x128x128xbf16>
    %25 = vector.shape_cast %24 : vector<1x128x128xbf16> to vector<128x128xbf16>
    %cst_38 = arith.constant dense<0.000000e+00> : vector<256x128xf32>
    %26 = tpu.matmul %23, %25, %cst_38 {dimension_numbers = #tpu.dot_dimension_numbers<[1], [0], [0], [1], [0, 0, 1, 1], [], []>} : vector<256x128xbf16>, vector<128x128xbf16>, vector<256x128xf32> -> vector<256x128xf32>
    %c0_39 = arith.constant 0 : index
    %c0_40 = arith.constant 0 : index
    %27 = vector.load %arg13[%c0_39, %c0_40] : memref<256x128xf32, #tpu.memory_space<vmem>>, vector<256x128xf32>
    %28 = arith.addf %27, %26 : vector<256x128xf32>
    %c0_41 = arith.constant 0 : index
    %c0_42 = arith.constant 0 : index
    %29 = vector.load %arg13[%c0_41, %c0_42] : memref<256x128xf32, #tpu.memory_space<vmem>>, vector<256x128xf32>
    tpu.vector_store %arg13[%c0_41, %c0_42], %28 {strides = array<i32>} : memref<256x128xf32, #tpu.memory_space<vmem>>, vector<256x128xf32>,
    %c0_43 = arith.constant 0 : index
    %c1_44 = arith.constant 1 : index
    %c0_45 = arith.constant 0 : index
    %c0_46 = arith.constant 0 : index
    %30 = vector.load %arg10[%c0_43, %c1_44, %c0_45, %c0_46] : memref<1x18x18x128xf32, #tpu.memory_space<vmem>>, vector<1x16x16x128xf32>
    %31 = vector.shape_cast %30 : vector<1x16x16x128xf32> to vector<256x128xf32>
    %32 = arith.truncf %31 : vector<256x128xf32> to vector<256x128xbf16>
    %c3 = arith.constant 3 : index
    %c0_47 = arith.constant 0 : index
    %c0_48 = arith.constant 0 : index
    %33 = vector.load %arg2[%c3, %c0_47, %c0_48] : memref<9x128x128xbf16, #tpu.memory_space<vmem>>, vector<1x128x128xbf16>
    %34 = vector.shape_cast %33 : vector<1x128x128xbf16> to vector<128x128xbf16>
    %cst_49 = arith.constant dense<0.000000e+00> : vector<256x128xf32>
    %35 = tpu.matmul %32, %34, %cst_49 {dimension_numbers = #tpu.dot_dimension_numbers<[1], [0], [0], [1], [0, 0, 1, 1], [], []>} : vector<256x128xbf16>, vector<128x128xbf16>, vector<256x128xf32> -> vector<256x128xf32>
    %c0_50 = arith.constant 0 : index
    %c0_51 = arith.constant 0 : index
    %36 = vector.load %arg13[%c0_50, %c0_51] : memref<256x128xf32, #tpu.memory_space<vmem>>, vector<256x128xf32>
    %37 = arith.addf %36, %35 : vector<256x128xf32>
    %c0_52 = arith.constant 0 : index
    %c0_53 = arith.constant 0 : index
    %38 = vector.load %arg13[%c0_52, %c0_53] : memref<256x128xf32, #tpu.memory_space<vmem>>, vector<256x128xf32>
    tpu.vector_store %arg13[%c0_52, %c0_53], %37 {strides = array<i32>} : memref<256x128xf32, #tpu.memory_space<vmem>>, vector<256x128xf32>,
    %c0_54 = arith.constant 0 : index
    %c1_55 = arith.constant 1 : index
    %c1_56 = arith.constant 1 : index
    %c0_57 = arith.constant 0 : index
    %39 = vector.load %arg10[%c0_54, %c1_55, %c1_56, %c0_57] : memref<1x18x18x128xf32, #tpu.memory_space<vmem>>, vector<1x16x16x128xf32>
    %40 = vector.shape_cast %39 : vector<1x16x16x128xf32> to vector<256x128xf32>
    %41 = arith.truncf %40 : vector<256x128xf32> to vector<256x128xbf16>
    %c4 = arith.constant 4 : index
    %c0_58 = arith.constant 0 : index
    %c0_59 = arith.constant 0 : index
    %42 = vector.load %arg2[%c4, %c0_58, %c0_59] : memref<9x128x128xbf16, #tpu.memory_space<vmem>>, vector<1x128x128xbf16>
    %43 = vector.shape_cast %42 : vector<1x128x128xbf16> to vector<128x128xbf16>
    %cst_60 = arith.constant dense<0.000000e+00> : vector<256x128xf32>
    %44 = tpu.matmul %41, %43, %cst_60 {dimension_numbers = #tpu.dot_dimension_numbers<[1], [0], [0], [1], [0, 0, 1, 1], [], []>} : vector<256x128xbf16>, vector<128x128xbf16>, vector<256x128xf32> -> vector<256x128xf32>
    %c0_61 = arith.constant 0 : index
    %c0_62 = arith.constant 0 : index
    %45 = vector.load %arg13[%c0_61, %c0_62] : memref<256x128xf32, #tpu.memory_space<vmem>>, vector<256x128xf32>
    %46 = arith.addf %45, %44 : vector<256x128xf32>
    %c0_63 = arith.constant 0 : index
    %c0_64 = arith.constant 0 : index
    %47 = vector.load %arg13[%c0_63, %c0_64] : memref<256x128xf32, #tpu.memory_space<vmem>>, vector<256x128xf32>
    tpu.vector_store %arg13[%c0_63, %c0_64], %46 {strides = array<i32>} : memref<256x128xf32, #tpu.memory_space<vmem>>, vector<256x128xf32>,
    %c0_65 = arith.constant 0 : index
    %c1_66 = arith.constant 1 : index
    %c2_67 = arith.constant 2 : index
    %c0_68 = arith.constant 0 : index
    %48 = vector.load %arg10[%c0_65, %c1_66, %c2_67, %c0_68] : memref<1x18x18x128xf32, #tpu.memory_space<vmem>>, vector<1x16x16x128xf32>
    %49 = vector.shape_cast %48 : vector<1x16x16x128xf32> to vector<256x128xf32>
    %50 = arith.truncf %49 : vector<256x128xf32> to vector<256x128xbf16>
    %c5 = arith.constant 5 : index
    %c0_69 = arith.constant 0 : index
    %c0_70 = arith.constant 0 : index
    %51 = vector.load %arg2[%c5, %c0_69, %c0_70] : memref<9x128x128xbf16, #tpu.memory_space<vmem>>, vector<1x128x128xbf16>
    %52 = vector.shape_cast %51 : vector<1x128x128xbf16> to vector<128x128xbf16>
    %cst_71 = arith.constant dense<0.000000e+00> : vector<256x128xf32>
    %53 = tpu.matmul %50, %52, %cst_71 {dimension_numbers = #tpu.dot_dimension_numbers<[1], [0], [0], [1], [0, 0, 1, 1], [], []>} : vector<256x128xbf16>, vector<128x128xbf16>, vector<256x128xf32> -> vector<256x128xf32>
    %c0_72 = arith.constant 0 : index
    %c0_73 = arith.constant 0 : index
    %54 = vector.load %arg13[%c0_72, %c0_73] : memref<256x128xf32, #tpu.memory_space<vmem>>, vector<256x128xf32>
    %55 = arith.addf %54, %53 : vector<256x128xf32>
    %c0_74 = arith.constant 0 : index
    %c0_75 = arith.constant 0 : index
    %56 = vector.load %arg13[%c0_74, %c0_75] : memref<256x128xf32, #tpu.memory_space<vmem>>, vector<256x128xf32>
    tpu.vector_store %arg13[%c0_74, %c0_75], %55 {strides = array<i32>} : memref<256x128xf32, #tpu.memory_space<vmem>>, vector<256x128xf32>,
    %c0_76 = arith.constant 0 : index
    %c2_77 = arith.constant 2 : index
    %c0_78 = arith.constant 0 : index
    %c0_79 = arith.constant 0 : index
    %57 = vector.load %arg10[%c0_76, %c2_77, %c0_78, %c0_79] : memref<1x18x18x128xf32, #tpu.memory_space<vmem>>, vector<1x16x16x128xf32>
    %58 = vector.shape_cast %57 : vector<1x16x16x128xf32> to vector<256x128xf32>
    %59 = arith.truncf %58 : vector<256x128xf32> to vector<256x128xbf16>
    %c6 = arith.constant 6 : index
    %c0_80 = arith.constant 0 : index
    %c0_81 = arith.constant 0 : index
    %60 = vector.load %arg2[%c6, %c0_80, %c0_81] : memref<9x128x128xbf16, #tpu.memory_space<vmem>>, vector<1x128x128xbf16>
    %61 = vector.shape_cast %60 : vector<1x128x128xbf16> to vector<128x128xbf16>
    %cst_82 = arith.constant dense<0.000000e+00> : vector<256x128xf32>
    %62 = tpu.matmul %59, %61, %cst_82 {dimension_numbers = #tpu.dot_dimension_numbers<[1], [0], [0], [1], [0, 0, 1, 1], [], []>} : vector<256x128xbf16>, vector<128x128xbf16>, vector<256x128xf32> -> vector<256x128xf32>
    %c0_83 = arith.constant 0 : index
    %c0_84 = arith.constant 0 : index
    %63 = vector.load %arg13[%c0_83, %c0_84] : memref<256x128xf32, #tpu.memory_space<vmem>>, vector<256x128xf32>
    %64 = arith.addf %63, %62 : vector<256x128xf32>
    %c0_85 = arith.constant 0 : index
    %c0_86 = arith.constant 0 : index
    %65 = vector.load %arg13[%c0_85, %c0_86] : memref<256x128xf32, #tpu.memory_space<vmem>>, vector<256x128xf32>
    tpu.vector_store %arg13[%c0_85, %c0_86], %64 {strides = array<i32>} : memref<256x128xf32, #tpu.memory_space<vmem>>, vector<256x128xf32>,
    %c0_87 = arith.constant 0 : index
    %c2_88 = arith.constant 2 : index
    %c1_89 = arith.constant 1 : index
    %c0_90 = arith.constant 0 : index
    %66 = vector.load %arg10[%c0_87, %c2_88, %c1_89, %c0_90] : memref<1x18x18x128xf32, #tpu.memory_space<vmem>>, vector<1x16x16x128xf32>
    %67 = vector.shape_cast %66 : vector<1x16x16x128xf32> to vector<256x128xf32>
    %68 = arith.truncf %67 : vector<256x128xf32> to vector<256x128xbf16>
    %c7 = arith.constant 7 : index
    %c0_91 = arith.constant 0 : index
    %c0_92 = arith.constant 0 : index
    %69 = vector.load %arg2[%c7, %c0_91, %c0_92] : memref<9x128x128xbf16, #tpu.memory_space<vmem>>, vector<1x128x128xbf16>
    %70 = vector.shape_cast %69 : vector<1x128x128xbf16> to vector<128x128xbf16>
    %cst_93 = arith.constant dense<0.000000e+00> : vector<256x128xf32>
    %71 = tpu.matmul %68, %70, %cst_93 {dimension_numbers = #tpu.dot_dimension_numbers<[1], [0], [0], [1], [0, 0, 1, 1], [], []>} : vector<256x128xbf16>, vector<128x128xbf16>, vector<256x128xf32> -> vector<256x128xf32>
    %c0_94 = arith.constant 0 : index
    %c0_95 = arith.constant 0 : index
    %72 = vector.load %arg13[%c0_94, %c0_95] : memref<256x128xf32, #tpu.memory_space<vmem>>, vector<256x128xf32>
    %73 = arith.addf %72, %71 : vector<256x128xf32>
    %c0_96 = arith.constant 0 : index
    %c0_97 = arith.constant 0 : index
    %74 = vector.load %arg13[%c0_96, %c0_97] : memref<256x128xf32, #tpu.memory_space<vmem>>, vector<256x128xf32>
    tpu.vector_store %arg13[%c0_96, %c0_97], %73 {strides = array<i32>} : memref<256x128xf32, #tpu.memory_space<vmem>>, vector<256x128xf32>,
    %c0_98 = arith.constant 0 : index
    %c2_99 = arith.constant 2 : index
    %c2_100 = arith.constant 2 : index
    %c0_101 = arith.constant 0 : index
    %75 = vector.load %arg10[%c0_98, %c2_99, %c2_100, %c0_101] : memref<1x18x18x128xf32, #tpu.memory_space<vmem>>, vector<1x16x16x128xf32>
    %76 = vector.shape_cast %75 : vector<1x16x16x128xf32> to vector<256x128xf32>
    %77 = arith.truncf %76 : vector<256x128xf32> to vector<256x128xbf16>
    %c8 = arith.constant 8 : index
    %c0_102 = arith.constant 0 : index
    %c0_103 = arith.constant 0 : index
    %78 = vector.load %arg2[%c8, %c0_102, %c0_103] : memref<9x128x128xbf16, #tpu.memory_space<vmem>>, vector<1x128x128xbf16>
    %79 = vector.shape_cast %78 : vector<1x128x128xbf16> to vector<128x128xbf16>
    %cst_104 = arith.constant dense<0.000000e+00> : vector<256x128xf32>
    %80 = tpu.matmul %77, %79, %cst_104 {dimension_numbers = #tpu.dot_dimension_numbers<[1], [0], [0], [1], [0, 0, 1, 1], [], []>} : vector<256x128xbf16>, vector<128x128xbf16>, vector<256x128xf32> -> vector<256x128xf32>
    %c0_105 = arith.constant 0 : index
    %c0_106 = arith.constant 0 : index
    %81 = vector.load %arg13[%c0_105, %c0_106] : memref<256x128xf32, #tpu.memory_space<vmem>>, vector<256x128xf32>
    %82 = arith.addf %81, %80 : vector<256x128xf32>
    %c0_107 = arith.constant 0 : index
    %c0_108 = arith.constant 0 : index
    %83 = vector.load %arg13[%c0_107, %c0_108] : memref<256x128xf32, #tpu.memory_space<vmem>>, vector<256x128xf32>
    tpu.vector_store %arg13[%c0_107, %c0_108], %82 {strides = array<i32>} : memref<256x128xf32, #tpu.memory_space<vmem>>, vector<256x128xf32>,
    %c0_109 = arith.constant 0 : index
    %c0_110 = arith.constant 0 : index
    %84 = vector.load %arg13[%c0_109, %c0_110] : memref<256x128xf32, #tpu.memory_space<vmem>>, vector<256x128xf32>
    %c0_111 = arith.constant 0 : index
    %c0_112 = arith.constant 0 : index
    %85 = vector.load %arg5[%c0_111, %c0_112] : memref<1x128xf32, #tpu.memory_space<vmem>>, vector<1x128xf32>
    %86 = vector.broadcast %85 : vector<1x128xf32> to vector<256x128xf32>
    %87 = arith.addf %84, %86 : vector<256x128xf32>
    %cst_113 = arith.constant 0.000000e+00 : f32
    %88 = vector.broadcast %cst_113 : f32 to vector<256x128xf32>
    %89 = arith.maximumf %87, %88 : vector<256x128xf32>
    %90 = vector.shape_cast %89 : vector<256x128xf32> to vector<1x16x16x128xf32>
    %91 = arith.truncf %90 : vector<1x16x16x128xf32> to vector<1x16x16x128xbf16>
    %cst_114 = arith.constant 0.000000e+00 : f32
    %92 = vector.broadcast %cst_114 : f32 to vector<1x18x18x128xf32>
    %c0_115 = arith.constant 0 : index
    %c0_116 = arith.constant 0 : index
    %c0_117 = arith.constant 0 : index
    %c0_118 = arith.constant 0 : index
    %93 = vector.load %arg11[%c0_115, %c0_116, %c0_117, %c0_118] : memref<1x18x18x128xf32, #tpu.memory_space<vmem>>, vector<1x18x18x128xf32>
    tpu.vector_store %arg11[%c0_115, %c0_116, %c0_117, %c0_118], %92 {strides = array<i32>} : memref<1x18x18x128xf32, #tpu.memory_space<vmem>>, vector<1x18x18x128xf32>,
    %94 = arith.extf %91 : vector<1x16x16x128xbf16> to vector<1x16x16x128xf32>
    %c0_119 = arith.constant 0 : index
    %c1_120 = arith.constant 1 : index
    %c1_121 = arith.constant 1 : index
    %c0_122 = arith.constant 0 : index
    %95 = vector.load %arg11[%c0_119, %c1_120, %c1_121, %c0_122] : memref<1x18x18x128xf32, #tpu.memory_space<vmem>>, vector<1x16x16x128xf32>
    tpu.vector_store %arg11[%c0_119, %c1_120, %c1_121, %c0_122], %94 {strides = array<i32>} : memref<1x18x18x128xf32, #tpu.memory_space<vmem>>, vector<1x16x16x128xf32>,
    %c0_123 = arith.constant 0 : index
    %c0_124 = arith.constant 0 : index
    %c0_125 = arith.constant 0 : index
    %c0_126 = arith.constant 0 : index
    %96 = tpu.strided_load %arg11[%c0_123, %c0_124, %c0_125, %c0_126] {strides = array<i32: 1, 2, 2, 1>} : memref<1x18x18x128xf32, #tpu.memory_space<vmem>>, vector<1x8x8x128xf32>
    %97 = vector.shape_cast %96 : vector<1x8x8x128xf32> to vector<64x128xf32>
    %98 = arith.truncf %97 : vector<64x128xf32> to vector<64x128xbf16>
    %c0_127 = arith.constant 0 : index
    %c0_128 = arith.constant 0 : index
    %c0_129 = arith.constant 0 : index
    %99 = vector.load %arg3[%c0_127, %c0_128, %c0_129] : memref<9x128x128xbf16, #tpu.memory_space<vmem>>, vector<1x128x128xbf16>
    %100 = vector.shape_cast %99 : vector<1x128x128xbf16> to vector<128x128xbf16>
    %cst_130 = arith.constant dense<0.000000e+00> : vector<64x128xf32>
    %101 = tpu.matmul %98, %100, %cst_130 {dimension_numbers = #tpu.dot_dimension_numbers<[1], [0], [0], [1], [0, 0, 1, 1], [], []>} : vector<64x128xbf16>, vector<128x128xbf16>, vector<64x128xf32> -> vector<64x128xf32>
    %c0_131 = arith.constant 0 : index
    %c0_132 = arith.constant 0 : index
    %102 = vector.load %arg13[%c0_131, %c0_132] : memref<256x128xf32, #tpu.memory_space<vmem>>, vector<64x128xf32>
    tpu.vector_store %arg13[%c0_131, %c0_132], %101 {strides = array<i32>} : memref<256x128xf32, #tpu.memory_space<vmem>>, vector<64x128xf32>,
    %c0_133 = arith.constant 0 : index
    %c0_134 = arith.constant 0 : index
    %c1_135 = arith.constant 1 : index
    %c0_136 = arith.constant 0 : index
    %103 = tpu.strided_load %arg11[%c0_133, %c0_134, %c1_135, %c0_136] {strides = array<i32: 1, 2, 2, 1>} : memref<1x18x18x128xf32, #tpu.memory_space<vmem>>, vector<1x8x8x128xf32>
    %104 = vector.shape_cast %103 : vector<1x8x8x128xf32> to vector<64x128xf32>
    %105 = arith.truncf %104 : vector<64x128xf32> to vector<64x128xbf16>
    %c1_137 = arith.constant 1 : index
    %c0_138 = arith.constant 0 : index
    %c0_139 = arith.constant 0 : index
    %106 = vector.load %arg3[%c1_137, %c0_138, %c0_139] : memref<9x128x128xbf16, #tpu.memory_space<vmem>>, vector<1x128x128xbf16>
    %107 = vector.shape_cast %106 : vector<1x128x128xbf16> to vector<128x128xbf16>
    %cst_140 = arith.constant dense<0.000000e+00> : vector<64x128xf32>
    %108 = tpu.matmul %105, %107, %cst_140 {dimension_numbers = #tpu.dot_dimension_numbers<[1], [0], [0], [1], [0, 0, 1, 1], [], []>} : vector<64x128xbf16>, vector<128x128xbf16>, vector<64x128xf32> -> vector<64x128xf32>
    %c0_141 = arith.constant 0 : index
    %c0_142 = arith.constant 0 : index
    %109 = vector.load %arg13[%c0_141, %c0_142] : memref<256x128xf32, #tpu.memory_space<vmem>>, vector<64x128xf32>
    %110 = arith.addf %109, %108 : vector<64x128xf32>
    %c0_143 = arith.constant 0 : index
    %c0_144 = arith.constant 0 : index
    %111 = vector.load %arg13[%c0_143, %c0_144] : memref<256x128xf32, #tpu.memory_space<vmem>>, vector<64x128xf32>
    tpu.vector_store %arg13[%c0_143, %c0_144], %110 {strides = array<i32>} : memref<256x128xf32, #tpu.memory_space<vmem>>, vector<64x128xf32>,
    %c0_145 = arith.constant 0 : index
    %c0_146 = arith.constant 0 : index
    %c2_147 = arith.constant 2 : index
    %c0_148 = arith.constant 0 : index
    %112 = tpu.strided_load %arg11[%c0_145, %c0_146, %c2_147, %c0_148] {strides = array<i32: 1, 2, 2, 1>} : memref<1x18x18x128xf32, #tpu.memory_space<vmem>>, vector<1x8x8x128xf32>
    %113 = vector.shape_cast %112 : vector<1x8x8x128xf32> to vector<64x128xf32>
    %114 = arith.truncf %113 : vector<64x128xf32> to vector<64x128xbf16>
    %c2_149 = arith.constant 2 : index
    %c0_150 = arith.constant 0 : index
    %c0_151 = arith.constant 0 : index
    %115 = vector.load %arg3[%c2_149, %c0_150, %c0_151] : memref<9x128x128xbf16, #tpu.memory_space<vmem>>, vector<1x128x128xbf16>
    %116 = vector.shape_cast %115 : vector<1x128x128xbf16> to vector<128x128xbf16>
    %cst_152 = arith.constant dense<0.000000e+00> : vector<64x128xf32>
    %117 = tpu.matmul %114, %116, %cst_152 {dimension_numbers = #tpu.dot_dimension_numbers<[1], [0], [0], [1], [0, 0, 1, 1], [], []>} : vector<64x128xbf16>, vector<128x128xbf16>, vector<64x128xf32> -> vector<64x128xf32>
    %c0_153 = arith.constant 0 : index
    %c0_154 = arith.constant 0 : index
    %118 = vector.load %arg13[%c0_153, %c0_154] : memref<256x128xf32, #tpu.memory_space<vmem>>, vector<64x128xf32>
    %119 = arith.addf %118, %117 : vector<64x128xf32>
    %c0_155 = arith.constant 0 : index
    %c0_156 = arith.constant 0 : index
    %120 = vector.load %arg13[%c0_155, %c0_156] : memref<256x128xf32, #tpu.memory_space<vmem>>, vector<64x128xf32>
    tpu.vector_store %arg13[%c0_155, %c0_156], %119 {strides = array<i32>} : memref<256x128xf32, #tpu.memory_space<vmem>>, vector<64x128xf32>,
    %c0_157 = arith.constant 0 : index
    %c1_158 = arith.constant 1 : index
    %c0_159 = arith.constant 0 : index
    %c0_160 = arith.constant 0 : index
    %121 = tpu.strided_load %arg11[%c0_157, %c1_158, %c0_159, %c0_160] {strides = array<i32: 1, 2, 2, 1>} : memref<1x18x18x128xf32, #tpu.memory_space<vmem>>, vector<1x8x8x128xf32>
    %122 = vector.shape_cast %121 : vector<1x8x8x128xf32> to vector<64x128xf32>
    %123 = arith.truncf %122 : vector<64x128xf32> to vector<64x128xbf16>
    %c3_161 = arith.constant 3 : index
    %c0_162 = arith.constant 0 : index
    %c0_163 = arith.constant 0 : index
    %124 = vector.load %arg3[%c3_161, %c0_162, %c0_163] : memref<9x128x128xbf16, #tpu.memory_space<vmem>>, vector<1x128x128xbf16>
    %125 = vector.shape_cast %124 : vector<1x128x128xbf16> to vector<128x128xbf16>
    %cst_164 = arith.constant dense<0.000000e+00> : vector<64x128xf32>
    %126 = tpu.matmul %123, %125, %cst_164 {dimension_numbers = #tpu.dot_dimension_numbers<[1], [0], [0], [1], [0, 0, 1, 1], [], []>} : vector<64x128xbf16>, vector<128x128xbf16>, vector<64x128xf32> -> vector<64x128xf32>
    %c0_165 = arith.constant 0 : index
    %c0_166 = arith.constant 0 : index
    %127 = vector.load %arg13[%c0_165, %c0_166] : memref<256x128xf32, #tpu.memory_space<vmem>>, vector<64x128xf32>
    %128 = arith.addf %127, %126 : vector<64x128xf32>
    %c0_167 = arith.constant 0 : index
    %c0_168 = arith.constant 0 : index
    %129 = vector.load %arg13[%c0_167, %c0_168] : memref<256x128xf32, #tpu.memory_space<vmem>>, vector<64x128xf32>
    tpu.vector_store %arg13[%c0_167, %c0_168], %128 {strides = array<i32>} : memref<256x128xf32, #tpu.memory_space<vmem>>, vector<64x128xf32>,
    %c0_169 = arith.constant 0 : index
    %c1_170 = arith.constant 1 : index
    %c1_171 = arith.constant 1 : index
    %c0_172 = arith.constant 0 : index
    %130 = tpu.strided_load %arg11[%c0_169, %c1_170, %c1_171, %c0_172] {strides = array<i32: 1, 2, 2, 1>} : memref<1x18x18x128xf32, #tpu.memory_space<vmem>>, vector<1x8x8x128xf32>
    %131 = vector.shape_cast %130 : vector<1x8x8x128xf32> to vector<64x128xf32>
    %132 = arith.truncf %131 : vector<64x128xf32> to vector<64x128xbf16>
    %c4_173 = arith.constant 4 : index
    %c0_174 = arith.constant 0 : index
    %c0_175 = arith.constant 0 : index
    %133 = vector.load %arg3[%c4_173, %c0_174, %c0_175] : memref<9x128x128xbf16, #tpu.memory_space<vmem>>, vector<1x128x128xbf16>
    %134 = vector.shape_cast %133 : vector<1x128x128xbf16> to vector<128x128xbf16>
    %cst_176 = arith.constant dense<0.000000e+00> : vector<64x128xf32>
    %135 = tpu.matmul %132, %134, %cst_176 {dimension_numbers = #tpu.dot_dimension_numbers<[1], [0], [0], [1], [0, 0, 1, 1], [], []>} : vector<64x128xbf16>, vector<128x128xbf16>, vector<64x128xf32> -> vector<64x128xf32>
    %c0_177 = arith.constant 0 : index
    %c0_178 = arith.constant 0 : index
    %136 = vector.load %arg13[%c0_177, %c0_178] : memref<256x128xf32, #tpu.memory_space<vmem>>, vector<64x128xf32>
    %137 = arith.addf %136, %135 : vector<64x128xf32>
    %c0_179 = arith.constant 0 : index
    %c0_180 = arith.constant 0 : index
    %138 = vector.load %arg13[%c0_179, %c0_180] : memref<256x128xf32, #tpu.memory_space<vmem>>, vector<64x128xf32>
    tpu.vector_store %arg13[%c0_179, %c0_180], %137 {strides = array<i32>} : memref<256x128xf32, #tpu.memory_space<vmem>>, vector<64x128xf32>,
    %c0_181 = arith.constant 0 : index
    %c1_182 = arith.constant 1 : index
    %c2_183 = arith.constant 2 : index
    %c0_184 = arith.constant 0 : index
    %139 = tpu.strided_load %arg11[%c0_181, %c1_182, %c2_183, %c0_184] {strides = array<i32: 1, 2, 2, 1>} : memref<1x18x18x128xf32, #tpu.memory_space<vmem>>, vector<1x8x8x128xf32>
    %140 = vector.shape_cast %139 : vector<1x8x8x128xf32> to vector<64x128xf32>
    %141 = arith.truncf %140 : vector<64x128xf32> to vector<64x128xbf16>
    %c5_185 = arith.constant 5 : index
    %c0_186 = arith.constant 0 : index
    %c0_187 = arith.constant 0 : index
    %142 = vector.load %arg3[%c5_185, %c0_186, %c0_187] : memref<9x128x128xbf16, #tpu.memory_space<vmem>>, vector<1x128x128xbf16>
    %143 = vector.shape_cast %142 : vector<1x128x128xbf16> to vector<128x128xbf16>
    %cst_188 = arith.constant dense<0.000000e+00> : vector<64x128xf32>
    %144 = tpu.matmul %141, %143, %cst_188 {dimension_numbers = #tpu.dot_dimension_numbers<[1], [0], [0], [1], [0, 0, 1, 1], [], []>} : vector<64x128xbf16>, vector<128x128xbf16>, vector<64x128xf32> -> vector<64x128xf32>
    %c0_189 = arith.constant 0 : index
    %c0_190 = arith.constant 0 : index
    %145 = vector.load %arg13[%c0_189, %c0_190] : memref<256x128xf32, #tpu.memory_space<vmem>>, vector<64x128xf32>
    %146 = arith.addf %145, %144 : vector<64x128xf32>
    %c0_191 = arith.constant 0 : index
    %c0_192 = arith.constant 0 : index
    %147 = vector.load %arg13[%c0_191, %c0_192] : memref<256x128xf32, #tpu.memory_space<vmem>>, vector<64x128xf32>
    tpu.vector_store %arg13[%c0_191, %c0_192], %146 {strides = array<i32>} : memref<256x128xf32, #tpu.memory_space<vmem>>, vector<64x128xf32>,
    %c0_193 = arith.constant 0 : index
    %c2_194 = arith.constant 2 : index
    %c0_195 = arith.constant 0 : index
    %c0_196 = arith.constant 0 : index
    %148 = tpu.strided_load %arg11[%c0_193, %c2_194, %c0_195, %c0_196] {strides = array<i32: 1, 2, 2, 1>} : memref<1x18x18x128xf32, #tpu.memory_space<vmem>>, vector<1x8x8x128xf32>
    %149 = vector.shape_cast %148 : vector<1x8x8x128xf32> to vector<64x128xf32>
    %150 = arith.truncf %149 : vector<64x128xf32> to vector<64x128xbf16>
    %c6_197 = arith.constant 6 : index
    %c0_198 = arith.constant 0 : index
    %c0_199 = arith.constant 0 : index
    %151 = vector.load %arg3[%c6_197, %c0_198, %c0_199] : memref<9x128x128xbf16, #tpu.memory_space<vmem>>, vector<1x128x128xbf16>
    %152 = vector.shape_cast %151 : vector<1x128x128xbf16> to vector<128x128xbf16>
    %cst_200 = arith.constant dense<0.000000e+00> : vector<64x128xf32>
    %153 = tpu.matmul %150, %152, %cst_200 {dimension_numbers = #tpu.dot_dimension_numbers<[1], [0], [0], [1], [0, 0, 1, 1], [], []>} : vector<64x128xbf16>, vector<128x128xbf16>, vector<64x128xf32> -> vector<64x128xf32>
    %c0_201 = arith.constant 0 : index
    %c0_202 = arith.constant 0 : index
    %154 = vector.load %arg13[%c0_201, %c0_202] : memref<256x128xf32, #tpu.memory_space<vmem>>, vector<64x128xf32>
    %155 = arith.addf %154, %153 : vector<64x128xf32>
    %c0_203 = arith.constant 0 : index
    %c0_204 = arith.constant 0 : index
    %156 = vector.load %arg13[%c0_203, %c0_204] : memref<256x128xf32, #tpu.memory_space<vmem>>, vector<64x128xf32>
    tpu.vector_store %arg13[%c0_203, %c0_204], %155 {strides = array<i32>} : memref<256x128xf32, #tpu.memory_space<vmem>>, vector<64x128xf32>,
    %c0_205 = arith.constant 0 : index
    %c2_206 = arith.constant 2 : index
    %c1_207 = arith.constant 1 : index
    %c0_208 = arith.constant 0 : index
    %157 = tpu.strided_load %arg11[%c0_205, %c2_206, %c1_207, %c0_208] {strides = array<i32: 1, 2, 2, 1>} : memref<1x18x18x128xf32, #tpu.memory_space<vmem>>, vector<1x8x8x128xf32>
    %158 = vector.shape_cast %157 : vector<1x8x8x128xf32> to vector<64x128xf32>
    %159 = arith.truncf %158 : vector<64x128xf32> to vector<64x128xbf16>
    %c7_209 = arith.constant 7 : index
    %c0_210 = arith.constant 0 : index
    %c0_211 = arith.constant 0 : index
    %160 = vector.load %arg3[%c7_209, %c0_210, %c0_211] : memref<9x128x128xbf16, #tpu.memory_space<vmem>>, vector<1x128x128xbf16>
    %161 = vector.shape_cast %160 : vector<1x128x128xbf16> to vector<128x128xbf16>
    %cst_212 = arith.constant dense<0.000000e+00> : vector<64x128xf32>
    %162 = tpu.matmul %159, %161, %cst_212 {dimension_numbers = #tpu.dot_dimension_numbers<[1], [0], [0], [1], [0, 0, 1, 1], [], []>} : vector<64x128xbf16>, vector<128x128xbf16>, vector<64x128xf32> -> vector<64x128xf32>
    %c0_213 = arith.constant 0 : index
    %c0_214 = arith.constant 0 : index
    %163 = vector.load %arg13[%c0_213, %c0_214] : memref<256x128xf32, #tpu.memory_space<vmem>>, vector<64x128xf32>
    %164 = arith.addf %163, %162 : vector<64x128xf32>
    %c0_215 = arith.constant 0 : index
    %c0_216 = arith.constant 0 : index
    %165 = vector.load %arg13[%c0_215, %c0_216] : memref<256x128xf32, #tpu.memory_space<vmem>>, vector<64x128xf32>
    tpu.vector_store %arg13[%c0_215, %c0_216], %164 {strides = array<i32>} : memref<256x128xf32, #tpu.memory_space<vmem>>, vector<64x128xf32>,
    %c0_217 = arith.constant 0 : index
    %c2_218 = arith.constant 2 : index
    %c2_219 = arith.constant 2 : index
    %c0_220 = arith.constant 0 : index
    %166 = tpu.strided_load %arg11[%c0_217, %c2_218, %c2_219, %c0_220] {strides = array<i32: 1, 2, 2, 1>} : memref<1x18x18x128xf32, #tpu.memory_space<vmem>>, vector<1x8x8x128xf32>
    %167 = vector.shape_cast %166 : vector<1x8x8x128xf32> to vector<64x128xf32>
    %168 = arith.truncf %167 : vector<64x128xf32> to vector<64x128xbf16>
    %c8_221 = arith.constant 8 : index
    %c0_222 = arith.constant 0 : index
    %c0_223 = arith.constant 0 : index
    %169 = vector.load %arg3[%c8_221, %c0_222, %c0_223] : memref<9x128x128xbf16, #tpu.memory_space<vmem>>, vector<1x128x128xbf16>
    %170 = vector.shape_cast %169 : vector<1x128x128xbf16> to vector<128x128xbf16>
    %cst_224 = arith.constant dense<0.000000e+00> : vector<64x128xf32>
    %171 = tpu.matmul %168, %170, %cst_224 {dimension_numbers = #tpu.dot_dimension_numbers<[1], [0], [0], [1], [0, 0, 1, 1], [], []>} : vector<64x128xbf16>, vector<128x128xbf16>, vector<64x128xf32> -> vector<64x128xf32>
    %c0_225 = arith.constant 0 : index
    %c0_226 = arith.constant 0 : index
    %172 = vector.load %arg13[%c0_225, %c0_226] : memref<256x128xf32, #tpu.memory_space<vmem>>, vector<64x128xf32>
    %173 = arith.addf %172, %171 : vector<64x128xf32>
    %c0_227 = arith.constant 0 : index
    %c0_228 = arith.constant 0 : index
    %174 = vector.load %arg13[%c0_227, %c0_228] : memref<256x128xf32, #tpu.memory_space<vmem>>, vector<64x128xf32>
    tpu.vector_store %arg13[%c0_227, %c0_228], %173 {strides = array<i32>} : memref<256x128xf32, #tpu.memory_space<vmem>>, vector<64x128xf32>,
    %c0_229 = arith.constant 0 : index
    %c0_230 = arith.constant 0 : index
    %175 = vector.load %arg13[%c0_229, %c0_230] : memref<256x128xf32, #tpu.memory_space<vmem>>, vector<64x128xf32>
    %c0_231 = arith.constant 0 : index
    %c0_232 = arith.constant 0 : index
    %176 = vector.load %arg6[%c0_231, %c0_232] : memref<1x128xf32, #tpu.memory_space<vmem>>, vector<1x128xf32>
    %177 = vector.broadcast %176 : vector<1x128xf32> to vector<64x128xf32>
    %178 = arith.addf %175, %177 : vector<64x128xf32>
    %cst_233 = arith.constant 0.000000e+00 : f32
    %179 = vector.broadcast %cst_233 : f32 to vector<64x128xf32>
    %180 = arith.maximumf %178, %179 : vector<64x128xf32>
    %181 = vector.shape_cast %180 : vector<64x128xf32> to vector<1x8x8x128xf32>
    %182 = arith.truncf %181 : vector<1x8x8x128xf32> to vector<1x8x8x128xbf16>
    %c0_234 = arith.constant 0 : index
    %c0_235 = arith.constant 0 : index
    %c0_236 = arith.constant 0 : index
    %c0_237 = arith.constant 0 : index
    %183 = vector.load %arg8[%c0_234, %c0_235, %c0_236, %c0_237] : memref<1x8x8x128xbf16, #tpu.memory_space<vmem>>, vector<1x8x8x128xbf16>
    tpu.vector_store %arg8[%c0_234, %c0_235, %c0_236, %c0_237], %182 {strides = array<i32>} : memref<1x8x8x128xbf16, #tpu.memory_space<vmem>>, vector<1x8x8x128xbf16>,
    %cst_238 = arith.constant 0.000000e+00 : f32
    %184 = vector.broadcast %cst_238 : f32 to vector<1x10x10x128xf32>
    %c0_239 = arith.constant 0 : index
    %c0_240 = arith.constant 0 : index
    %c0_241 = arith.constant 0 : index
    %c0_242 = arith.constant 0 : index
    %185 = vector.load %arg12[%c0_239, %c0_240, %c0_241, %c0_242] : memref<1x10x10x128xf32, #tpu.memory_space<vmem>>, vector<1x10x10x128xf32>
    tpu.vector_store %arg12[%c0_239, %c0_240, %c0_241, %c0_242], %184 {strides = array<i32>} : memref<1x10x10x128xf32, #tpu.memory_space<vmem>>, vector<1x10x10x128xf32>,
    %186 = arith.extf %182 : vector<1x8x8x128xbf16> to vector<1x8x8x128xf32>
    %c0_243 = arith.constant 0 : index
    %c1_244 = arith.constant 1 : index
    %c1_245 = arith.constant 1 : index
    %c0_246 = arith.constant 0 : index
    %187 = vector.load %arg12[%c0_243, %c1_244, %c1_245, %c0_246] : memref<1x10x10x128xf32, #tpu.memory_space<vmem>>, vector<1x8x8x128xf32>
    tpu.vector_store %arg12[%c0_243, %c1_244, %c1_245, %c0_246], %186 {strides = array<i32>} : memref<1x10x10x128xf32, #tpu.memory_space<vmem>>, vector<1x8x8x128xf32>,
    %c0_247 = arith.constant 0 : index
    %c0_248 = arith.constant 0 : index
    %c0_249 = arith.constant 0 : index
    %c0_250 = arith.constant 0 : index
    %188 = tpu.strided_load %arg12[%c0_247, %c0_248, %c0_249, %c0_250] {strides = array<i32: 1, 2, 2, 1>} : memref<1x10x10x128xf32, #tpu.memory_space<vmem>>, vector<1x4x4x128xf32>
    %189 = vector.shape_cast %188 : vector<1x4x4x128xf32> to vector<16x128xf32>
    %190 = arith.truncf %189 : vector<16x128xf32> to vector<16x128xbf16>
    %c0_251 = arith.constant 0 : index
    %c0_252 = arith.constant 0 : index
    %c0_253 = arith.constant 0 : index
    %191 = vector.load %arg4[%c0_251, %c0_252, %c0_253] : memref<9x128x128xbf16, #tpu.memory_space<vmem>>, vector<1x128x128xbf16>
    %192 = vector.shape_cast %191 : vector<1x128x128xbf16> to vector<128x128xbf16>
    %cst_254 = arith.constant dense<0.000000e+00> : vector<16x128xf32>
    %193 = tpu.matmul %190, %192, %cst_254 {dimension_numbers = #tpu.dot_dimension_numbers<[1], [0], [0], [1], [0, 0, 1, 1], [], []>} : vector<16x128xbf16>, vector<128x128xbf16>, vector<16x128xf32> -> vector<16x128xf32>
    %c0_255 = arith.constant 0 : index
    %c0_256 = arith.constant 0 : index
    %194 = vector.load %arg13[%c0_255, %c0_256] : memref<256x128xf32, #tpu.memory_space<vmem>>, vector<16x128xf32>
    tpu.vector_store %arg13[%c0_255, %c0_256], %193 {strides = array<i32>} : memref<256x128xf32, #tpu.memory_space<vmem>>, vector<16x128xf32>,
    %c0_257 = arith.constant 0 : index
    %c0_258 = arith.constant 0 : index
    %c1_259 = arith.constant 1 : index
    %c0_260 = arith.constant 0 : index
    %195 = tpu.strided_load %arg12[%c0_257, %c0_258, %c1_259, %c0_260] {strides = array<i32: 1, 2, 2, 1>} : memref<1x10x10x128xf32, #tpu.memory_space<vmem>>, vector<1x4x4x128xf32>
    %196 = vector.shape_cast %195 : vector<1x4x4x128xf32> to vector<16x128xf32>
    %197 = arith.truncf %196 : vector<16x128xf32> to vector<16x128xbf16>
    %c1_261 = arith.constant 1 : index
    %c0_262 = arith.constant 0 : index
    %c0_263 = arith.constant 0 : index
    %198 = vector.load %arg4[%c1_261, %c0_262, %c0_263] : memref<9x128x128xbf16, #tpu.memory_space<vmem>>, vector<1x128x128xbf16>
    %199 = vector.shape_cast %198 : vector<1x128x128xbf16> to vector<128x128xbf16>
    %cst_264 = arith.constant dense<0.000000e+00> : vector<16x128xf32>
    %200 = tpu.matmul %197, %199, %cst_264 {dimension_numbers = #tpu.dot_dimension_numbers<[1], [0], [0], [1], [0, 0, 1, 1], [], []>} : vector<16x128xbf16>, vector<128x128xbf16>, vector<16x128xf32> -> vector<16x128xf32>
    %c0_265 = arith.constant 0 : index
    %c0_266 = arith.constant 0 : index
    %201 = vector.load %arg13[%c0_265, %c0_266] : memref<256x128xf32, #tpu.memory_space<vmem>>, vector<16x128xf32>
    %202 = arith.addf %201, %200 : vector<16x128xf32>
    %c0_267 = arith.constant 0 : index
    %c0_268 = arith.constant 0 : index
    %203 = vector.load %arg13[%c0_267, %c0_268] : memref<256x128xf32, #tpu.memory_space<vmem>>, vector<16x128xf32>
    tpu.vector_store %arg13[%c0_267, %c0_268], %202 {strides = array<i32>} : memref<256x128xf32, #tpu.memory_space<vmem>>, vector<16x128xf32>,
    %c0_269 = arith.constant 0 : index
    %c0_270 = arith.constant 0 : index
    %c2_271 = arith.constant 2 : index
    %c0_272 = arith.constant 0 : index
    %204 = tpu.strided_load %arg12[%c0_269, %c0_270, %c2_271, %c0_272] {strides = array<i32: 1, 2, 2, 1>} : memref<1x10x10x128xf32, #tpu.memory_space<vmem>>, vector<1x4x4x128xf32>
    %205 = vector.shape_cast %204 : vector<1x4x4x128xf32> to vector<16x128xf32>
    %206 = arith.truncf %205 : vector<16x128xf32> to vector<16x128xbf16>
    %c2_273 = arith.constant 2 : index
    %c0_274 = arith.constant 0 : index
    %c0_275 = arith.constant 0 : index
    %207 = vector.load %arg4[%c2_273, %c0_274, %c0_275] : memref<9x128x128xbf16, #tpu.memory_space<vmem>>, vector<1x128x128xbf16>
    %208 = vector.shape_cast %207 : vector<1x128x128xbf16> to vector<128x128xbf16>
    %cst_276 = arith.constant dense<0.000000e+00> : vector<16x128xf32>
    %209 = tpu.matmul %206, %208, %cst_276 {dimension_numbers = #tpu.dot_dimension_numbers<[1], [0], [0], [1], [0, 0, 1, 1], [], []>} : vector<16x128xbf16>, vector<128x128xbf16>, vector<16x128xf32> -> vector<16x128xf32>
    %c0_277 = arith.constant 0 : index
    %c0_278 = arith.constant 0 : index
    %210 = vector.load %arg13[%c0_277, %c0_278] : memref<256x128xf32, #tpu.memory_space<vmem>>, vector<16x128xf32>
    %211 = arith.addf %210, %209 : vector<16x128xf32>
    %c0_279 = arith.constant 0 : index
    %c0_280 = arith.constant 0 : index
    %212 = vector.load %arg13[%c0_279, %c0_280] : memref<256x128xf32, #tpu.memory_space<vmem>>, vector<16x128xf32>
    tpu.vector_store %arg13[%c0_279, %c0_280], %211 {strides = array<i32>} : memref<256x128xf32, #tpu.memory_space<vmem>>, vector<16x128xf32>,
    %c0_281 = arith.constant 0 : index
    %c1_282 = arith.constant 1 : index
    %c0_283 = arith.constant 0 : index
    %c0_284 = arith.constant 0 : index
    %213 = tpu.strided_load %arg12[%c0_281, %c1_282, %c0_283, %c0_284] {strides = array<i32: 1, 2, 2, 1>} : memref<1x10x10x128xf32, #tpu.memory_space<vmem>>, vector<1x4x4x128xf32>
    %214 = vector.shape_cast %213 : vector<1x4x4x128xf32> to vector<16x128xf32>
    %215 = arith.truncf %214 : vector<16x128xf32> to vector<16x128xbf16>
    %c3_285 = arith.constant 3 : index
    %c0_286 = arith.constant 0 : index
    %c0_287 = arith.constant 0 : index
    %216 = vector.load %arg4[%c3_285, %c0_286, %c0_287] : memref<9x128x128xbf16, #tpu.memory_space<vmem>>, vector<1x128x128xbf16>
    %217 = vector.shape_cast %216 : vector<1x128x128xbf16> to vector<128x128xbf16>
    %cst_288 = arith.constant dense<0.000000e+00> : vector<16x128xf32>
    %218 = tpu.matmul %215, %217, %cst_288 {dimension_numbers = #tpu.dot_dimension_numbers<[1], [0], [0], [1], [0, 0, 1, 1], [], []>} : vector<16x128xbf16>, vector<128x128xbf16>, vector<16x128xf32> -> vector<16x128xf32>
    %c0_289 = arith.constant 0 : index
    %c0_290 = arith.constant 0 : index
    %219 = vector.load %arg13[%c0_289, %c0_290] : memref<256x128xf32, #tpu.memory_space<vmem>>, vector<16x128xf32>
    %220 = arith.addf %219, %218 : vector<16x128xf32>
    %c0_291 = arith.constant 0 : index
    %c0_292 = arith.constant 0 : index
    %221 = vector.load %arg13[%c0_291, %c0_292] : memref<256x128xf32, #tpu.memory_space<vmem>>, vector<16x128xf32>
    tpu.vector_store %arg13[%c0_291, %c0_292], %220 {strides = array<i32>} : memref<256x128xf32, #tpu.memory_space<vmem>>, vector<16x128xf32>,
    %c0_293 = arith.constant 0 : index
    %c1_294 = arith.constant 1 : index
    %c1_295 = arith.constant 1 : index
    %c0_296 = arith.constant 0 : index
    %222 = tpu.strided_load %arg12[%c0_293, %c1_294, %c1_295, %c0_296] {strides = array<i32: 1, 2, 2, 1>} : memref<1x10x10x128xf32, #tpu.memory_space<vmem>>, vector<1x4x4x128xf32>
    %223 = vector.shape_cast %222 : vector<1x4x4x128xf32> to vector<16x128xf32>
    %224 = arith.truncf %223 : vector<16x128xf32> to vector<16x128xbf16>
    %c4_297 = arith.constant 4 : index
    %c0_298 = arith.constant 0 : index
    %c0_299 = arith.constant 0 : index
    %225 = vector.load %arg4[%c4_297, %c0_298, %c0_299] : memref<9x128x128xbf16, #tpu.memory_space<vmem>>, vector<1x128x128xbf16>
    %226 = vector.shape_cast %225 : vector<1x128x128xbf16> to vector<128x128xbf16>
    %cst_300 = arith.constant dense<0.000000e+00> : vector<16x128xf32>
    %227 = tpu.matmul %224, %226, %cst_300 {dimension_numbers = #tpu.dot_dimension_numbers<[1], [0], [0], [1], [0, 0, 1, 1], [], []>} : vector<16x128xbf16>, vector<128x128xbf16>, vector<16x128xf32> -> vector<16x128xf32>
    %c0_301 = arith.constant 0 : index
    %c0_302 = arith.constant 0 : index
    %228 = vector.load %arg13[%c0_301, %c0_302] : memref<256x128xf32, #tpu.memory_space<vmem>>, vector<16x128xf32>
    %229 = arith.addf %228, %227 : vector<16x128xf32>
    %c0_303 = arith.constant 0 : index
    %c0_304 = arith.constant 0 : index
    %230 = vector.load %arg13[%c0_303, %c0_304] : memref<256x128xf32, #tpu.memory_space<vmem>>, vector<16x128xf32>
    tpu.vector_store %arg13[%c0_303, %c0_304], %229 {strides = array<i32>} : memref<256x128xf32, #tpu.memory_space<vmem>>, vector<16x128xf32>,
    %c0_305 = arith.constant 0 : index
    %c1_306 = arith.constant 1 : index
    %c2_307 = arith.constant 2 : index
    %c0_308 = arith.constant 0 : index
    %231 = tpu.strided_load %arg12[%c0_305, %c1_306, %c2_307, %c0_308] {strides = array<i32: 1, 2, 2, 1>} : memref<1x10x10x128xf32, #tpu.memory_space<vmem>>, vector<1x4x4x128xf32>
    %232 = vector.shape_cast %231 : vector<1x4x4x128xf32> to vector<16x128xf32>
    %233 = arith.truncf %232 : vector<16x128xf32> to vector<16x128xbf16>
    %c5_309 = arith.constant 5 : index
    %c0_310 = arith.constant 0 : index
    %c0_311 = arith.constant 0 : index
    %234 = vector.load %arg4[%c5_309, %c0_310, %c0_311] : memref<9x128x128xbf16, #tpu.memory_space<vmem>>, vector<1x128x128xbf16>
    %235 = vector.shape_cast %234 : vector<1x128x128xbf16> to vector<128x128xbf16>
    %cst_312 = arith.constant dense<0.000000e+00> : vector<16x128xf32>
    %236 = tpu.matmul %233, %235, %cst_312 {dimension_numbers = #tpu.dot_dimension_numbers<[1], [0], [0], [1], [0, 0, 1, 1], [], []>} : vector<16x128xbf16>, vector<128x128xbf16>, vector<16x128xf32> -> vector<16x128xf32>
    %c0_313 = arith.constant 0 : index
    %c0_314 = arith.constant 0 : index
    %237 = vector.load %arg13[%c0_313, %c0_314] : memref<256x128xf32, #tpu.memory_space<vmem>>, vector<16x128xf32>
    %238 = arith.addf %237, %236 : vector<16x128xf32>
    %c0_315 = arith.constant 0 : index
    %c0_316 = arith.constant 0 : index
    %239 = vector.load %arg13[%c0_315, %c0_316] : memref<256x128xf32, #tpu.memory_space<vmem>>, vector<16x128xf32>
    tpu.vector_store %arg13[%c0_315, %c0_316], %238 {strides = array<i32>} : memref<256x128xf32, #tpu.memory_space<vmem>>, vector<16x128xf32>,
    %c0_317 = arith.constant 0 : index
    %c2_318 = arith.constant 2 : index
    %c0_319 = arith.constant 0 : index
    %c0_320 = arith.constant 0 : index
    %240 = tpu.strided_load %arg12[%c0_317, %c2_318, %c0_319, %c0_320] {strides = array<i32: 1, 2, 2, 1>} : memref<1x10x10x128xf32, #tpu.memory_space<vmem>>, vector<1x4x4x128xf32>
    %241 = vector.shape_cast %240 : vector<1x4x4x128xf32> to vector<16x128xf32>
    %242 = arith.truncf %241 : vector<16x128xf32> to vector<16x128xbf16>
    %c6_321 = arith.constant 6 : index
    %c0_322 = arith.constant 0 : index
    %c0_323 = arith.constant 0 : index
    %243 = vector.load %arg4[%c6_321, %c0_322, %c0_323] : memref<9x128x128xbf16, #tpu.memory_space<vmem>>, vector<1x128x128xbf16>
    %244 = vector.shape_cast %243 : vector<1x128x128xbf16> to vector<128x128xbf16>
    %cst_324 = arith.constant dense<0.000000e+00> : vector<16x128xf32>
    %245 = tpu.matmul %242, %244, %cst_324 {dimension_numbers = #tpu.dot_dimension_numbers<[1], [0], [0], [1], [0, 0, 1, 1], [], []>} : vector<16x128xbf16>, vector<128x128xbf16>, vector<16x128xf32> -> vector<16x128xf32>
    %c0_325 = arith.constant 0 : index
    %c0_326 = arith.constant 0 : index
    %246 = vector.load %arg13[%c0_325, %c0_326] : memref<256x128xf32, #tpu.memory_space<vmem>>, vector<16x128xf32>
    %247 = arith.addf %246, %245 : vector<16x128xf32>
    %c0_327 = arith.constant 0 : index
    %c0_328 = arith.constant 0 : index
    %248 = vector.load %arg13[%c0_327, %c0_328] : memref<256x128xf32, #tpu.memory_space<vmem>>, vector<16x128xf32>
    tpu.vector_store %arg13[%c0_327, %c0_328], %247 {strides = array<i32>} : memref<256x128xf32, #tpu.memory_space<vmem>>, vector<16x128xf32>,
    %c0_329 = arith.constant 0 : index
    %c2_330 = arith.constant 2 : index
    %c1_331 = arith.constant 1 : index
    %c0_332 = arith.constant 0 : index
    %249 = tpu.strided_load %arg12[%c0_329, %c2_330, %c1_331, %c0_332] {strides = array<i32: 1, 2, 2, 1>} : memref<1x10x10x128xf32, #tpu.memory_space<vmem>>, vector<1x4x4x128xf32>
    %250 = vector.shape_cast %249 : vector<1x4x4x128xf32> to vector<16x128xf32>
    %251 = arith.truncf %250 : vector<16x128xf32> to vector<16x128xbf16>
    %c7_333 = arith.constant 7 : index
    %c0_334 = arith.constant 0 : index
    %c0_335 = arith.constant 0 : index
    %252 = vector.load %arg4[%c7_333, %c0_334, %c0_335] : memref<9x128x128xbf16, #tpu.memory_space<vmem>>, vector<1x128x128xbf16>
    %253 = vector.shape_cast %252 : vector<1x128x128xbf16> to vector<128x128xbf16>
    %cst_336 = arith.constant dense<0.000000e+00> : vector<16x128xf32>
    %254 = tpu.matmul %251, %253, %cst_336 {dimension_numbers = #tpu.dot_dimension_numbers<[1], [0], [0], [1], [0, 0, 1, 1], [], []>} : vector<16x128xbf16>, vector<128x128xbf16>, vector<16x128xf32> -> vector<16x128xf32>
    %c0_337 = arith.constant 0 : index
    %c0_338 = arith.constant 0 : index
    %255 = vector.load %arg13[%c0_337, %c0_338] : memref<256x128xf32, #tpu.memory_space<vmem>>, vector<16x128xf32>
    %256 = arith.addf %255, %254 : vector<16x128xf32>
    %c0_339 = arith.constant 0 : index
    %c0_340 = arith.constant 0 : index
    %257 = vector.load %arg13[%c0_339, %c0_340] : memref<256x128xf32, #tpu.memory_space<vmem>>, vector<16x128xf32>
    tpu.vector_store %arg13[%c0_339, %c0_340], %256 {strides = array<i32>} : memref<256x128xf32, #tpu.memory_space<vmem>>, vector<16x128xf32>,
    %c0_341 = arith.constant 0 : index
    %c2_342 = arith.constant 2 : index
    %c2_343 = arith.constant 2 : index
    %c0_344 = arith.constant 0 : index
    %258 = tpu.strided_load %arg12[%c0_341, %c2_342, %c2_343, %c0_344] {strides = array<i32: 1, 2, 2, 1>} : memref<1x10x10x128xf32, #tpu.memory_space<vmem>>, vector<1x4x4x128xf32>
    %259 = vector.shape_cast %258 : vector<1x4x4x128xf32> to vector<16x128xf32>
    %260 = arith.truncf %259 : vector<16x128xf32> to vector<16x128xbf16>
    %c8_345 = arith.constant 8 : index
    %c0_346 = arith.constant 0 : index
    %c0_347 = arith.constant 0 : index
    %261 = vector.load %arg4[%c8_345, %c0_346, %c0_347] : memref<9x128x128xbf16, #tpu.memory_space<vmem>>, vector<1x128x128xbf16>
    %262 = vector.shape_cast %261 : vector<1x128x128xbf16> to vector<128x128xbf16>
    %cst_348 = arith.constant dense<0.000000e+00> : vector<16x128xf32>
    %263 = tpu.matmul %260, %262, %cst_348 {dimension_numbers = #tpu.dot_dimension_numbers<[1], [0], [0], [1], [0, 0, 1, 1], [], []>} : vector<16x128xbf16>, vector<128x128xbf16>, vector<16x128xf32> -> vector<16x128xf32>
    %c0_349 = arith.constant 0 : index
    %c0_350 = arith.constant 0 : index
    %264 = vector.load %arg13[%c0_349, %c0_350] : memref<256x128xf32, #tpu.memory_space<vmem>>, vector<16x128xf32>
    %265 = arith.addf %264, %263 : vector<16x128xf32>
    %c0_351 = arith.constant 0 : index
    %c0_352 = arith.constant 0 : index
    %266 = vector.load %arg13[%c0_351, %c0_352] : memref<256x128xf32, #tpu.memory_space<vmem>>, vector<16x128xf32>
    tpu.vector_store %arg13[%c0_351, %c0_352], %265 {strides = array<i32>} : memref<256x128xf32, #tpu.memory_space<vmem>>, vector<16x128xf32>,
    %c0_353 = arith.constant 0 : index
    %c0_354 = arith.constant 0 : index
    %267 = vector.load %arg13[%c0_353, %c0_354] : memref<256x128xf32, #tpu.memory_space<vmem>>, vector<16x128xf32>
    %c0_355 = arith.constant 0 : index
    %c0_356 = arith.constant 0 : index
    %268 = vector.load %arg7[%c0_355, %c0_356] : memref<1x128xf32, #tpu.memory_space<vmem>>, vector<1x128xf32>
    %269 = vector.broadcast %268 : vector<1x128xf32> to vector<16x128xf32>
    %270 = arith.addf %267, %269 : vector<16x128xf32>
    %cst_357 = arith.constant 0.000000e+00 : f32
    %271 = vector.broadcast %cst_357 : f32 to vector<16x128xf32>
    %272 = arith.maximumf %270, %271 : vector<16x128xf32>
    %273 = vector.shape_cast %272 : vector<16x128xf32> to vector<1x4x4x128xf32>
    %274 = arith.truncf %273 : vector<1x4x4x128xf32> to vector<1x4x4x128xbf16>
    %c0_358 = arith.constant 0 : index
    %c0_359 = arith.constant 0 : index
    %c0_360 = arith.constant 0 : index
    %c0_361 = arith.constant 0 : index
    %275 = vector.load %arg9[%c0_358, %c0_359, %c0_360, %c0_361] : memref<1x4x4x128xbf16, #tpu.memory_space<vmem>>, vector<1x4x4x128xbf16>
    tpu.vector_store %arg9[%c0_358, %c0_359, %c0_360, %c0_361], %274 {strides = array<i32>} : memref<1x4x4x128xbf16, #tpu.memory_space<vmem>>, vector<1x4x4x128xbf16>,
    return
  }
  func.func @transform_0(%arg0: i32) -> (i32, i32, i32, i32) {
    %c0_i32 = arith.constant 0 : i32
    %c0_i32_0 = arith.constant 0 : i32
    %c0_i32_1 = arith.constant 0 : i32
    %c0_i32_2 = arith.constant 0 : i32
    return %arg0, %c0_i32, %c0_i32_0, %c0_i32_1 : i32, i32, i32, i32
  }
  func.func @transform_1(%arg0: i32) -> (i32, i32, i32) {
    %c0_i32 = arith.constant 0 : i32
    %c0_i32_0 = arith.constant 0 : i32
    %c0_i32_1 = arith.constant 0 : i32
    %c0_i32_2 = arith.constant 0 : i32
    return %c0_i32, %c0_i32_0, %c0_i32_1 : i32, i32, i32
  }
  func.func @transform_2(%arg0: i32) -> (i32, i32, i32) {
    %c0_i32 = arith.constant 0 : i32
    %c0_i32_0 = arith.constant 0 : i32
    %c0_i32_1 = arith.constant 0 : i32
    %c0_i32_2 = arith.constant 0 : i32
    return %c0_i32, %c0_i32_0, %c0_i32_1 : i32, i32, i32
  }
  func.func @transform_3(%arg0: i32) -> (i32, i32, i32) {
    %c0_i32 = arith.constant 0 : i32
    %c0_i32_0 = arith.constant 0 : i32
    %c0_i32_1 = arith.constant 0 : i32
    %c0_i32_2 = arith.constant 0 : i32
    return %c0_i32, %c0_i32_0, %c0_i32_1 : i32, i32, i32
  }
  func.func @transform_4(%arg0: i32) -> (i32, i32) {
    %c0_i32 = arith.constant 0 : i32
    %c0_i32_0 = arith.constant 0 : i32
    %c0_i32_1 = arith.constant 0 : i32
    return %c0_i32, %c0_i32_0 : i32, i32
  }
  func.func @transform_5(%arg0: i32) -> (i32, i32) {
    %c0_i32 = arith.constant 0 : i32
    %c0_i32_0 = arith.constant 0 : i32
    %c0_i32_1 = arith.constant 0 : i32
    return %c0_i32, %c0_i32_0 : i32, i32
  }
  func.func @transform_6(%arg0: i32) -> (i32, i32) {
    %c0_i32 = arith.constant 0 : i32
    %c0_i32_0 = arith.constant 0 : i32
    %c0_i32_1 = arith.constant 0 : i32
    return %c0_i32, %c0_i32_0 : i32, i32
  }
  func.func @transform_7(%arg0: i32) -> (i32, i32, i32, i32) {
    %c0_i32 = arith.constant 0 : i32
    %c0_i32_0 = arith.constant 0 : i32
    %c0_i32_1 = arith.constant 0 : i32
    %c0_i32_2 = arith.constant 0 : i32
    return %arg0, %c0_i32, %c0_i32_0, %c0_i32_1 : i32, i32, i32, i32
  }
  func.func @transform_8(%arg0: i32) -> (i32, i32, i32, i32) {
    %c0_i32 = arith.constant 0 : i32
    %c0_i32_0 = arith.constant 0 : i32
    %c0_i32_1 = arith.constant 0 : i32
    %c0_i32_2 = arith.constant 0 : i32
    return %arg0, %c0_i32, %c0_i32_0, %c0_i32_1 : i32, i32, i32, i32
  }
}

</mosaic_0001>

<bundles_post_ra>
// kernel: _fused_forward.1
= control target key start
LH: loop header
LB: loop body
LE: loop exit
PB: predicated region body
PF: predicated region fallthrough
CT: control target
= control target key end

     0   :  { %14 = vsyncpa [#allocation7], 0  ;;  %s10220_s0 = inlined_call_operand.vmem [shape: bf16[2,16,16,128], index: 0, kind: input, shape index: {}]   ;;  %s10221_s1 = inlined_call_operand.vmem [shape: bf16[9,128,128], index: 1, kind: input, shape index: {}]   ;;  %s10222_s2 = inlined_call_operand.hbm [shape: bf16[9,128,128], index: 2, kind: input, shape index: {}]   ;;  %s10223_s3 = inlined_call_operand.hbm [shape: bf16[9,128,128], index: 3, kind: input, shape index: {}]   ;;  %s10224_s4 = inlined_call_operand.vmem [shape: f32[1,128], index: 4, kind: input, shape index: {}]   ;;  %s10225_s5 = inlined_call_operand.vmem [shape: f32[1,128], index: 5, kind: input, shape index: {}]   ;;  %s10226_s6 = inlined_call_operand.vmem [shape: f32[1,128], index: 6, kind: input, shape index: {}]   ;;  %s10227_s7 = inlined_call_operand.vmem [shape: bf16[2,8,8,128], index: 7, kind: output, shape index: {0}]   ;;  %s10228_s8 = inlined_call_operand.vmem [shape: bf16[2,4,4,128], index: 8, kind: output, shape index: {1}]  }
   0x1   :  { %15 = vsyncpa [#allocation9], 0  ;;  %s9408_s27 = smov 0  }
   0x2 LB: > { %s9414_s28 = sadd.s32 4294967295, %s9354_s27   ;;  %p6997_p0 = scmp.ge.s32.totalorder %s9354_s27, 1  ;;  %s9354_s27 = sphi %s9408_s27, %s21_s27  }
   0x3   : > { %p230_p1 = scmp.lt.s32.totalorder %s9354_s27, 3  ;;  %s9356_s29 = smov [#allocation6]  }
   0x4   : > { %s245_s30 = sshll.u32 %s9356_s29, 4  ;;  %p10229_p3 = scmp.eq.s32.totalorder %s9414_s28, 0  ;;  %s246_s30 = int_to_ptr.vmem [resolvable:$true] %s245_s30 }
   0x5   : > { %p9418_p2 = pnand %p6997_p0, %p230_p1  ;;  %s9357_s10 = smov [#allocation8]  }
   0x6   : > { %s258_s11 = sshll.u32 %s9357_s10, 4  ;;  %s9284_s15 = scalar_lea.hbm %s10222_s2, 9216  ;;  %s9431_s11 = int_to_ptr.vmem [resolvable:$true] %s258_s11 }
   0x7   : > { %s10231_s9 = scalar_select %p9418_p2, 1, 0 }
   0x8   : > { %p9025_p4 = pneg %p9418_p2  ;;  %p9285_p6 = scmp.ne.s32.totalorder %s10222_s2, %s9284_s15 }
   0x9   : > { %p9291_p10 = scmp.lt.u32.totalorder %s9284_s15, %s10222_s2 }
   0xa   : > { %p9427_p5 = pnand %p10229_p3, %p9025_p4 }
   0xc   : > { %p9286_p7 = pneg %p9427_p5 }
   0xe   : > { %p9287_p8 = pnand %p9286_p7, %p9285_p6 }
  0x10   : > { %p9288_p9 = pneg %p9287_p8 }
  0x12   : > { %p9293_p11 = pnand %p9291_p10, %p9288_p9 }
  0x14   : > { %9296 = shalt.err (!%p9293_p11)
}
  0x15   : > { %s9297_s20 = scalar_lea.vmem %s246_s30, 9216  ;;  %p9305_p1 = scmp.lt.s32.totalorder %s246_s30, %s246_s30 }
  0x16   : > { %p9298_p12 = scmp.ne.s32.totalorder %s246_s30, %s9297_s20  ;;  %p9306_p4 = scmp.lt.s32.totalorder %s9297_s20, %s9297_s20 }
  0x18   : > { %p9300_p13 = pnand %p9298_p12, %p9286_p7  ;;  %p9307_p3 = por %p9306_p4, %p9305_p1 }
  0x1a   : > { %p9301_p0 = pneg %p9300_p13 }
  0x1c   : > { %p9308_p2 = pnand %p9307_p3, %p9301_p0 }
  0x1e   : > { %9311 = shalt.err (!%p9308_p2)
}
  0x1f   : > { %s9358_s21 = smov 64   ;;  %s9359_s22 = smov 4  }
  0x20   : > { %9028 = dma.hbm_to_vmem [thread:$0]  (!%p9427_p5), %s10222_s2, 9216, %s246_s30, [#allocation7], %s9358_s21, %s9358_s21, %s9359_s22  }
  0x21   : > { %s9312_s29 = scalar_lea.hbm %s10223_s3, 9216 }
  0x22   : > { %p9313_p6 = scmp.ne.s32.totalorder %s10223_s3, %s9312_s29  ;;  %p9319_p8 = scmp.lt.u32.totalorder %s9312_s29, %s10223_s3 }
  0x24   : > { %p9315_p2 = pnand %p9313_p6, %p9286_p7 }
  0x26   : > { %p9316_p3 = pneg %p9315_p2 }
  0x28   : > { %p9321_p9 = pnand %p9319_p8, %p9316_p3 }
  0x2a   : > { %9324 = shalt.err (!%p9321_p9)
}
  0x2b   : > { %s9325_s30 = scalar_lea.vmem %s9431_s11, 9216  ;;  %p9333_p13 = scmp.lt.s32.totalorder %s9431_s11, %s9431_s11 }
  0x2c   : > { %p9326_p10 = scmp.ne.s32.totalorder %s9431_s11, %s9325_s30  ;;  %p9334_p0 = scmp.lt.s32.totalorder %s9325_s30, %s9325_s30 }
  0x2e   : > { %p9328_p11 = pnand %p9326_p10, %p9286_p7  ;;  %p9335_p1 = por %p9334_p0, %p9333_p13 }
  0x30   : > { %p9329_p12 = pneg %p9328_p11 }
  0x32   : > { %p9336_p4 = pnand %p9335_p1, %p9329_p12 }
  0x34   : > { %9339 = shalt.err (!%p9336_p4)
}
  0x35   : > { %9031 = dma.hbm_to_vmem [thread:$0]  (!%p9427_p5), %s10223_s3, 9216, %s9431_s11, [#allocation9], %s9358_s21, %s9358_s21, %s9359_s22  }
  0x36   : > { %p10233_p6 = scmp.ne.s32.totalorder %s10231_s9, 0 }
  0x37   : > { %p10234_p2 = scmp.eq.s32.totalorder (!%p10233_p6), %s9414_s28, 0 }
  0x38   : > { %291 = sbr.rel (%p10233_p6) target bundleno = 1889 (0x761), region = 48 }
  0x3f   : > { %9345 = dma.done.wait (%p10234_p2), [#allocation7], 9216   ;;  %p10235_p7 = pmov %p10234_p2 }
  0x40   : > { %p10236_p3 = pmov %p10234_p2 }
  0x41   : > { %9347 = vsyncadd (%p10235_p7), [#allocation7], 4294958080 }
  0x42   : > { %9349 = dma.done.wait (%p10236_p3), [#allocation9], 9216   ;;  %p10237_p8 = pmov %p10234_p2 }
  0x43   : > { %v9360_v0 = vmov 0.0   ;;  %p334_p5 = scmp.lt.s32.totalorder %s9414_s28, 1  ;;  %v9361_v1 = vmov 0.0|0.0   ;;  %v9050_v2 = vld [vmem:[%s10221_s1] sm:$0xff]   ;;  %v9051_v3 = vld [vmem:[%s10221_s1 + $0x8] sm:$0xff]   ;;  %v9052_v4 = vld [vmem:[%s10221_s1 + $0x10] sm:$0xff]  }
  0x44   : > { %9351 = vsyncadd (%p10237_p8), [#allocation9], 4294958080  ;;  %3937 = vst [vmem:[#allocation3 + $0x198] sm:$0xff] %v9360_v0  ;;  %7885 = vmatprep.mubr.bf16.mxu0 %v9361_v1  ;;  %7869 = vmatprep.subr.bf16.mxu0 %v9050_v2  ;;  %v9053_v5 = vld [vmem:[%s10221_s1 + $0x18] sm:$0xff]   ;;  %v9054_v17 = vld [vmem:[%s10221_s1 + $0x20] sm:$0xff]   ;;  %vm9362_vm0 = vmmov 0  }
  0x45   : > { %350 = vst [vmem:[#allocation2] sm:$0xff] %v9360_v0  ;;  %351 = vst [vmem:[#allocation2 + $0x8] sm:$0xff] %v9360_v0  ;;  %s10239_s28 = smov (!%p334_p5, %s9414_s28), 1  ;;  %7870 = vmatpush3.bf16.msra.mxu0 %v9050_v2  ;;  %v9055_v30 = vld [vmem:[%s10221_s1 + $0x28] sm:$0xff]   ;;  %v9056_v47 = vld [vmem:[%s10221_s1 + $0x30] sm:$0xff]  }
  0x46   : > { %352 = vst [vmem:[#allocation2 + $0x10] sm:$0x3] %v9360_v0  ;;  %353 = vst [vmem:[#allocation2 + $0x18] sm:$0xff] %v9360_v0  ;;  %s7359_s19 = sshll.u32 %s10239_s28, 7  ;;  %7871 = vmatprep.subr.bf16.mxu0 %v9051_v3  ;;  %v9057_v48 = vld [vmem:[%s10221_s1 + $0x38] sm:$0xff]   ;;  %v9058_v56 = vld [vmem:[%s10221_s1 + $0x40] sm:$0xff]  }
  0x47   : > { %354 = vst [vmem:[#allocation2 + $0x20] sm:$0xff] %v9360_v0  ;;  %355 = vst [vmem:[#allocation2 + $0x28] sm:$0x3] %v9360_v0  ;;  %s9631_s24 = scalar_lea.vmem %s10220_s0, %s7359_s19  ;;  %v9059_v62 = vld [vmem:[%s10221_s1 + $0x48] sm:$0xff]   ;;  %s7360_s15 = sshll.u32 %s10239_s28, 5 }
  0x48   : > { %356 = vst [vmem:[#allocation2 + $0x30] sm:$0xff] %v9360_v0  ;;  %357 = vst [vmem:[#allocation2 + $0x38] sm:$0xff] %v9360_v0  ;;  %v7363_v6 = vld [vmem:[%s9631_s24] sm:$0xff]   ;;  %v7446_v9 = vld [vmem:[%s9631_s24 + $0x8] sm:$0xff]   ;;  %s10125_s17 = scalar_lea.vmem %s10227_s7, %s7360_s15  ;;  %s7361_s12 = sshll.u32 %s10239_s28, 3 }
  0x49   : > { %358 = vst [vmem:[#allocation2 + $0x40] sm:$0x3] %v9360_v0  ;;  %359 = vst [vmem:[#allocation2 + $0x48] sm:$0xff] %v9360_v0  ;;  %7872 = vmatpush3.bf16.msra.mxu0 %v9051_v3  ;;  %v7364_v7 = vunpack.c.l.bf16 %v7363_v6  ;;  %v7365_v8 = vunpack.c.h.bf16 %v7363_v6  ;;  %v7447_v10 = vld [vmem:[%s9631_s24 + $0x10] sm:$0xff]   ;;  %v7368_v11 = vunpack.c.l.bf16 %v7446_v9  ;;  %v7369_v12 = vunpack.c.h.bf16 %v7446_v9  ;;  %v7448_v15 = vld [vmem:[%s9631_s24 + $0x18] sm:$0xff]   ;;  %s348_s20 = scalar_lea.vmem %s10228_s8, %s7361_s12 }
  0x4a   : > { %360 = vst [vmem:[#allocation2 + $0x50] sm:$0xff] %v9360_v0  ;;  %361 = vst [vmem:[#allocation2 + $0x58] sm:$0x3] %v9360_v0  ;;  %7873 = vmatprep.subr.bf16.mxu0 %v9052_v4  ;;  %v7372_v13 = vunpack.c.l.bf16 %v7447_v10  ;;  %v7373_v14 = vunpack.c.h.bf16 %v7447_v10  ;;  %v7449_v16 = vld [vmem:[%s9631_s24 + $0x20] sm:$0xff]   ;;  %v7376_v18 = vunpack.c.l.bf16 %v7448_v15  ;;  %v7377_v19 = vunpack.c.h.bf16 %v7448_v15  ;;  %v7450_v22 = vld [vmem:[%s9631_s24 + $0x28] sm:$0xff]  }
  0x4b   : > { %362 = vst [vmem:[#allocation2 + $0x60] sm:$0xff] %v9360_v0  ;;  %363 = vst [vmem:[#allocation2 + $0x68] sm:$0xff] %v9360_v0  ;;  %v7380_v20 = vunpack.c.l.bf16 %v7449_v16  ;;  %v7381_v21 = vunpack.c.h.bf16 %v7449_v16  ;;  %v7384_v23 = vunpack.c.l.bf16 %v7450_v22  ;;  %v7385_v24 = vunpack.c.h.bf16 %v7450_v22  ;;  %v7451_v25 = vld [vmem:[%s9631_s24 + $0x30] sm:$0xff]   ;;  %v7452_v28 = vld [vmem:[%s9631_s24 + $0x38] sm:$0xff]  }
  0x4c   : > { %364 = vst [vmem:[#allocation2 + $0x70] sm:$0x3] %v9360_v0  ;;  %365 = vst [vmem:[#allocation2 + $0x78] sm:$0xff] %v9360_v0  ;;  %v7388_v26 = vunpack.c.l.bf16 %v7451_v25  ;;  %v7389_v27 = vunpack.c.h.bf16 %v7451_v25  ;;  %v7453_v29 = vld [vmem:[%s9631_s24 + $0x40] sm:$0xff]   ;;  %v7392_v31 = vunpack.c.l.bf16 %v7452_v28  ;;  %v7393_v32 = vunpack.c.h.bf16 %v7452_v28  ;;  %v7454_v35 = vld [vmem:[%s9631_s24 + $0x48] sm:$0xff]  }
  0x4d   : > { %366 = vst [vmem:[#allocation2 + $0x80] sm:$0xff] %v9360_v0  ;;  %367 = vst [vmem:[#allocation2 + $0x88] sm:$0x3] %v9360_v0  ;;  %7874 = vmatpush3.bf16.msra.mxu0 %v9052_v4  ;;  %v7396_v33 = vunpack.c.l.bf16 %v7453_v29  ;;  %v7397_v34 = vunpack.c.h.bf16 %v7453_v29  ;;  %v7455_v36 = vld [vmem:[%s9631_s24 + $0x50] sm:$0xff]   ;;  %v7400_v37 = vunpack.c.l.bf16 %v7454_v35  ;;  %v7401_v38 = vunpack.c.h.bf16 %v7454_v35  ;;  %v7456_v41 = vld [vmem:[%s9631_s24 + $0x58] sm:$0xff]  }
  0x4e   : > { %368 = vst [vmem:[#allocation2 + $0x90] sm:$0xff] %v9360_v0  ;;  %369 = vst [vmem:[#allocation2 + $0x98] sm:$0xff] %v9360_v0  ;;  %7875 = vmatprep.subr.bf16.mxu0 %v9053_v5  ;;  %v7404_v39 = vunpack.c.l.bf16 %v7455_v36  ;;  %v7405_v40 = vunpack.c.h.bf16 %v7455_v36  ;;  %v7408_v42 = vunpack.c.l.bf16 %v7456_v41  ;;  %v7409_v43 = vunpack.c.h.bf16 %v7456_v41  ;;  %v7457_v44 = vld [vmem:[%s9631_s24 + $0x60] sm:$0xff]   ;;  %v7458_v49 = vld [vmem:[%s9631_s24 + $0x68] sm:$0xff]  }
  0x4f   : > { %370 = vst [vmem:[#allocation2 + $0xa0] sm:$0x3] %v9360_v0  ;;  %371 = vst [vmem:[#allocation2 + $0xa8] sm:$0xff] %v9360_v0  ;;  %v7412_v45 = vunpack.c.l.bf16 %v7457_v44  ;;  %v7413_v46 = vunpack.c.h.bf16 %v7457_v44  ;;  %v7459_v50 = vld [vmem:[%s9631_s24 + $0x70] sm:$0xff]   ;;  %v7416_v51 = vunpack.c.l.bf16 %v7458_v49  ;;  %v7417_v52 = vunpack.c.h.bf16 %v7458_v49  ;;  %v9061_v6 = vld [vmem:[%s10221_s1 + $0x58] sm:$0xff]  }
  0x50   : > { %372 = vst [vmem:[#allocation2 + $0xb0] sm:$0xff] %v9360_v0  ;;  %373 = vst [vmem:[#allocation2 + $0xb8] sm:$0x3] %v9360_v0  ;;  %v7420_v53 = vunpack.c.l.bf16 %v7459_v50  ;;  %v7421_v57 = vunpack.c.h.bf16 %v7459_v50  ;;  %v9060_v3 = vld [vmem:[%s10221_s1 + $0x50] sm:$0xff]   ;;  %v9739_v49 = vld [vmem:[%s9631_s24 + $0x8] sm:$0xff] }
  0x51   : > { %374 = vst [vmem:[#allocation2 + $0xc0] sm:$0xff] %v9360_v0  ;;  %375 = vst [vmem:[#allocation2 + $0xc8] sm:$0xff] %v9360_v0  ;;  %7876 = vmatpush3.bf16.msra.mxu0 %v9053_v5  ;;  %v9070_v50 = vld [vmem:[%s10221_s1 + $0x88] sm:$0xff]  }
  0x52   : > { %376 = vst [vmem:[#allocation2 + $0xd0] sm:$0x3] %v9360_v0  ;;  %377 = vst [vmem:[#allocation2 + $0xd8] sm:$0xff] %v9360_v0  ;;  %7877 = vmatprep.subr.bf16.mxu0 %v9054_v17 }
  0x53   : > { %378 = vst [vmem:[#allocation2 + $0xe0] sm:$0xff] %v9360_v0  ;;  %379 = vst [vmem:[#allocation2 + $0xe8] sm:$0x3] %v9360_v0 }
  0x54   : > { %380 = vst [vmem:[#allocation2 + $0xf0] sm:$0xff] %v9360_v0  ;;  %381 = vst [vmem:[#allocation2 + $0xf8] sm:$0xff] %v9360_v0 }
  0x55   : > { %382 = vst [vmem:[#allocation2 + $0x100] sm:$0x3] %v9360_v0  ;;  %383 = vst [vmem:[#allocation2 + $0x108] sm:$0xff] %v9360_v0  ;;  %7878 = vmatpush3.bf16.msra.mxu0 %v9054_v17 }
  0x56   : > { %384 = vst [vmem:[#allocation2 + $0x110] sm:$0xff] %v9360_v0  ;;  %385 = vst [vmem:[#allocation2 + $0x118] sm:$0x3] %v9360_v0  ;;  %7879 = vmatprep.subr.bf16.mxu0 %v9055_v30 }
  0x57   : > { %386 = vst [vmem:[#allocation2 + $0x120] sm:$0xff] %v9360_v0  ;;  %387 = vst [vmem:[#allocation2 + $0x128] sm:$0xff] %v9360_v0 }
  0x58   : > { %388 = vst [vmem:[#allocation2 + $0x130] sm:$0x3] %v9360_v0  ;;  %389 = vst [vmem:[#allocation2 + $0x138] sm:$0xff] %v9360_v0 }
  0x59   : > { %390 = vst [vmem:[#allocation2 + $0x140] sm:$0xff] %v9360_v0  ;;  %391 = vst [vmem:[#allocation2 + $0x148] sm:$0x3] %v9360_v0  ;;  %7880 = vmatpush3.bf16.msra.mxu0 %v9055_v30 }
  0x5a   : > { %392 = vst [vmem:[#allocation2 + $0x150] sm:$0xff] %v9360_v0  ;;  %393 = vst [vmem:[#allocation2 + $0x158] sm:$0xff] %v9360_v0  ;;  %7881 = vmatprep.subr.bf16.mxu0 %v9056_v47 }
  0x5b   : > { %394 = vst [vmem:[#allocation2 + $0x160] sm:$0x3] %v9360_v0  ;;  %395 = vst [vmem:[#allocation2 + $0x168] sm:$0xff] %v9360_v0 }
  0x5c   : > { %396 = vst [vmem:[#allocation2 + $0x170] sm:$0xff] %v9360_v0  ;;  %397 = vst [vmem:[#allocation2 + $0x178] sm:$0x3] %v9360_v0 }
  0x5d   : > { %398 = vst [vmem:[#allocation2 + $0x180] sm:$0xff] %v9360_v0  ;;  %399 = vst [vmem:[#allocation2 + $0x188] sm:$0xff] %v9360_v0  ;;  %7882 = vmatpush3.bf16.msra.mxu0 %v9056_v47 }
  0x5e   : > { %400 = vst [vmem:[#allocation2 + $0x190] sm:$0x3] %v9360_v0  ;;  %401 = vst [vmem:[#allocation2 + $0x198] sm:$0xff] %v9360_v0  ;;  %7883 = vmatprep.subr.bf16.mxu0 %v9057_v48 }
  0x5f   : > { %402 = vst [vmem:[#allocation2 + $0x1a0] sm:$0xff] %v9360_v0  ;;  %403 = vst [vmem:[#allocation2 + $0x1a8] sm:$0x3] %v9360_v0 }
  0x60   : > { %3886 = vst [vmem:[#allocation3] sm:$0xff] %v9360_v0  ;;  %3887 = vst [vmem:[#allocation3 + $0x8] sm:$0xff] %v9360_v0 }
  0x61   : > { %3888 = vst [vmem:[#allocation3 + $0x10] sm:$0x3] %v9360_v0  ;;  %3889 = vst [vmem:[#allocation3 + $0x18] sm:$0xff] %v9360_v0  ;;  %7884 = vmatpush3.bf16.msra.mxu0 %v9057_v48  ;;  %v9736_v48 = vld [vmem:[%s9631_s24] sm:$0xff] }
  0x62   : > { %3890 = vst [vmem:[#allocation3 + $0x20] sm:$0xff] %v9360_v0  ;;  %3891 = vst [vmem:[#allocation3 + $0x28] sm:$0x3] %v9360_v0  ;;  %7917 = vmatprep.subr.bf16.mxu0 %v9058_v56 }
  0x63   : > { %3892 = vst [vmem:[#allocation3 + $0x30] sm:$0xff] %v9360_v0  ;;  %3893 = vst [vmem:[#allocation3 + $0x38] sm:$0xff] %v9360_v0 }
  0x64   : > { %3894 = vst [vmem:[#allocation3 + $0x40] sm:$0x3] %v9360_v0  ;;  %3895 = vst [vmem:[#allocation3 + $0x48] sm:$0xff] %v9360_v0 }
  0x65   : > { %3896 = vst [vmem:[#allocation3 + $0x50] sm:$0xff] %v9360_v0  ;;  %3897 = vst [vmem:[#allocation3 + $0x58] sm:$0x3] %v9360_v0 }
  0x66   : > { %3898 = vst [vmem:[#allocation3 + $0x60] sm:$0xff] %v9360_v0  ;;  %3899 = vst [vmem:[#allocation3 + $0x68] sm:$0xff] %v9360_v0 }
  0x67   : > { %3900 = vst [vmem:[#allocation3 + $0x70] sm:$0x3] %v9360_v0  ;;  %3901 = vst [vmem:[#allocation3 + $0x78] sm:$0xff] %v9360_v0 }
  0x68   : > { %3902 = vst [vmem:[#allocation3 + $0x80] sm:$0xff] %v9360_v0  ;;  %3903 = vst [vmem:[#allocation3 + $0x88] sm:$0x3] %v9360_v0 }
  0x69   : > { %3904 = vst [vmem:[#allocation3 + $0x90] sm:$0xff] %v9360_v0  ;;  %3905 = vst [vmem:[#allocation3 + $0x98] sm:$0xff] %v9360_v0 }
  0x6a   : > { %3906 = vst [vmem:[#allocation3 + $0xa0] sm:$0x3] %v9360_v0  ;;  %3907 = vst [vmem:[#allocation3 + $0xa8] sm:$0xff] %v9360_v0 }
  0x6b   : > { %3908 = vst [vmem:[#allocation3 + $0xb0] sm:$0xff] %v9360_v0  ;;  %3909 = vst [vmem:[#allocation3 + $0xb8] sm:$0x3] %v9360_v0 }
  0x6c   : > { %3910 = vst [vmem:[#allocation3 + $0xc0] sm:$0xff] %v9360_v0  ;;  %3911 = vst [vmem:[#allocation3 + $0xc8] sm:$0xff] %v9360_v0 }
  0x6d   : > { %3912 = vst [vmem:[#allocation3 + $0xd0] sm:$0x3] %v9360_v0  ;;  %3913 = vst [vmem:[#allocation3 + $0xd8] sm:$0xff] %v9360_v0 }
  0x6e   : > { %3914 = vst [vmem:[#allocation3 + $0xe0] sm:$0xff] %v9360_v0  ;;  %3915 = vst [vmem:[#allocation3 + $0xe8] sm:$0x3] %v9360_v0 }
  0x6f   : > { %3916 = vst [vmem:[#allocation3 + $0xf0] sm:$0xff] %v9360_v0  ;;  %3917 = vst [vmem:[#allocation3 + $0xf8] sm:$0xff] %v9360_v0 }
  0x70   : > { %3918 = vst [vmem:[#allocation3 + $0x100] sm:$0x3] %v9360_v0  ;;  %3919 = vst [vmem:[#allocation3 + $0x108] sm:$0xff] %v9360_v0 }
  0x71   : > { %3920 = vst [vmem:[#allocation3 + $0x110] sm:$0xff] %v9360_v0  ;;  %3921 = vst [vmem:[#allocation3 + $0x118] sm:$0x3] %v9360_v0 }
  0x72   : > { %3922 = vst [vmem:[#allocation3 + $0x120] sm:$0xff] %v9360_v0  ;;  %3923 = vst [vmem:[#allocation3 + $0x128] sm:$0xff] %v9360_v0 }
  0x73   : > { %3924 = vst [vmem:[#allocation3 + $0x130] sm:$0x3] %v9360_v0  ;;  %3925 = vst [vmem:[#allocation3 + $0x138] sm:$0xff] %v9360_v0 }
  0x74   : > { %3926 = vst [vmem:[#allocation3 + $0x140] sm:$0xff] %v9360_v0  ;;  %3927 = vst [vmem:[#allocation3 + $0x148] sm:$0x3] %v9360_v0 }
  0x75   : > { %3928 = vst [vmem:[#allocation3 + $0x150] sm:$0xff] %v9360_v0  ;;  %3929 = vst [vmem:[#allocation3 + $0x158] sm:$0xff] %v9360_v0 }
  0x76   : > { %3930 = vst [vmem:[#allocation3 + $0x160] sm:$0x3] %v9360_v0  ;;  %3931 = vst [vmem:[#allocation3 + $0x168] sm:$0xff] %v9360_v0 }
  0x77   : > { %3932 = vst [vmem:[#allocation3 + $0x170] sm:$0xff] %v9360_v0  ;;  %3933 = vst [vmem:[#allocation3 + $0x178] sm:$0x3] %v9360_v0 }
  0x78   : > { %3934 = vst [vmem:[#allocation3 + $0x180] sm:$0xff] %v9360_v0  ;;  %3935 = vst [vmem:[#allocation3 + $0x188] sm:$0xff] %v9360_v0 }
  0x79   : > { %3936 = vst [vmem:[#allocation3 + $0x190] sm:$0x3] %v9360_v0  ;;  %5599 = vst [vmem:[#allocation4] sm:$0xff] %v9360_v0 }
  0x7a   : > { %5600 = vst [vmem:[#allocation4 + $0x8] sm:$0x3] %v9360_v0  ;;  %5601 = vst [vmem:[#allocation4 + $0x10] sm:$0xff] %v9360_v0 }
  0x7b   : > { %5602 = vst [vmem:[#allocation4 + $0x18] sm:$0x3] %v9360_v0  ;;  %5603 = vst [vmem:[#allocation4 + $0x20] sm:$0xff] %v9360_v0 }
  0x7c   : > { %5604 = vst [vmem:[#allocation4 + $0x28] sm:$0x3] %v9360_v0  ;;  %5605 = vst [vmem:[#allocation4 + $0x30] sm:$0xff] %v9360_v0 }
  0x7d   : > { %5606 = vst [vmem:[#allocation4 + $0x38] sm:$0x3] %v9360_v0  ;;  %5607 = vst [vmem:[#allocation4 + $0x40] sm:$0xff] %v9360_v0 }
  0x7e   : > { %5608 = vst [vmem:[#allocation4 + $0x48] sm:$0x3] %v9360_v0  ;;  %5609 = vst [vmem:[#allocation4 + $0x50] sm:$0xff] %v9360_v0 }
  0x7f   : > { %5610 = vst [vmem:[#allocation4 + $0x58] sm:$0x3] %v9360_v0  ;;  %5611 = vst [vmem:[#allocation4 + $0x60] sm:$0xff] %v9360_v0 }
  0x80   : > { %5612 = vst [vmem:[#allocation4 + $0x68] sm:$0x3] %v9360_v0  ;;  %5613 = vst [vmem:[#allocation4 + $0x70] sm:$0xff] %v9360_v0 }
  0x81   : > { %5614 = vst [vmem:[#allocation4 + $0x78] sm:$0x3] %v9360_v0  ;;  %5615 = vst [vmem:[#allocation4 + $0x80] sm:$0xff] %v9360_v0 }
  0x82   : > { %5616 = vst [vmem:[#allocation4 + $0x88] sm:$0x3] %v9360_v0  ;;  %469 = vst [vmem:[#allocation2 + $0x19] sm:$0xff] %v7364_v7  ;;  %v9062_v7 = vld [vmem:[%s10221_s1 + $0x60] sm:$0xff]  }
  0x83   : > { %470 = vst [vmem:[#allocation2 + $0x21] sm:$0xff] %v7365_v8  ;;  %471 = vst [vmem:[#allocation2 + $0x31] sm:$0xff] %v7368_v11 }
  0x84   : > { %472 = vst [vmem:[#allocation2 + $0x39] sm:$0xff] %v7369_v12  ;;  %473 = vst [vmem:[#allocation2 + $0x49] sm:$0xff] %v7372_v13 }
  0x85   : > { %474 = vst [vmem:[#allocation2 + $0x51] sm:$0xff] %v7373_v14  ;;  %475 = vst [vmem:[#allocation2 + $0x61] sm:$0xff] %v7376_v18  ;;  %v9063_v14 = vld [vmem:[%s10221_s1 + $0x68] sm:$0xff]  }
  0x86   : > { %476 = vst [vmem:[#allocation2 + $0x69] sm:$0xff] %v7377_v19  ;;  %477 = vst [vmem:[#allocation2 + $0x79] sm:$0xff] %v7380_v20  ;;  %v9064_v19 = vld [vmem:[%s10221_s1 + $0x70] sm:$0xff]  }
  0x87   : > { %478 = vst [vmem:[#allocation2 + $0x81] sm:$0xff] %v7381_v21  ;;  %479 = vst [vmem:[#allocation2 + $0x91] sm:$0xff] %v7384_v23  ;;  %v9065_v21 = vld [vmem:[%s10221_s1 + $0x78] sm:$0xff]  }
  0x88   : > { %480 = vst [vmem:[#allocation2 + $0x99] sm:$0xff] %v7385_v24  ;;  %481 = vst [vmem:[#allocation2 + $0xa9] sm:$0xff] %v7388_v26 }
  0x89   : > { %482 = vst [vmem:[#allocation2 + $0xb1] sm:$0xff] %v7389_v27  ;;  %483 = vst [vmem:[#allocation2 + $0xc1] sm:$0xff] %v7392_v31  ;;  %v503_v54 = vld [vmem:[#allocation2 + $0x18] sm:$0xff]  ;;  %v9067_v27 = vld [vmem:[%s10221_s1 + $0x80] sm:$0xff]  }
  0x8a   : > { %484 = vst [vmem:[#allocation2 + $0xc9] sm:$0xff] %v7393_v32  ;;  %485 = vst [vmem:[#allocation2 + $0xd9] sm:$0xff] %v7396_v33  ;;  %v504_v55 = vld [vmem:[#allocation2 + $0x20] sm:$0xff]  ;;  %v505_v58 = vld [vmem:[#allocation2 + $0x30] sm:$0xff] }
  0x8b   : > { %486 = vst [vmem:[#allocation2 + $0xe1] sm:$0xff] %v7397_v34  ;;  %487 = vst [vmem:[#allocation2 + $0xf1] sm:$0xff] %v7400_v37  ;;  %v506_v59 = vld [vmem:[#allocation2 + $0x38] sm:$0xff]  ;;  %v9666_v60 = vpack.c.bf16 %v504_v55, %v503_v54  ;;  %v507_v63 = vld [vmem:[#allocation2 + $0x48] sm:$0xff] }
  0x8c   : > { %488 = vst [vmem:[#allocation2 + $0xf9] sm:$0xff] %v7401_v38  ;;  %489 = vst [vmem:[#allocation2 + $0x109] sm:$0xff] %v7404_v39  ;;  %v9668_v61 = vpack.c.bf16 %v506_v59, %v505_v58  ;;  %v508_v0 = vld [vmem:[#allocation2 + $0x50] sm:$0xff]  ;;  %v509_v1 = vld [vmem:[#allocation2 + $0x60] sm:$0xff] }
  0x8d   : > { %490 = vst [vmem:[#allocation2 + $0x111] sm:$0xff] %v7405_v40  ;;  %491 = vst [vmem:[#allocation2 + $0x121] sm:$0xff] %v7408_v42  ;;  %7886 = vmatmul.mubr.bf16.vlgmr.msra.gmra.mrb[0].mxu0 %v9666_v60  ;;  %v510_v2 = vld [vmem:[#allocation2 + $0x68] sm:$0xff]  ;;  %v9678_v4 = vpack.c.bf16 %v508_v0, %v507_v63  ;;  %v511_v8 = vld [vmem:[#allocation2 + $0x78] sm:$0xff] }
  0x8e   : > { %492 = vst [vmem:[#allocation2 + $0x129] sm:$0xff] %v7409_v43  ;;  %493 = vst [vmem:[#allocation2 + $0x139] sm:$0xff] %v7412_v45  ;;  %7918 = vmatpush3.bf16.msra.mxu0 %v9058_v56  ;;  %7889 = vmatprep.mubr.bf16.mxu0 %v9668_v61  ;;  %v9680_v5 = vpack.c.bf16 %v510_v2, %v509_v1  ;;  %v512_v9 = vld [vmem:[#allocation2 + $0x80] sm:$0xff]  ;;  %v513_v10 = vld [vmem:[#allocation2 + $0x90] sm:$0xff] }
  0x8f   : > { %494 = vst [vmem:[#allocation2 + $0x141] sm:$0xff] %v7413_v46  ;;  %495 = vst [vmem:[#allocation2 + $0x151] sm:$0xff] %v7416_v51  ;;  %7919 = vmatprep.subr.bf16.mxu0 %v9059_v62  ;;  %v514_v11 = vld [vmem:[#allocation2 + $0x98] sm:$0xff]  ;;  %v9690_v12 = vpack.c.bf16 %v512_v9, %v511_v8  ;;  %v515_v15 = vld [vmem:[#allocation2 + $0xa8] sm:$0xff] }
  0x90   : > { %496 = vst [vmem:[#allocation2 + $0x159] sm:$0xff] %v7417_v52  ;;  %497 = vst [vmem:[#allocation2 + $0x169] sm:$0xff] %v7420_v53  ;;  %v9692_v13 = vpack.c.bf16 %v514_v11, %v513_v10  ;;  %v516_v16 = vld [vmem:[#allocation2 + $0xb0] sm:$0xff]  ;;  %v517_v17 = vld [vmem:[#allocation2 + $0xc0] sm:$0xff] }
  0x91   : > { %498 = vst [vmem:[#allocation2 + $0x171] sm:$0xff] %v7421_v57  ;;  %v518_v18 = vld [vmem:[#allocation2 + $0xc8] sm:$0xff]  ;;  %v9702_v20 = vpack.c.bf16 %v516_v16, %v515_v15  ;;  %v519_v23 = vld [vmem:[#allocation2 + $0xd8] sm:$0xff]  ;;  %v9073_v51 = vld [vmem:[%s10221_s1 + $0x90] sm:$0xff]  }
  0x92   : > { %7920 = vmatpush3.bf16.msra.mxu0 %v9059_v62  ;;  %v9707_v22 = vpack.c.bf16 %v518_v18, %v517_v17  ;;  %v520_v24 = vld [vmem:[#allocation2 + $0xe0] sm:$0xff]  ;;  %v521_v25 = vld [vmem:[#allocation2 + $0xf0] sm:$0xff]  ;;  %v9753_v53 = vld [vmem:[%s9631_s24 + $0x18] sm:$0xff] }
  0x93   : > { %7921 = vmatprep.subr.bf16.mxu0 %v9060_v3  ;;  %v522_v26 = vld [vmem:[#allocation2 + $0xf8] sm:$0xff]  ;;  %v9714_v28 = vpack.c.bf16 %v520_v24, %v519_v23  ;;  %v523_v30 = vld [vmem:[#allocation2 + $0x108] sm:$0xff]  ;;  %v9750_v52 = vld [vmem:[%s9631_s24 + $0x10] sm:$0xff] }
  0x94   : > { %v9716_v29 = vpack.c.bf16 %v522_v26, %v521_v25  ;;  %v524_v31 = vld [vmem:[#allocation2 + $0x110] sm:$0xff]  ;;  %v525_v32 = vld [vmem:[#allocation2 + $0x120] sm:$0xff]  ;;  %v9076_v54 = vld [vmem:[%s10221_s1 + $0x98] sm:$0xff]  }
  0x95   : > { %7890 = vmatmul.mubr.bf16.gmra.mrb[4].mxu0 %v9678_v4  ;;  %v526_v33 = vld [vmem:[#allocation2 + $0x128] sm:$0xff]  ;;  %v9720_v34 = vpack.c.bf16 %v524_v31, %v523_v30  ;;  %v527_v36 = vld [vmem:[#allocation2 + $0x138] sm:$0xff]  ;;  %v9079_v55 = vld [vmem:[%s10221_s1 + $0xa0] sm:$0xff]  }
  0x96   : > { %7893 = vmatprep.mubr.bf16.mxu0 %v9680_v5  ;;  %7922 = vmatpush3.bf16.msra.mxu0 %v9060_v3  ;;  %v9722_v35 = vpack.c.bf16 %v526_v33, %v525_v32  ;;  %v528_v37 = vld [vmem:[#allocation2 + $0x140] sm:$0xff]  ;;  %v529_v38 = vld [vmem:[#allocation2 + $0x150] sm:$0xff]  ;;  %v9767_v57 = vld [vmem:[%s9631_s24 + $0x28] sm:$0xff] }
  0x97   : > { %7923 = vmatprep.subr.bf16.mxu0 %v9061_v6  ;;  %v530_v39 = vld [vmem:[#allocation2 + $0x158] sm:$0xff]  ;;  %v9726_v40 = vpack.c.bf16 %v528_v37, %v527_v36  ;;  %v806_v42 = vld [vmem:[#allocation2 + $0x1] sm:$0xff]  ;;  %v807_v43 = vld [vmem:[#allocation2 + $0x9] sm:$0xff] }
  0x98   : > { %v9728_v41 = vpack.c.bf16 %v530_v39, %v529_v38  ;;  %v531_v44 = vld [vmem:[#allocation2 + $0x168] sm:$0xff]  ;;  %v532_v45 = vld [vmem:[#allocation2 + $0x170] sm:$0xff]  ;;  %v838_v47 = vpack.c.bf16 %v807_v43, %v806_v42  ;;  %v9764_v56 = vld [vmem:[%s9631_s24 + $0x20] sm:$0xff] }
  0x99   : > { %v9732_v46 = vpack.c.bf16 %v532_v45, %v531_v44  ;;  %v9082_v58 = vld [vmem:[%s10221_s1 + $0xa8] sm:$0xff]   ;;  %v9085_v59 = vld [vmem:[%s10221_s1 + $0xb0] sm:$0xff]   ;;  %v9781_v63 = vld [vmem:[%s9631_s24 + $0x38] sm:$0xff] }
  0x9a   : > { %7924 = vmatpush3.bf16.msra.mxu0 %v9061_v6  ;;  %v9778_v62 = vld [vmem:[%s9631_s24 + $0x30] sm:$0xff]  ;;  %v9088_v0 = vld [vmem:[%s10221_s1 + $0xb8] sm:$0xff]   ;;  %v9089_v1 = vld [vmem:[%s10221_s1 + $0xc0] sm:$0xff]  }
  0x9b   : > { %7925 = vmatprep.subr.bf16.mxu0 %v9062_v7  ;;  %v9792_v2 = vld [vmem:[%s9631_s24 + $0x40] sm:$0xff]  ;;  %v9795_v3 = vld [vmem:[%s9631_s24 + $0x48] sm:$0xff]  ;;  %v9800_v6 = vld [vmem:[%s9631_s24 + $0x50] sm:$0xff] }
  0x9c   : > { %v9808_v8 = vld [vmem:[%s9631_s24 + $0x60] sm:$0xff]  ;;  %v9811_v9 = vld [vmem:[%s9631_s24 + $0x68] sm:$0xff]  ;;  %v7460_v10 = vld [vmem:[%s9631_s24 + $0x78] sm:$0xff]  }
  0x9d   : > { %7894 = vmatmul.mubr.bf16.gmra.mrb[8].mxu0 %v9690_v12  ;;  %v7424_v11 = vunpack.c.l.bf16 %v7460_v10  ;;  %v1176_v15 = vld [vmem:[#allocation2 + $0x2] sm:$0xff]  ;;  %v1177_v16 = vld [vmem:[#allocation2 + $0xa] sm:$0xff]  ;;  %v1180_v23 = vld [vmem:[#allocation2 + $0x32] sm:$0xff] }
  0x9e   : > { %7897 = vmatprep.mubr.bf16.mxu0 %v9692_v13  ;;  %7926 = vmatpush3.bf16.msra.mxu0 %v9062_v7  ;;  %v9803_v7 = vld [vmem:[%s9631_s24 + $0x58] sm:$0xff]  ;;  %v9817_v17 = vld [vmem:[%s9631_s24 + $0x70] sm:$0xff]  ;;  %v1208_v18 = vpack.c.bf16 %v1177_v16, %v1176_v15  ;;  %v9090_v26 = vld [vmem:[%s10221_s1 + $0xc8] sm:$0xff]  }
  0x9f   : > { %7927 = vmatprep.subr.bf16.mxu0 %v9063_v14  ;;  %499 = vst [vmem:[#allocation2 + $0x181] sm:$0xff] %v7424_v11  ;;  %v1181_v24 = vld [vmem:[#allocation2 + $0x3a] sm:$0xff]  ;;  %v1182_v30 = vld [vmem:[#allocation2 + $0x4a] sm:$0xff]  ;;  %v1183_v31 = vld [vmem:[#allocation2 + $0x52] sm:$0xff] }
  0xa0   : > { %v1184_v32 = vld [vmem:[#allocation2 + $0x62] sm:$0xff]  ;;  %v1185_v33 = vld [vmem:[#allocation2 + $0x6a] sm:$0xff]  ;;  %v9832_v37 = vpack.c.bf16 %v1183_v31, %v1182_v30  ;;  %v9092_v38 = vld [vmem:[%s10221_s1 + $0xd8] sm:$0xff]  }
  0xa1   : > { %v9091_v36 = vld [vmem:[%s10221_s1 + $0xd0] sm:$0xff]   ;;  %v9837_v39 = vpack.c.bf16 %v1185_v33, %v1184_v32  ;;  %v1186_v42 = vld [vmem:[#allocation2 + $0x7a] sm:$0xff]  ;;  %v1187_v43 = vld [vmem:[#allocation2 + $0x82] sm:$0xff] }
  0xa2   : > { %7928 = vmatpush3.bf16.msra.mxu0 %v9063_v14  ;;  %v7425_v14 = vunpack.c.h.bf16 %v7460_v10  ;;  %v1188_v44 = vld [vmem:[#allocation2 + $0x92] sm:$0xff]  ;;  %v1189_v45 = vld [vmem:[#allocation2 + $0x9a] sm:$0xff]  ;;  %v1195_v16 = vld [vmem:[#allocation2 + $0xe2] sm:$0xff] }
  0xa3   : > { %7929 = vmatprep.subr.bf16.mxu0 %v9064_v19  ;;  %v9096_v11 = vld [vmem:[%s10221_s1 + $0xf8] sm:$0xff]   ;;  %v1200_v31 = vld [vmem:[#allocation2 + $0x122] sm:$0xff]  ;;  %v1201_v32 = vld [vmem:[#allocation2 + $0x12a] sm:$0xff] }
  0xa4   : > { %500 = vst [vmem:[#allocation2 + $0x189] sm:$0xff] %v7425_v14  ;;  %v1194_v15 = vld [vmem:[#allocation2 + $0xda] sm:$0xff]  ;;  %v1199_v30 = vld [vmem:[#allocation2 + $0x112] sm:$0xff] }
  0xa5   : > { %7898 = vmatmul.mubr.bf16.gmra.mrb[12].mxu0 %v9702_v20 }
  0xa6   : > { %7901 = vmatprep.mubr.bf16.mxu0 %v9707_v22  ;;  %7930 = vmatpush3.bf16.msra.mxu0 %v9064_v19  ;;  %v1178_v19 = vld [vmem:[#allocation2 + $0x1a] sm:$0xff] }
  0xa7   : > { %7931 = vmatprep.subr.bf16.mxu0 %v9065_v21 }
  0xaa   : > { %7932 = vmatpush3.bf16.msra.mxu0 %v9065_v21  ;;  %v1179_v21 = vld [vmem:[#allocation2 + $0x22] sm:$0xff] }
  0xab   : > { %7965 = vmatprep.subr.bf16.mxu0 %v9067_v27  ;;  %v9820_v25 = vpack.c.bf16 %v1179_v21, %v1178_v19  ;;  %v1197_v19 = vld [vmem:[#allocation2 + $0xfa] sm:$0xff] }
  0xac   : > { %v9097_v21 = vld [vmem:[%s10221_s1 + $0x100] sm:$0xff]  }
  0xad   : > { %7902 = vmatmul.mubr.bf16.gmra.mrb[16].mxu0 %v9714_v28 }
  0xae   : > { %7905 = vmatprep.mubr.bf16.mxu0 %v9716_v29 }
  0xb5   : > { %7906 = vmatmul.mubr.bf16.gmra.mrb[20].mxu0 %v9720_v34 }
  0xb6   : > { %7909 = vmatprep.mubr.bf16.mxu0 %v9722_v35 }
  0xbd   : > { %7910 = vmatmul.mubr.bf16.gmra.mrb[24].mxu0 %v9726_v40 }
  0xbe   : > { %7913 = vmatprep.mubr.bf16.mxu0 %v9728_v41 }
  0xc5   : > { %7914 = vmatmul.mubr.bf16.gmra.mrb[28].mxu0 %v9732_v46 }
  0xc6   : > { %7933 = vmatprep.mubr.bf16.mxu0 %v838_v47  ;;  %v9093_v47 = vld [vmem:[%s10221_s1 + $0xe0] sm:$0xff]  }
  0xcd   : > { %7934 = vmatmul.mubr.bf16.vlgmr.msra.gmra.mrb[0].mxu0 %v9736_v48 }
  0xce   : > { %7966 = vmatpush3.bf16.msra.mxu0 %v9067_v27  ;;  %7937 = vmatprep.mubr.bf16.mxu0 %v9739_v49  ;;  %v9825_v27 = vpack.c.bf16 %v1181_v24, %v1180_v23  ;;  %v9868_v23 = vpack.c.bf16 %v1195_v16, %v1194_v15  ;;  %v2664_v15 = vld [vmem:[#allocation2 + $0x80] sm:$0xff]  ;;  %v2665_v16 = vld [vmem:[#allocation2 + $0x90] sm:$0xff] }
  0xcf   : > { %7967 = vmatprep.subr.bf16.mxu0 %v9070_v50 }
  0xd2   : > { %7968 = vmatpush3.bf16.msra.mxu0 %v9070_v50  ;;  %v9844_v50 = vpack.c.bf16 %v1187_v43, %v1186_v42  ;;  %v1203_v42 = vld [vmem:[#allocation2 + $0x142] sm:$0xff]  ;;  %v1204_v43 = vld [vmem:[#allocation2 + $0x152] sm:$0xff] }
  0xd3   : > { %7969 = vmatprep.subr.bf16.mxu0 %v9073_v51 }
  0xd5   : > { %7938 = vmatmul.mubr.bf16.gmra.mrb[4].mxu0 %v9750_v52 }
  0xd6   : > { %7941 = vmatprep.mubr.bf16.mxu0 %v9753_v53  ;;  %7970 = vmatpush3.bf16.msra.mxu0 %v9073_v51  ;;  %v9094_v51 = vld [vmem:[%s10221_s1 + $0xe8] sm:$0xff]  }
  0xd7   : > { %7971 = vmatprep.subr.bf16.mxu0 %v9076_v54 }
  0xda   : > { %7972 = vmatpush3.bf16.msra.mxu0 %v9076_v54  ;;  %v9849_v54 = vpack.c.bf16 %v1189_v45, %v1188_v44  ;;  %v1205_v44 = vld [vmem:[#allocation2 + $0x15a] sm:$0xff] }
  0xdb   : > { %7973 = vmatprep.subr.bf16.mxu0 %v9079_v55 }
  0xdd   : > { %7942 = vmatmul.mubr.bf16.gmra.mrb[8].mxu0 %v9764_v56 }
  0xde   : > { %7945 = vmatprep.mubr.bf16.mxu0 %v9767_v57  ;;  %7974 = vmatpush3.bf16.msra.mxu0 %v9079_v55  ;;  %v1190_v55 = vld [vmem:[#allocation2 + $0xaa] sm:$0xff] }
  0xdf   : > { %7975 = vmatprep.subr.bf16.mxu0 %v9082_v58 }
  0xe2   : > { %7976 = vmatpush3.bf16.msra.mxu0 %v9082_v58  ;;  %v1191_v58 = vld [vmem:[#allocation2 + $0xb2] sm:$0xff] }
  0xe3   : > { %7977 = vmatprep.subr.bf16.mxu0 %v9085_v59  ;;  %v9856_v10 = vpack.c.bf16 %v1191_v58, %v1190_v55  ;;  %v1207_v55 = vld [vmem:[#allocation2 + $0x172] sm:$0xff] }
  0xe5   : > { %7946 = vmatmul.mubr.bf16.gmra.mrb[12].mxu0 %v9778_v62 }
  0xe6   : > { %7949 = vmatprep.mubr.bf16.mxu0 %v9781_v63  ;;  %7978 = vmatpush3.bf16.msra.mxu0 %v9085_v59  ;;  %v1192_v59 = vld [vmem:[#allocation2 + $0xc2] sm:$0xff] }
  0xe7   : > { %7979 = vmatprep.subr.bf16.mxu0 %v9088_v0 }
  0xea   : > { %7980 = vmatpush3.bf16.msra.mxu0 %v9088_v0  ;;  %v1193_v0 = vld [vmem:[#allocation2 + $0xca] sm:$0xff] }
  0xeb   : > { %8013 = vmatprep.subr.bf16.mxu0 %v9089_v1  ;;  %v9861_v14 = vpack.c.bf16 %v1193_v0, %v1192_v59  ;;  %v9098_v59 = vld [vmem:[%s10221_s1 + $0x108] sm:$0xff]   ;;  %v9099_v0 = vld [vmem:[%s10221_s1 + $0x110] sm:$0xff]  }
  0xed   : > { %7950 = vmatmul.mubr.bf16.gmra.mrb[16].mxu0 %v9792_v2 }
  0xee   : > { %7953 = vmatprep.mubr.bf16.mxu0 %v9795_v3 }
  0xf5   : > { %7954 = vmatmul.mubr.bf16.gmra.mrb[20].mxu0 %v9800_v6 }
  0xf6   : > { %7957 = vmatprep.mubr.bf16.mxu0 %v9803_v7 }
  0xfd   : > { %7958 = vmatmul.mubr.bf16.gmra.mrb[24].mxu0 %v9808_v8 }
  0xfe   : > { %7961 = vmatprep.mubr.bf16.mxu0 %v9811_v9 }
 0x105   : > { %7962 = vmatmul.mubr.bf16.gmra.mrb[28].mxu0 %v9817_v17 }
 0x106   : > { %7981 = vmatprep.mubr.bf16.mxu0 %v1208_v18  ;;  %v1196_v18 = vld [vmem:[#allocation2 + $0xf2] sm:$0xff] }
 0x107   : > { %v9870_v24 = vpack.c.bf16 %v1197_v19, %v1196_v18  ;;  %v2666_v18 = vld [vmem:[#allocation2 + $0x98] sm:$0xff]  ;;  %v9124_v19 = vld [vmem:[%s10221_s1 + $0x1d0] sm:$0xff]  }
 0x10d   : > { %7982 = vmatmul.mubr.bf16.vlgmr.msra.gmra.mrb[0].mxu0 %v9820_v25 }
 0x10e   : > { %8014 = vmatpush3.bf16.msra.mxu0 %v9089_v1  ;;  %7985 = vmatprep.mubr.bf16.mxu0 %v9825_v27  ;;  %v9095_v1 = vld [vmem:[%s10221_s1 + $0xf0] sm:$0xff]  }
 0x10f   : > { %8015 = vmatprep.subr.bf16.mxu0 %v9090_v26 }
 0x112   : > { %8016 = vmatpush3.bf16.msra.mxu0 %v9090_v26  ;;  %v1198_v26 = vld [vmem:[#allocation2 + $0x10a] sm:$0xff] }
 0x113   : > { %8017 = vmatprep.subr.bf16.mxu0 %v9091_v36  ;;  %v9874_v33 = vpack.c.bf16 %v1199_v30, %v1198_v26  ;;  %v2667_v26 = vld [vmem:[#allocation2 + $0xa8] sm:$0xff]  ;;  %v2668_v30 = vld [vmem:[#allocation2 + $0xb0] sm:$0xff] }
 0x115   : > { %7986 = vmatmul.mubr.bf16.gmra.mrb[4].mxu0 %v9832_v37 }
 0x116   : > { %7989 = vmatprep.mubr.bf16.mxu0 %v9837_v39  ;;  %8018 = vmatpush3.bf16.msra.mxu0 %v9091_v36  ;;  %v9876_v36 = vpack.c.bf16 %v1201_v32, %v1200_v31  ;;  %v2669_v31 = vld [vmem:[#allocation2 + $0xc0] sm:$0xff]  ;;  %v2670_v32 = vld [vmem:[#allocation2 + $0xc8] sm:$0xff] }
 0x117   : > { %8019 = vmatprep.subr.bf16.mxu0 %v9092_v38 }
 0x11a   : > { %8020 = vmatpush3.bf16.msra.mxu0 %v9092_v38  ;;  %v1202_v38 = vld [vmem:[#allocation2 + $0x13a] sm:$0xff] }
 0x11b   : > { %8021 = vmatprep.subr.bf16.mxu0 %v9093_v47  ;;  %v9880_v45 = vpack.c.bf16 %v1203_v42, %v1202_v38  ;;  %v2695_v38 = vpack.c.bf16 %v2670_v32, %v2669_v31  ;;  %v9127_v42 = vld [vmem:[%s10221_s1 + $0x1e8] sm:$0xff]   ;;  %v9136_v31 = vld [vmem:[%s10221_s1 + $0x230] sm:$0xff]  }
 0x11d   : > { %7990 = vmatmul.mubr.bf16.gmra.mrb[8].mxu0 %v9844_v50 }
 0x11e   : > { %7993 = vmatprep.mubr.bf16.mxu0 %v9849_v54  ;;  %8022 = vmatpush3.bf16.msra.mxu0 %v9093_v47  ;;  %v9882_v47 = vpack.c.bf16 %v1205_v44, %v1204_v43  ;;  %v2671_v43 = vld [vmem:[#allocation2 + $0xd8] sm:$0xff]  ;;  %v2672_v44 = vld [vmem:[#allocation2 + $0xe0] sm:$0xff] }
 0x11f   : > { %8023 = vmatprep.subr.bf16.mxu0 %v9094_v51 }
 0x122   : > { %8024 = vmatpush3.bf16.msra.mxu0 %v9094_v51  ;;  %v1206_v51 = vld [vmem:[#allocation2 + $0x16a] sm:$0xff] }
 0x123   : > { %8025 = vmatprep.subr.bf16.mxu0 %v9095_v1  ;;  %v9886_v58 = vpack.c.bf16 %v1207_v55, %v1206_v51  ;;  %v9128_v51 = vld [vmem:[%s10221_s1 + $0x1f0] sm:$0xff]   ;;  %v2696_v55 = vpack.c.bf16 %v2672_v44, %v2671_v43  ;;  %v3047_v43 = vld [vmem:[#allocation2 + $0x121] sm:$0xff] }
 0x124   : > { %v3048_v44 = vld [vmem:[#allocation2 + $0x129] sm:$0xff] }
 0x125   : > { %7994 = vmatmul.mubr.bf16.gmra.mrb[12].mxu0 %v9856_v10 }
 0x126   : > { %7997 = vmatprep.mubr.bf16.mxu0 %v9861_v14  ;;  %8026 = vmatpush3.bf16.msra.mxu0 %v9095_v1 }
 0x127   : > { %8027 = vmatprep.subr.bf16.mxu0 %v9096_v11 }
 0x12a   : > { %8028 = vmatpush3.bf16.msra.mxu0 %v9096_v11  ;;  %v9123_v11 = vld [vmem:[%s10221_s1 + $0x1c8] sm:$0xff]  }
 0x12b   : > { %8061 = vmatprep.subr.bf16.mxu0 %v9097_v21 }
 0x12d   : > { %7998 = vmatmul.mubr.bf16.gmra.mrb[16].mxu0 %v9868_v23 }
 0x12e   : > { %8001 = vmatprep.mubr.bf16.mxu0 %v9870_v24 }
 0x135   : > { %8002 = vmatmul.mubr.bf16.gmra.mrb[20].mxu0 %v9874_v33 }
 0x136   : > { %8005 = vmatprep.mubr.bf16.mxu0 %v9876_v36 }
 0x13d   : > { %8006 = vmatmul.mubr.bf16.gmra.mrb[24].mxu0 %v9880_v45 }
 0x13e   : > { %8009 = vmatprep.mubr.bf16.mxu0 %v9882_v47 }
 0x145   : > { %8010 = vmatmul.mubr.bf16.gmra.mrb[28].mxu0 %v9886_v58 }
 0x146   : > { %8029 = vmatprep.mubr.bf16.mxu0 %v9666_v60  ;;  %v9100_v60 = vld [vmem:[%s10221_s1 + $0x118] sm:$0xff]  }
 0x14d   : > { %8030 = vmatmul.mubr.bf16.vlgmr.msra.gmra.mrb[0].mxu0 %v9668_v61  ;;  %v9101_v61 = vld [vmem:[%s10221_s1 + $0x120] sm:$0xff]  }
 0x14e   : > { %8062 = vmatpush3.bf16.msra.mxu0 %v9097_v21  ;;  %8033 = vmatprep.mubr.bf16.mxu0 %v9678_v4  ;;  %v9102_v4 = vld [vmem:[%s10221_s1 + $0x128] sm:$0xff]  }
 0x14f   : > { %8063 = vmatprep.subr.bf16.mxu0 %v9098_v59 }
 0x152   : > { %8064 = vmatpush3.bf16.msra.mxu0 %v9098_v59  ;;  %v9129_v59 = vld [vmem:[%s10221_s1 + $0x1f8] sm:$0xff]  }
 0x153   : > { %8065 = vmatprep.subr.bf16.mxu0 %v9099_v0 }
 0x155   : > { %8034 = vmatmul.mubr.bf16.gmra.mrb[4].mxu0 %v9680_v5  ;;  %v9103_v5 = vld [vmem:[%s10221_s1 + $0x130] sm:$0xff]  }
 0x156   : > { %8037 = vmatprep.mubr.bf16.mxu0 %v9690_v12  ;;  %8066 = vmatpush3.bf16.msra.mxu0 %v9099_v0  ;;  %v9104_v12 = vld [vmem:[%s10221_s1 + $0x138] sm:$0xff]   ;;  %v2675_v0 = vld [vmem:[#allocation2 + $0x108] sm:$0xff] }
 0x157   : > { %8067 = vmatprep.subr.bf16.mxu0 %v9100_v60 }
 0x15a   : > { %8068 = vmatpush3.bf16.msra.mxu0 %v9100_v60  ;;  %v2676_v60 = vld [vmem:[#allocation2 + $0x110] sm:$0xff] }
 0x15b   : > { %8069 = vmatprep.subr.bf16.mxu0 %v9101_v61 }
 0x15d   : > { %8038 = vmatmul.mubr.bf16.gmra.mrb[8].mxu0 %v9692_v13  ;;  %v9105_v13 = vld [vmem:[%s10221_s1 + $0x140] sm:$0xff]  }
 0x15e   : > { %8041 = vmatprep.mubr.bf16.mxu0 %v9702_v20  ;;  %8070 = vmatpush3.bf16.msra.mxu0 %v9101_v61  ;;  %v1576_v20 = vld [vmem:[#allocation2 + $0x180] sm:$0xff] }
 0x15f   : > { %8071 = vmatprep.subr.bf16.mxu0 %v9102_v4  ;;  %v2677_v61 = vld [vmem:[#allocation2 + $0x120] sm:$0xff] }
 0x162   : > { %8072 = vmatpush3.bf16.msra.mxu0 %v9102_v4  ;;  %v2678_v4 = vld [vmem:[#allocation2 + $0x128] sm:$0xff] }
 0x163   : > { %8073 = vmatprep.subr.bf16.mxu0 %v9103_v5 }
 0x165   : > { %8042 = vmatmul.mubr.bf16.gmra.mrb[12].mxu0 %v9707_v22  ;;  %v1577_v22 = vld [vmem:[#allocation2 + $0x188] sm:$0xff] }
 0x166   : > { %8045 = vmatprep.mubr.bf16.mxu0 %v9714_v28  ;;  %8074 = vmatpush3.bf16.msra.mxu0 %v9103_v5  ;;  %v9928_v28 = vpack.c.bf16 %v1577_v22, %v1576_v20  ;;  %v9130_v5 = vld [vmem:[%s10221_s1 + $0x200] sm:$0xff]   ;;  %v2679_v20 = vld [vmem:[#allocation2 + $0x138] sm:$0xff] }
 0x167   : > { %8075 = vmatprep.subr.bf16.mxu0 %v9104_v12  ;;  %v2680_v22 = vld [vmem:[#allocation2 + $0x140] sm:$0xff] }
 0x16a   : > { %8076 = vmatpush3.bf16.msra.mxu0 %v9104_v12  ;;  %v2698_v12 = vpack.c.bf16 %v2676_v60, %v2675_v0 }
 0x16b   : > { %8109 = vmatprep.subr.bf16.mxu0 %v9105_v13 }
 0x16d   : > { %8046 = vmatmul.mubr.bf16.gmra.mrb[16].mxu0 %v9716_v29  ;;  %v9106_v29 = vld [vmem:[%s10221_s1 + $0x148] sm:$0xff]  }
 0x16e   : > { %8049 = vmatprep.mubr.bf16.mxu0 %v9720_v34  ;;  %v9107_v34 = vld [vmem:[%s10221_s1 + $0x150] sm:$0xff]  }
 0x175   : > { %8050 = vmatmul.mubr.bf16.gmra.mrb[20].mxu0 %v9722_v35  ;;  %v9108_v35 = vld [vmem:[%s10221_s1 + $0x158] sm:$0xff]  }
 0x176   : > { %8053 = vmatprep.mubr.bf16.mxu0 %v9726_v40  ;;  %v9109_v40 = vld [vmem:[%s10221_s1 + $0x160] sm:$0xff]  }
 0x17d   : > { %8054 = vmatmul.mubr.bf16.gmra.mrb[24].mxu0 %v9728_v41  ;;  %v9110_v41 = vld [vmem:[%s10221_s1 + $0x168] sm:$0xff]  }
 0x17e   : > { %8057 = vmatprep.mubr.bf16.mxu0 %v9732_v46  ;;  %v9111_v46 = vld [vmem:[%s10221_s1 + $0x170] sm:$0xff]  }
 0x185   : > { %8058 = vmatmul.mubr.bf16.gmra.mrb[28].mxu0 %v9928_v28 }
 0x186   : > { %8077 = vmatprep.mubr.bf16.mxu0 %v9736_v48  ;;  %v9113_v48 = vld [vmem:[%s10221_s1 + $0x178] sm:$0xff]  }
 0x18d   : > { %8078 = vmatmul.mubr.bf16.vlgmr.msra.gmra.mrb[0].mxu0 %v9739_v49  ;;  %v9114_v49 = vld [vmem:[%s10221_s1 + $0x180] sm:$0xff]  }
 0x18e   : > { %8110 = vmatpush3.bf16.msra.mxu0 %v9105_v13  ;;  %8081 = vmatprep.mubr.bf16.mxu0 %v9750_v52  ;;  %v9971_v52 = vld [vmem:[%s9631_s24 + $0x78] sm:$0xff]  ;;  %v2699_v13 = vpack.c.bf16 %v2678_v4, %v2677_v61  ;;  %v3053_v61 = vld [vmem:[#allocation2 + $0x169] sm:$0xff] }
 0x18f   : > { %8111 = vmatprep.subr.bf16.mxu0 %v9106_v29  ;;  %v3054_v4 = vld [vmem:[#allocation2 + $0x171] sm:$0xff] }
 0x192   : > { %8112 = vmatpush3.bf16.msra.mxu0 %v9106_v29  ;;  %v2681_v29 = vld [vmem:[#allocation2 + $0x150] sm:$0xff] }
 0x193   : > { %8113 = vmatprep.subr.bf16.mxu0 %v9107_v34 }
 0x195   : > { %8082 = vmatmul.mubr.bf16.gmra.mrb[4].mxu0 %v9753_v53  ;;  %v9115_v53 = vld [vmem:[%s10221_s1 + $0x188] sm:$0xff]  }
 0x196   : > { %8085 = vmatprep.mubr.bf16.mxu0 %v9764_v56  ;;  %8114 = vmatpush3.bf16.msra.mxu0 %v9107_v34  ;;  %v9116_v56 = vld [vmem:[%s10221_s1 + $0x190] sm:$0xff]   ;;  %v2682_v34 = vld [vmem:[#allocation2 + $0x158] sm:$0xff] }
 0x197   : > { %8115 = vmatprep.subr.bf16.mxu0 %v9108_v35 }
 0x19a   : > { %8116 = vmatpush3.bf16.msra.mxu0 %v9108_v35  ;;  %v2700_v35 = vpack.c.bf16 %v2680_v22, %v2679_v20  ;;  %v3397_v20 = vld [vmem:[#allocation2 + $0x32] sm:$0xff]  ;;  %v3398_v22 = vld [vmem:[#allocation2 + $0x3a] sm:$0xff] }
 0x19b   : > { %8117 = vmatprep.subr.bf16.mxu0 %v9109_v40 }
 0x19d   : > { %8086 = vmatmul.mubr.bf16.gmra.mrb[8].mxu0 %v9767_v57  ;;  %v9117_v57 = vld [vmem:[%s10221_s1 + $0x198] sm:$0xff]  }
 0x19e   : > { %8089 = vmatprep.mubr.bf16.mxu0 %v9778_v62  ;;  %8118 = vmatpush3.bf16.msra.mxu0 %v9109_v40  ;;  %v9118_v62 = vld [vmem:[%s10221_s1 + $0x1a0] sm:$0xff]   ;;  %v2701_v40 = vpack.c.bf16 %v2682_v34, %v2681_v29  ;;  %v3429_v34 = vpack.c.bf16 %v3398_v22, %v3397_v20 }
 0x19f   : > { %8119 = vmatprep.subr.bf16.mxu0 %v9110_v41 }
 0x1a2   : > { %8120 = vmatpush3.bf16.msra.mxu0 %v9110_v41  ;;  %v2683_v41 = vld [vmem:[#allocation2 + $0x168] sm:$0xff] }
 0x1a3   : > { %8121 = vmatprep.subr.bf16.mxu0 %v9111_v46 }
 0x1a5   : > { %8090 = vmatmul.mubr.bf16.gmra.mrb[12].mxu0 %v9781_v63  ;;  %v9119_v63 = vld [vmem:[%s10221_s1 + $0x1a8] sm:$0xff]  }
 0x1a6   : > { %8093 = vmatprep.mubr.bf16.mxu0 %v9792_v2  ;;  %8122 = vmatpush3.bf16.msra.mxu0 %v9111_v46  ;;  %v9120_v2 = vld [vmem:[%s10221_s1 + $0x1b0] sm:$0xff]  }
 0x1a7   : > { %8123 = vmatprep.subr.bf16.mxu0 %v9113_v48  ;;  %v2684_v46 = vld [vmem:[#allocation2 + $0x170] sm:$0xff] }
 0x1aa   : > { %8124 = vmatpush3.bf16.msra.mxu0 %v9113_v48  ;;  %v2702_v48 = vpack.c.bf16 %v2684_v46, %v2683_v41  ;;  %v3401_v41 = vld [vmem:[#allocation2 + $0x62] sm:$0xff]  ;;  %v3402_v46 = vld [vmem:[#allocation2 + $0x6a] sm:$0xff] }
 0x1ab   : > { %8157 = vmatprep.subr.bf16.mxu0 %v9114_v49 }
 0x1ad   : > { %8094 = vmatmul.mubr.bf16.gmra.mrb[16].mxu0 %v9795_v3  ;;  %v9121_v3 = vld [vmem:[%s10221_s1 + $0x1b8] sm:$0xff]  }
 0x1ae   : > { %8097 = vmatprep.mubr.bf16.mxu0 %v9800_v6  ;;  %v9122_v6 = vld [vmem:[%s10221_s1 + $0x1c0] sm:$0xff]  }
 0x1b5   : > { %8098 = vmatmul.mubr.bf16.gmra.mrb[20].mxu0 %v9803_v7  ;;  %v2316_v7 = vld [vmem:[#allocation2 + $0x182] sm:$0xff] }
 0x1b6   : > { %8101 = vmatprep.mubr.bf16.mxu0 %v9808_v8  ;;  %v2317_v8 = vld [vmem:[#allocation2 + $0x18a] sm:$0xff] }
 0x1bd   : > { %8102 = vmatmul.mubr.bf16.gmra.mrb[24].mxu0 %v9811_v9  ;;  %v2657_v9 = vld [vmem:[#allocation2 + $0x30] sm:$0xff] }
 0x1be   : > { %8105 = vmatprep.mubr.bf16.mxu0 %v9817_v17  ;;  %v2658_v17 = vld [vmem:[#allocation2 + $0x38] sm:$0xff] }
 0x1c5   : > { %8106 = vmatmul.mubr.bf16.gmra.mrb[28].mxu0 %v9971_v52 }
 0x1c6   : > { %8125 = vmatprep.mubr.bf16.mxu0 %v9820_v25  ;;  %v10013_v25 = vpack.c.bf16 %v2317_v8, %v2316_v7 }
 0x1cd   : > { %8126 = vmatmul.mubr.bf16.vlgmr.msra.gmra.mrb[0].mxu0 %v9825_v27  ;;  %v2689_v27 = vpack.c.bf16 %v2658_v17, %v2657_v9  ;;  %v9131_v9 = vld [vmem:[%s10221_s1 + $0x208] sm:$0xff]  }
 0x1ce   : > { %8158 = vmatpush3.bf16.msra.mxu0 %v9114_v49  ;;  %8129 = vmatprep.mubr.bf16.mxu0 %v9832_v37  ;;  %v2659_v37 = vld [vmem:[#allocation2 + $0x48] sm:$0xff]  ;;  %v3027_v49 = vld [vmem:[#allocation2 + $0x31] sm:$0xff] }
 0x1cf   : > { %8159 = vmatprep.subr.bf16.mxu0 %v9115_v53  ;;  %v3034_v17 = vld [vmem:[#allocation2 + $0x81] sm:$0xff] }
 0x1d2   : > { %8160 = vmatpush3.bf16.msra.mxu0 %v9115_v53  ;;  %v3028_v53 = vld [vmem:[#allocation2 + $0x39] sm:$0xff] }
 0x1d3   : > { %8161 = vmatprep.subr.bf16.mxu0 %v9116_v56 }
 0x1d5   : > { %8130 = vmatmul.mubr.bf16.gmra.mrb[4].mxu0 %v9837_v39  ;;  %v2660_v39 = vld [vmem:[#allocation2 + $0x50] sm:$0xff] }
 0x1d6   : > { %8133 = vmatprep.mubr.bf16.mxu0 %v9844_v50  ;;  %8162 = vmatpush3.bf16.msra.mxu0 %v9116_v56  ;;  %v2661_v50 = vld [vmem:[#allocation2 + $0x60] sm:$0xff]  ;;  %v2690_v1 = vpack.c.bf16 %v2660_v39, %v2659_v37  ;;  %v9282_v56 = vld [vmem:[#allocation3 + $0x198] sm:$0xff]  ;;  %v9132_v39 = vld [vmem:[%s10221_s1 + $0x210] sm:$0xff]  }
 0x1d7   : > { %8163 = vmatprep.subr.bf16.mxu0 %v9117_v57  ;;  %v3036_v37 = vld [vmem:[#allocation2 + $0x99] sm:$0xff] }
 0x1da   : > { %8164 = vmatpush3.bf16.msra.mxu0 %v9117_v57  ;;  %v2704_v57 = vpack.c.bf16 %v9282_v56, %v9282_v56  ;;  %v3404_v56 = vld [vmem:[#allocation2 + $0x82] sm:$0xff] }
 0x1db   : > { %8165 = vmatprep.subr.bf16.mxu0 %v9118_v62 }
 0x1dd   : > { %8134 = vmatmul.mubr.bf16.gmra.mrb[8].mxu0 %v9849_v54  ;;  %v2662_v54 = vld [vmem:[#allocation2 + $0x68] sm:$0xff] }
 0x1de   : > { %8137 = vmatprep.mubr.bf16.mxu0 %v9856_v10  ;;  %8166 = vmatpush3.bf16.msra.mxu0 %v9118_v62  ;;  %v2691_v10 = vpack.c.bf16 %v2662_v54, %v2661_v50  ;;  %v3059_v62 = vpack.c.bf16 %v3028_v53, %v3027_v49  ;;  %v3431_v49 = vpack.c.bf16 %v3402_v46, %v3401_v41  ;;  %v3403_v53 = vld [vmem:[#allocation2 + $0x7a] sm:$0xff] }
 0x1df   : > { %8167 = vmatprep.subr.bf16.mxu0 %v9119_v63 }
 0x1e2   : > { %8168 = vmatpush3.bf16.msra.mxu0 %v9119_v63  ;;  %v3029_v63 = vld [vmem:[#allocation2 + $0x49] sm:$0xff] }
 0x1e3   : > { %8169 = vmatprep.subr.bf16.mxu0 %v9120_v2 }
 0x1e5   : > { %8138 = vmatmul.mubr.bf16.gmra.mrb[12].mxu0 %v9861_v14  ;;  %v2663_v14 = vld [vmem:[#allocation2 + $0x78] sm:$0xff] }
 0x1e6   : > { %8141 = vmatprep.mubr.bf16.mxu0 %v9868_v23  ;;  %8170 = vmatpush3.bf16.msra.mxu0 %v9120_v2  ;;  %v2692_v21 = vpack.c.bf16 %v2664_v15, %v2663_v14  ;;  %v2693_v23 = vpack.c.bf16 %v2666_v18, %v2665_v16  ;;  %v3030_v2 = vld [vmem:[#allocation2 + $0x51] sm:$0xff]  ;;  %v3039_v14 = vld [vmem:[#allocation2 + $0xc1] sm:$0xff]  ;;  %v3040_v15 = vld [vmem:[#allocation2 + $0xc9] sm:$0xff] }
 0x1e7   : > { %8171 = vmatprep.subr.bf16.mxu0 %v9121_v3  ;;  %v3060_v7 = vpack.c.bf16 %v3030_v2, %v3029_v63  ;;  %v9134_v16 = vld [vmem:[%s10221_s1 + $0x220] sm:$0xff]   ;;  %v3407_v2 = vld [vmem:[#allocation2 + $0xaa] sm:$0xff] }
 0x1ea   : > { %8172 = vmatpush3.bf16.msra.mxu0 %v9121_v3  ;;  %v3031_v3 = vld [vmem:[#allocation2 + $0x61] sm:$0xff] }
 0x1eb   : > { %8205 = vmatprep.subr.bf16.mxu0 %v9122_v6 }
 0x1ed   : > { %8142 = vmatmul.mubr.bf16.gmra.mrb[16].mxu0 %v9870_v24  ;;  %v9125_v24 = vld [vmem:[%s10221_s1 + $0x1d8] sm:$0xff]  }
 0x1ee   : > { %8145 = vmatprep.mubr.bf16.mxu0 %v9874_v33  ;;  %v9126_v33 = vld [vmem:[%s10221_s1 + $0x1e0] sm:$0xff]  }
 0x1f5   : > { %8146 = vmatmul.mubr.bf16.gmra.mrb[20].mxu0 %v9876_v36  ;;  %v2694_v36 = vpack.c.bf16 %v2668_v30, %v2667_v26  ;;  %v3043_v26 = vld [vmem:[#allocation2 + $0xf1] sm:$0xff]  ;;  %v3044_v30 = vld [vmem:[#allocation2 + $0xf9] sm:$0xff] }
 0x1f6   : > { %8149 = vmatprep.mubr.bf16.mxu0 %v9880_v45  ;;  %v2673_v45 = vld [vmem:[#allocation2 + $0xf0] sm:$0xff] }
 0x1fd   : > { %8150 = vmatmul.mubr.bf16.gmra.mrb[24].mxu0 %v9882_v47  ;;  %v2674_v47 = vld [vmem:[#allocation2 + $0xf8] sm:$0xff] }
 0x1fe   : > { %8153 = vmatprep.mubr.bf16.mxu0 %v9886_v58  ;;  %v2697_v58 = vpack.c.bf16 %v2674_v47, %v2673_v45  ;;  %v3069_v47 = vpack.c.bf16 %v3048_v44, %v3047_v43  ;;  %v9140_v43 = vld [vmem:[#allocation6 + $0x10] sm:$0xff]   ;;  %v9141_v44 = vld [vmem:[#allocation6 + $0x18] sm:$0xff]  }
 0x205   : > { %8154 = vmatmul.mubr.bf16.gmra.mrb[28].mxu0 %v10013_v25 }
 0x206   : > { %8173 = vmatprep.mubr.bf16.mxu0 %v2689_v27  ;;  %v3035_v27 = vld [vmem:[#allocation2 + $0x91] sm:$0xff] }
 0x207   : > { %v3063_v54 = vpack.c.bf16 %v3036_v37, %v3035_v27  ;;  %v3413_v27 = vld [vmem:[#allocation2 + $0xf2] sm:$0xff]  ;;  %v3414_v37 = vld [vmem:[#allocation2 + $0xfa] sm:$0xff] }
 0x20d   : > { %8174 = vmatmul.mubr.bf16.vlgmr.msra.gmra.mrb[0].mxu0 %v2690_v1  ;;  %v9133_v1 = vld [vmem:[%s10221_s1 + $0x218] sm:$0xff]  }
 0x20e   : > { %8206 = vmatpush3.bf16.msra.mxu0 %v9122_v6  ;;  %8177 = vmatprep.mubr.bf16.mxu0 %v2691_v10  ;;  %v3032_v6 = vld [vmem:[#allocation2 + $0x69] sm:$0xff] }
 0x20f   : > { %8207 = vmatprep.subr.bf16.mxu0 %v9123_v11  ;;  %v3061_v8 = vpack.c.bf16 %v3032_v6, %v3031_v3  ;;  %v3037_v10 = vld [vmem:[#allocation2 + $0xa9] sm:$0xff]  ;;  %v3408_v3 = vld [vmem:[#allocation2 + $0xb2] sm:$0xff] }
 0x210   : > { %v3409_v6 = vld [vmem:[#allocation2 + $0xc2] sm:$0xff] }
 0x212   : > { %8208 = vmatpush3.bf16.msra.mxu0 %v9123_v11  ;;  %v3038_v11 = vld [vmem:[#allocation2 + $0xb1] sm:$0xff] }
 0x213   : > { %8209 = vmatprep.subr.bf16.mxu0 %v9124_v19  ;;  %v3064_v18 = vpack.c.bf16 %v3038_v11, %v3037_v10  ;;  %v3417_v10 = vld [vmem:[#allocation2 + $0x122] sm:$0xff]  ;;  %v3418_v11 = vld [vmem:[#allocation2 + $0x12a] sm:$0xff] }
 0x215   : > { %8178 = vmatmul.mubr.bf16.gmra.mrb[4].mxu0 %v2692_v21  ;;  %v9135_v21 = vld [vmem:[%s10221_s1 + $0x228] sm:$0xff]  }
 0x216   : > { %8181 = vmatprep.mubr.bf16.mxu0 %v2693_v23  ;;  %8210 = vmatpush3.bf16.msra.mxu0 %v9124_v19  ;;  %v3065_v19 = vpack.c.bf16 %v3040_v15, %v3039_v14  ;;  %v3041_v23 = vld [vmem:[#allocation2 + $0xd9] sm:$0xff]  ;;  %v3439_v15 = vpack.c.bf16 %v3418_v11, %v3417_v10 }
 0x217   : > { %8211 = vmatprep.subr.bf16.mxu0 %v9125_v24 }
 0x21a   : > { %8212 = vmatpush3.bf16.msra.mxu0 %v9125_v24  ;;  %v3042_v24 = vld [vmem:[#allocation2 + $0xe1] sm:$0xff] }
 0x21b   : > { %8213 = vmatprep.subr.bf16.mxu0 %v9126_v33  ;;  %v3066_v32 = vpack.c.bf16 %v3042_v24, %v3041_v23 }
 0x21d   : > { %8182 = vmatmul.mubr.bf16.gmra.mrb[8].mxu0 %v2694_v36  ;;  %v9137_v36 = vld [vmem:[%s10221_s1 + $0x238] sm:$0xff]  }
 0x21e   : > { %8185 = vmatprep.mubr.bf16.mxu0 %v2695_v38  ;;  %8214 = vmatpush3.bf16.msra.mxu0 %v9126_v33  ;;  %v3067_v33 = vpack.c.bf16 %v3044_v30, %v3043_v26  ;;  %v3045_v38 = vld [vmem:[#allocation2 + $0x109] sm:$0xff]  ;;  %v3424_v30 = vld [vmem:[#allocation2 + $0x172] sm:$0xff] }
 0x21f   : > { %8215 = vmatprep.subr.bf16.mxu0 %v9127_v42  ;;  %v3423_v26 = vld [vmem:[#allocation2 + $0x16a] sm:$0xff] }
 0x222   : > { %8216 = vmatpush3.bf16.msra.mxu0 %v9127_v42  ;;  %v3046_v42 = vld [vmem:[#allocation2 + $0x111] sm:$0xff] }
 0x223   : > { %8217 = vmatprep.subr.bf16.mxu0 %v9128_v51  ;;  %v3068_v45 = vpack.c.bf16 %v3046_v42, %v3045_v38  ;;  %v9138_v38 = vld [vmem:[#allocation6] sm:$0xff]   ;;  %v9139_v42 = vld [vmem:[#allocation6 + $0x8] sm:$0xff]  }
 0x224   : > { %8301 = vmatprep.subr.bf16.mxu1 %v9138_v38 }
 0x225   : > { %8186 = vmatmul.mubr.bf16.gmra.mrb[12].mxu0 %v2696_v55  ;;  %v3050_v55 = vld [vmem:[#allocation2 + $0x141] sm:$0xff]  ;;  %8302 = vmatpush3.bf16.msra.mxu1 %v9138_v38 }
 0x226   : > { %8189 = vmatprep.mubr.bf16.mxu0 %v2697_v58  ;;  %8218 = vmatpush3.bf16.msra.mxu0 %v9128_v51  ;;  %v3049_v51 = vld [vmem:[#allocation2 + $0x139] sm:$0xff]  ;;  %v3051_v58 = vld [vmem:[#allocation2 + $0x151] sm:$0xff] }
 0x227   : > { %8219 = vmatprep.subr.bf16.mxu0 %v9129_v59  ;;  %v3070_v0 = vpack.c.bf16 %v3050_v55, %v3049_v51  ;;  %8303 = vmatprep.subr.bf16.mxu1 %v9139_v42  ;;  %v9145_v51 = vld [vmem:[#allocation6 + $0x38] sm:$0xff]   ;;  %v10064_v55 = vld [vmem:[#allocation6 + $0x40] sm:$0xff]  }
 0x229   : > { %8304 = vmatpush3.bf16.msra.mxu1 %v9139_v42 }
 0x22a   : > { %8220 = vmatpush3.bf16.msra.mxu0 %v9129_v59  ;;  %v3052_v59 = vld [vmem:[#allocation2 + $0x159] sm:$0xff]  ;;  %8305 = vmatprep.subr.bf16.mxu1 %v9140_v43 }
 0x22b   : > { %8253 = vmatprep.subr.bf16.mxu0 %v9130_v5  ;;  %v3071_v60 = vpack.c.bf16 %v3052_v59, %v3051_v58  ;;  %v10070_v58 = vld [vmem:[%s10224_s4] ss:$0 sm:$0xff] }
 0x22d   : > { %8190 = vmatmul.mubr.bf16.gmra.mrb[16].mxu0 %v2698_v12  ;;  %v3057_v12 = vld [vmem:[#allocation2 + $0x199] sm:$0xff]  ;;  %8306 = vmatpush3.bf16.msra.mxu1 %v9140_v43 }
 0x22e   : > { %8193 = vmatprep.mubr.bf16.mxu0 %v2699_v13  ;;  %v3058_v13 = vld [vmem:[#allocation2 + $0x1a1] sm:$0xff]  ;;  %8307 = vmatprep.subr.bf16.mxu1 %v9141_v44 }
 0x22f   : > { %v3074_v29 = vpack.c.bf16 %v3058_v13, %v3057_v12 }
 0x231   : > { %8308 = vmatpush3.bf16.msra.mxu1 %v9141_v44 }
 0x235   : > { %8194 = vmatmul.mubr.bf16.gmra.mrb[20].mxu0 %v2700_v35  ;;  %v3399_v35 = vld [vmem:[#allocation2 + $0x4a] sm:$0xff] }
 0x236   : > { %8197 = vmatprep.mubr.bf16.mxu0 %v2701_v40  ;;  %v3400_v40 = vld [vmem:[#allocation2 + $0x52] sm:$0xff] }
 0x23d   : > { %8198 = vmatmul.mubr.bf16.gmra.mrb[24].mxu0 %v2702_v48  ;;  %v3430_v48 = vpack.c.bf16 %v3400_v40, %v3399_v35 }
 0x23e   : > { %8201 = vmatprep.mubr.bf16.mxu0 %v9928_v28  ;;  %v3033_v28 = vld [vmem:[#allocation2 + $0x79] sm:$0xff] }
 0x23f   : > { %v3062_v50 = vpack.c.bf16 %v3034_v17, %v3033_v28  ;;  %v3411_v28 = vld [vmem:[#allocation2 + $0xda] sm:$0xff]  ;;  %v3412_v17 = vld [vmem:[#allocation2 + $0xe2] sm:$0xff] }
 0x245   : > { %8202 = vmatmul.mubr.bf16.gmra.mrb[28].mxu0 %v2704_v57  ;;  %v3405_v57 = vld [vmem:[#allocation2 + $0x92] sm:$0xff] }
 0x246   : > { %8221 = vmatprep.mubr.bf16.mxu0 %v3059_v62  ;;  %v3432_v62 = vpack.c.bf16 %v3404_v56, %v3403_v53 }
 0x24d   : > { %8222 = vmatmul.mubr.bf16.vlgmr.msra.gmra.mrb[0].mxu0 %v3060_v7  ;;  %v3410_v7 = vld [vmem:[#allocation2 + $0xca] sm:$0xff] }
 0x24e   : > { %8254 = vmatpush3.bf16.msra.mxu0 %v9130_v5  ;;  %8225 = vmatprep.mubr.bf16.mxu0 %v3061_v8  ;;  %v3072_v5 = vpack.c.bf16 %v3054_v4, %v3053_v61  ;;  %v3434_v8 = vpack.c.bf16 %v3408_v3, %v3407_v2 }
 0x24f   : > { %8255 = vmatprep.subr.bf16.mxu0 %v9131_v9 }
 0x252   : > { %8256 = vmatpush3.bf16.msra.mxu0 %v9131_v9  ;;  %v3435_v9 = vpack.c.bf16 %v3410_v7, %v3409_v6 }
 0x253   : > { %8257 = vmatprep.subr.bf16.mxu0 %v9132_v39 }
 0x255   : > { %8226 = vmatmul.mubr.bf16.gmra.mrb[4].mxu0 %v3062_v50  ;;  %v3437_v50 = vpack.c.bf16 %v3414_v37, %v3413_v27  ;;  %v4005_v37 = vld [vmem:[#allocation3] ss:$2 sm:$0xff] }
 0x256   : > { %8229 = vmatprep.mubr.bf16.mxu0 %v3063_v54  ;;  %8258 = vmatpush3.bf16.msra.mxu0 %v9132_v39  ;;  %v3436_v39 = vpack.c.bf16 %v3412_v17, %v3411_v28  ;;  %v3415_v54 = vld [vmem:[#allocation2 + $0x10a] sm:$0xff] }
 0x257   : > { %8259 = vmatprep.subr.bf16.mxu0 %v9133_v1 }
 0x25a   : > { %8260 = vmatpush3.bf16.msra.mxu0 %v9133_v1  ;;  %v3416_v1 = vld [vmem:[#allocation2 + $0x112] sm:$0xff] }
 0x25b   : > { %8261 = vmatprep.subr.bf16.mxu0 %v9134_v16  ;;  %v3438_v14 = vpack.c.bf16 %v3416_v1, %v3415_v54 }
 0x25d   : > { %8230 = vmatmul.mubr.bf16.gmra.mrb[8].mxu0 %v3064_v18  ;;  %v3420_v18 = vld [vmem:[#allocation2 + $0x142] sm:$0xff] }
 0x25e   : > { %8233 = vmatprep.mubr.bf16.mxu0 %v3065_v19  ;;  %8262 = vmatpush3.bf16.msra.mxu0 %v9134_v16  ;;  %v3419_v16 = vld [vmem:[#allocation2 + $0x13a] sm:$0xff]  ;;  %v3421_v19 = vld [vmem:[#allocation2 + $0x152] sm:$0xff] }
 0x25f   : > { %8263 = vmatprep.subr.bf16.mxu0 %v9135_v21  ;;  %v3440_v23 = vpack.c.bf16 %v3420_v18, %v3419_v16 }
 0x262   : > { %8264 = vmatpush3.bf16.msra.mxu0 %v9135_v21  ;;  %v3422_v21 = vld [vmem:[#allocation2 + $0x15a] sm:$0xff] }
 0x263   : > { %8265 = vmatprep.subr.bf16.mxu0 %v9136_v31  ;;  %v3441_v24 = vpack.c.bf16 %v3422_v21, %v3421_v19 }
 0x265   : > { %8234 = vmatmul.mubr.bf16.gmra.mrb[12].mxu0 %v3066_v32  ;;  %v3427_v32 = vld [vmem:[#allocation2 + $0x19a] sm:$0xff] }
 0x266   : > { %8237 = vmatprep.mubr.bf16.mxu0 %v3067_v33  ;;  %8266 = vmatpush3.bf16.msra.mxu0 %v9136_v31  ;;  %v3442_v31 = vpack.c.bf16 %v3424_v30, %v3423_v26  ;;  %v3428_v33 = vld [vmem:[#allocation2 + $0x1a2] sm:$0xff] }
 0x267   : > { %8267 = vmatprep.subr.bf16.mxu0 %v9137_v36 }
 0x26a   : > { %8268 = vmatpush3.bf16.msra.mxu0 %v9137_v36  ;;  %v3444_v36 = vpack.c.bf16 %v3428_v33, %v3427_v32 }
 0x26d   : > { %8238 = vmatmul.mubr.bf16.gmra.mrb[16].mxu0 %v3068_v45  ;;  %v9142_v45 = vld [vmem:[#allocation6 + $0x20] sm:$0xff]  }
 0x26e   : > { %8241 = vmatprep.mubr.bf16.mxu0 %v3069_v47  ;;  %8309 = vmatprep.subr.bf16.mxu1 %v9142_v45  ;;  %v9144_v47 = vld [vmem:[#allocation6 + $0x30] sm:$0xff]  }
 0x26f   : > { %8310 = vmatpush3.bf16.msra.mxu1 %v9142_v45 }
 0x275   : > { %8242 = vmatmul.mubr.bf16.gmra.mrb[20].mxu0 %v3070_v0 }
 0x276   : > { %8245 = vmatprep.mubr.bf16.mxu0 %v3071_v60 }
 0x27d   : > { %8246 = vmatmul.mubr.bf16.gmra.mrb[24].mxu0 %v3072_v5 }
 0x27e   : > { %8249 = vmatprep.mubr.bf16.mxu0 %v9971_v52  ;;  %v3406_v52 = vld [vmem:[#allocation2 + $0x9a] sm:$0xff] }
 0x27f   : > { %v3433_v63 = vpack.c.bf16 %v3406_v52, %v3405_v57 }
 0x285   : > { %8250 = vmatmul.mubr.bf16.gmra.mrb[28].mxu0 %v3074_v29 }
 0x286   : > { %8269 = vmatprep.mubr.bf16.mxu0 %v3429_v34 }
 0x28d   : > { %8270 = vmatmul.mubr.bf16.vlgmr.msra.gmra.mrb[0].mxu0 %v3430_v48 }
 0x28e   : > { %8273 = vmatprep.mubr.bf16.mxu0 %v3431_v49 }
 0x295   : > { %8274 = vmatmul.mubr.bf16.gmra.mrb[4].mxu0 %v3432_v62 }
 0x296   : > { %8277 = vmatprep.mubr.bf16.mxu0 %v3433_v63 }
 0x29d   : > { %8278 = vmatmul.mubr.bf16.gmra.mrb[8].mxu0 %v3434_v8 }
 0x29e   : > { %8281 = vmatprep.mubr.bf16.mxu0 %v3435_v9 }
 0x2a5   : > { %8282 = vmatmul.mubr.bf16.gmra.mrb[12].mxu0 %v3436_v39 }
 0x2a6   : > { %8285 = vmatprep.mubr.bf16.mxu0 %v3437_v50 }
 0x2ad   : > { %8286 = vmatmul.mubr.bf16.gmra.mrb[16].mxu0 %v3438_v14 }
 0x2ae   : > { %8289 = vmatprep.mubr.bf16.mxu0 %v3439_v15 }
 0x2b5   : > { %8290 = vmatmul.mubr.bf16.gmra.mrb[20].mxu0 %v3440_v23 }
 0x2b6   : > { %8293 = vmatprep.mubr.bf16.mxu0 %v3441_v24 }
 0x2bd   : > { %8294 = vmatmul.mubr.bf16.gmra.mrb[24].mxu0 %v3442_v31 }
 0x2be   : > { %8297 = vmatprep.mubr.bf16.mxu0 %v10013_v25  ;;  %v9143_v25 = vld [vmem:[#allocation6 + $0x28] sm:$0xff]  }
 0x2bf   : > { %8311 = vmatprep.subr.bf16.mxu1 %v9143_v25 }
 0x2c0   : > { %8312 = vmatpush3.bf16.msra.mxu1 %v9143_v25 }
 0x2c1   : > { %8313 = vmatprep.subr.bf16.mxu1 %v9144_v47 }
 0x2c4   : > { %8314 = vmatpush3.bf16.msra.mxu1 %v9144_v47 }
 0x2c5   : > { %8298 = vmatmul.mubr.bf16.gmra.mrb[28].mxu0 %v3444_v36  ;;  %8315 = vmatprep.subr.bf16.mxu1 %v9145_v51 }
 0x2c8   : > { %8316 = vmatpush3.bf16.msra.mxu1 %v9145_v51 }
 0x2c9   : > { %8325 = vmatprep.subr.bf16.mxu1 %v10064_v55 }
 0x360   : > { %v8271_v59 = vpop.f32.mrb[0].mxu0 }
 0x361   : > { %v3808_v0 = vadd.f32 %v8271_v59, %v10070_v58  ;;  %v3544_v60 = vpop.f32.mrb[1].mxu0 }
 0x362   : > { %v3806_v61 = vadd.f32 %v10070_v58, %v3544_v60  ;;  %v8272_v4 = vpop.f32.mrb[2].mxu0 }
 0x363   : > { %v3809_v5 = vadd.f32 %v8272_v4, %v10070_v58  ;;  %v3547_v12 = vpop.f32.mrb[3].mxu0  ;;  %v3840_v20 = vmax.f32 %v3808_v0, 0.0 }
 0x364   : > { %v3807_v13 = vadd.f32 %v10070_v58, %v3547_v12  ;;  %v3838_v29 = vmax.f32 %v3806_v61, 0.0 }
 0x365   : > { %v3841_v22 = vmax.f32 %v3809_v5, 0.0 }
 0x366   : > { %v3839_v34 = vmax.f32 %v3807_v13, 0.0 }
 0x367   : > { %v3871_v35 = vpack.c.bf16 %v3841_v22, %v3840_v20 }
 0x368   : > { %v3870_v40 = vpack.c.bf16 %v3839_v34, %v3838_v29  ;;  %v8275_v41 = vpop.f32.mrb[4].mxu0 }
 0x369   : > { %v3942_v46 = vunpack.c.l.bf16 %v3871_v35  ;;  %v3943_v48 = vunpack.c.h.bf16 %v3871_v35  ;;  %v3812_v49 = vadd.f32 %v8275_v41, %v10070_v58  ;;  %v3560_v53 = vpop.f32.mrb[5].mxu0 }
 0x36a   : > { %v3940_v56 = vunpack.c.l.bf16 %v3870_v40  ;;  %v3941_v57 = vunpack.c.h.bf16 %v3870_v40  ;;  %v3810_v52 = vadd.f32 %v10070_v58, %v3560_v53  ;;  %v8276_v62 = vpop.f32.mrb[6].mxu0 }
 0x36b   : > { %3975 = vst [vmem:[#allocation3 + $0x31] sm:$0xff] %v3942_v46  ;;  %3976 = vst [vmem:[#allocation3 + $0x39] sm:$0xff] %v3943_v48  ;;  %v3813_v63 = vadd.f32 %v8276_v62, %v10070_v58  ;;  %v3563_v2 = vpop.f32.mrb[7].mxu0  ;;  %v3844_v6 = vmax.f32 %v3812_v49, 0.0 }
 0x36c   : > { %3973 = vst [vmem:[#allocation3 + $0x19] sm:$0xff] %v3940_v56  ;;  %3974 = vst [vmem:[#allocation3 + $0x21] sm:$0xff] %v3941_v57  ;;  %v3811_v3 = vadd.f32 %v10070_v58, %v3563_v2  ;;  %v3842_v8 = vmax.f32 %v3810_v52, 0.0 }
 0x36d   : > { %v3845_v7 = vmax.f32 %v3813_v63, 0.0  ;;  %v9147_v63 = vld [vmem:[#allocation6 + $0x48] sm:$0xff]  }
 0x36e   : > { %v3843_v9 = vmax.f32 %v3811_v3, 0.0 }
 0x36f   : > { %v3873_v28 = vpack.c.bf16 %v3845_v7, %v3844_v6 }
 0x370   : > { %v3872_v17 = vpack.c.bf16 %v3843_v9, %v3842_v8  ;;  %v8279_v27 = vpop.f32.mrb[8].mxu0 }
 0x371   : > { %v3946_v39 = vunpack.c.l.bf16 %v3873_v28  ;;  %v3947_v50 = vunpack.c.h.bf16 %v3873_v28  ;;  %v3816_v54 = vadd.f32 %v8279_v27, %v10070_v58  ;;  %v3576_v1 = vpop.f32.mrb[9].mxu0  ;;  %v9148_v28 = vld [vmem:[#allocation6 + $0x50] sm:$0xff]  }
 0x372   : > { %v3944_v10 = vunpack.c.l.bf16 %v3872_v17  ;;  %v3945_v11 = vunpack.c.h.bf16 %v3872_v17  ;;  %v3814_v14 = vadd.f32 %v10070_v58, %v3576_v1  ;;  %v8280_v15 = vpop.f32.mrb[10].mxu0  ;;  %v4007_v16 = vld [vmem:[#allocation3 + $0x30] ss:$2 sm:$0xff] }
 0x373   : > { %3979 = vst [vmem:[#allocation3 + $0x61] sm:$0xff] %v3946_v39  ;;  %3980 = vst [vmem:[#allocation3 + $0x69] sm:$0xff] %v3947_v50  ;;  %v3817_v18 = vadd.f32 %v8280_v15, %v10070_v58  ;;  %v3579_v19 = vpop.f32.mrb[11].mxu0  ;;  %v4020_v21 = vpack.c.bf16 %v4007_v16, %v4005_v37  ;;  %v3848_v24 = vmax.f32 %v3816_v54, 0.0  ;;  %v9149_v16 = vld [vmem:[#allocation6 + $0x58] sm:$0xff]  }
 0x374   : > { %3977 = vst [vmem:[#allocation3 + $0x49] sm:$0xff] %v3944_v10  ;;  %3978 = vst [vmem:[#allocation3 + $0x51] sm:$0xff] %v3945_v11  ;;  %v3815_v23 = vadd.f32 %v10070_v58, %v3579_v19  ;;  %v3846_v30 = vmax.f32 %v3814_v14, 0.0 }
 0x375   : > { %v3849_v26 = vmax.f32 %v3817_v18, 0.0  ;;  %8317 = vmatprep.mubr.bf16.mxu1 %v4020_v21 }
 0x376   : > { %v3847_v31 = vmax.f32 %v3815_v23, 0.0 }
 0x377   : > { %v3875_v32 = vpack.c.bf16 %v3849_v26, %v3848_v24 }
 0x378   : > { %v3874_v33 = vpack.c.bf16 %v3847_v31, %v3846_v30  ;;  %v8283_v36 = vpop.f32.mrb[12].mxu0  ;;  %v9150_v30 = vld [vmem:[#allocation6 + $0x60] sm:$0xff]  }
 0x379   : > { %v3950_v38 = vunpack.c.l.bf16 %v3875_v32  ;;  %v3951_v42 = vunpack.c.h.bf16 %v3875_v32  ;;  %v3820_v43 = vadd.f32 %v8283_v36, %v10070_v58  ;;  %v3592_v44 = vpop.f32.mrb[13].mxu0 }
 0x37a   : > { %v3948_v45 = vunpack.c.l.bf16 %v3874_v33  ;;  %v3949_v25 = vunpack.c.h.bf16 %v3874_v33  ;;  %v3818_v47 = vadd.f32 %v10070_v58, %v3592_v44  ;;  %v8284_v51 = vpop.f32.mrb[14].mxu0  ;;  %v4009_v53 = vld [vmem:[#allocation3 + $0x60] ss:$2 sm:$0xff] }
 0x37b   : > { %3983 = vst [vmem:[#allocation3 + $0x91] sm:$0xff] %v3950_v38  ;;  %3984 = vst [vmem:[#allocation3 + $0x99] sm:$0xff] %v3951_v42  ;;  %v3821_v59 = vadd.f32 %v8284_v51, %v10070_v58  ;;  %v3595_v0 = vpop.f32.mrb[15].mxu0  ;;  %v3852_v61 = vmax.f32 %v3820_v43, 0.0 }
 0x37c   : > { %3981 = vst [vmem:[#allocation3 + $0x79] sm:$0xff] %v3948_v45  ;;  %3982 = vst [vmem:[#allocation3 + $0x81] sm:$0xff] %v3949_v25  ;;  %v3819_v60 = vadd.f32 %v10070_v58, %v3595_v0  ;;  %v3850_v5 = vmax.f32 %v3818_v47, 0.0 }
 0x37d   : > { %v3853_v4 = vmax.f32 %v3821_v59, 0.0 }
 0x37e   : > { %v3851_v12 = vmax.f32 %v3819_v60, 0.0 }
 0x37f   : > { %v3877_v13 = vpack.c.bf16 %v3853_v4, %v3852_v61  ;;  %v9151_v61 = vld [vmem:[#allocation6 + $0x68] sm:$0xff]  }
 0x380   : > { %v3876_v20 = vpack.c.bf16 %v3851_v12, %v3850_v5  ;;  %v8287_v22 = vpop.f32.mrb[16].mxu0 }
 0x381   : > { %v3954_v29 = vunpack.c.l.bf16 %v3877_v13  ;;  %v3955_v34 = vunpack.c.h.bf16 %v3877_v13  ;;  %v3824_v35 = vadd.f32 %v8287_v22, %v10070_v58  ;;  %v3608_v40 = vpop.f32.mrb[17].mxu0 }
 0x382   : > { %v3952_v41 = vunpack.c.l.bf16 %v3876_v20  ;;  %v3953_v46 = vunpack.c.h.bf16 %v3876_v20  ;;  %v3822_v48 = vadd.f32 %v10070_v58, %v3608_v40  ;;  %v8288_v49 = vpop.f32.mrb[18].mxu0  ;;  %v4011_v56 = vld [vmem:[#allocation3 + $0x90] ss:$2 sm:$0xff] }
 0x383   : > { %3987 = vst [vmem:[#allocation3 + $0xc1] sm:$0xff] %v3954_v29  ;;  %3988 = vst [vmem:[#allocation3 + $0xc9] sm:$0xff] %v3955_v34  ;;  %v3825_v57 = vadd.f32 %v8288_v49, %v10070_v58  ;;  %v3611_v52 = vpop.f32.mrb[19].mxu0  ;;  %v4021_v62 = vpack.c.bf16 %v4011_v56, %v4009_v53  ;;  %v3856_v3 = vmax.f32 %v3824_v35, 0.0  ;;  %v9152_v29 = vld [vmem:[#allocation6 + $0x70] sm:$0xff]  }
 0x384   : > { %3985 = vst [vmem:[#allocation3 + $0xa9] sm:$0xff] %v3952_v41  ;;  %3986 = vst [vmem:[#allocation3 + $0xb1] sm:$0xff] %v3953_v46  ;;  %v3823_v2 = vadd.f32 %v10070_v58, %v3611_v52  ;;  %v3854_v7 = vmax.f32 %v3822_v48, 0.0 }
 0x385   : > { %v3857_v6 = vmax.f32 %v3825_v57, 0.0  ;;  %8318 = vmatmul.mubr.bf16.vlgmr.msra.gmra.mrb[0].mxu1 %v4021_v62 }
 0x386   : > { %v3855_v8 = vmax.f32 %v3823_v2, 0.0  ;;  %8326 = vmatpush3.bf16.msra.mxu1 %v10064_v55 }
 0x387   : > { %v3879_v9 = vpack.c.bf16 %v3857_v6, %v3856_v3  ;;  %8327 = vmatprep.subr.bf16.mxu1 %v9147_v63 }
 0x388   : > { %v3878_v17 = vpack.c.bf16 %v3855_v8, %v3854_v7  ;;  %v8291_v27 = vpop.f32.mrb[20].mxu0 }
 0x389   : > { %v3958_v37 = vunpack.c.l.bf16 %v3879_v9  ;;  %v3959_v39 = vunpack.c.h.bf16 %v3879_v9  ;;  %v3828_v50 = vadd.f32 %v8291_v27, %v10070_v58  ;;  %v3624_v54 = vpop.f32.mrb[21].mxu0 }
 0x38a   : > { %v3956_v1 = vunpack.c.l.bf16 %v3878_v17  ;;  %v3957_v10 = vunpack.c.h.bf16 %v3878_v17  ;;  %v3826_v11 = vadd.f32 %v10070_v58, %v3624_v54  ;;  %v8292_v14 = vpop.f32.mrb[22].mxu0  ;;  %8328 = vmatpush3.bf16.msra.mxu1 %v9147_v63  ;;  %v4013_v47 = vld [vmem:[#allocation3 + $0xc0] ss:$2 sm:$0xff] }
 0x38b   : > { %3991 = vst [vmem:[#allocation3 + $0xf1] sm:$0xff] %v3958_v37  ;;  %3992 = vst [vmem:[#allocation3 + $0xf9] sm:$0xff] %v3959_v39  ;;  %v3829_v55 = vadd.f32 %v8292_v14, %v10070_v58  ;;  %v3627_v15 = vpop.f32.mrb[23].mxu0  ;;  %8329 = vmatprep.subr.bf16.mxu1 %v9148_v28  ;;  %v3860_v19 = vmax.f32 %v3828_v50, 0.0  ;;  %v9153_v63 = vld [vmem:[#allocation6 + $0x78] sm:$0xff]  }
 0x38c   : > { %3989 = vst [vmem:[#allocation3 + $0xd9] sm:$0xff] %v3956_v1  ;;  %3990 = vst [vmem:[#allocation3 + $0xe1] sm:$0xff] %v3957_v10  ;;  %v3827_v18 = vadd.f32 %v10070_v58, %v3627_v15  ;;  %v3858_v23 = vmax.f32 %v3826_v11, 0.0  ;;  %v4162_v39 = vld [vmem:[#allocation3 + $0x1] ss:$2 sm:$0xff] }
 0x38d   : > { %v3861_v21 = vmax.f32 %v3829_v55, 0.0  ;;  %v4164_v50 = vld [vmem:[#allocation3 + $0x31] ss:$2 sm:$0xff] }
 0x38e   : > { %v3859_v24 = vmax.f32 %v3827_v18, 0.0  ;;  %8330 = vmatpush3.bf16.msra.mxu1 %v9148_v28  ;;  %v9154_v28 = vld [vmem:[#allocation6 + $0x80] sm:$0xff]   ;;  %v4177_v14 = vpack.c.bf16 %v4164_v50, %v4162_v39  ;;  %v9175_v39 = vld [vmem:[#allocation6 + $0x128] sm:$0xff]   ;;  %v9176_v50 = vld [vmem:[#allocation6 + $0x130] sm:$0xff]  }
 0x38f   : > { %v3881_v26 = vpack.c.bf16 %v3861_v21, %v3860_v19  ;;  %8331 = vmatprep.subr.bf16.mxu1 %v9149_v16  ;;  %v4168_v55 = vld [vmem:[#allocation3 + $0x91] ss:$2 sm:$0xff]  ;;  %v4170_v19 = vld [vmem:[#allocation3 + $0xc1] ss:$2 sm:$0xff] }
 0x390   : > { %v3880_v31 = vpack.c.bf16 %v3859_v24, %v3858_v23  ;;  %v8295_v32 = vpop.f32.mrb[24].mxu0  ;;  %v9155_v21 = vld [vmem:[#allocation6 + $0x88] sm:$0xff]   ;;  %v9156_v24 = vld [vmem:[#allocation6 + $0x90] sm:$0xff]  }
 0x391   : > { %v3962_v33 = vunpack.c.l.bf16 %v3881_v26  ;;  %v3963_v36 = vunpack.c.h.bf16 %v3881_v26  ;;  %v3832_v38 = vadd.f32 %v8295_v32, %v10070_v58  ;;  %v3640_v42 = vpop.f32.mrb[25].mxu0 }
 0x392   : > { %v3960_v43 = vunpack.c.l.bf16 %v3880_v31  ;;  %v3961_v44 = vunpack.c.h.bf16 %v3880_v31  ;;  %v3830_v45 = vadd.f32 %v10070_v58, %v3640_v42  ;;  %v8296_v25 = vpop.f32.mrb[26].mxu0  ;;  %v4015_v51 = vld [vmem:[#allocation3 + $0xf0] ss:$2 sm:$0xff]  ;;  %8332 = vmatpush3.bf16.msra.mxu1 %v9149_v16  ;;  %v4172_v15 = vld [vmem:[#allocation3 + $0xf1] ss:$2 sm:$0xff] }
 0x393   : > { %3995 = vst [vmem:[#allocation3 + $0x121] sm:$0xff] %v3962_v33  ;;  %3996 = vst [vmem:[#allocation3 + $0x129] sm:$0xff] %v3963_v36  ;;  %v3833_v59 = vadd.f32 %v8296_v25, %v10070_v58  ;;  %v3643_v0 = vpop.f32.mrb[27].mxu0  ;;  %v4022_v60 = vpack.c.bf16 %v4015_v51, %v4013_v47  ;;  %8333 = vmatprep.subr.bf16.mxu1 %v9150_v30  ;;  %v3864_v5 = vmax.f32 %v3832_v38, 0.0  ;;  %v4166_v16 = vld [vmem:[#allocation3 + $0x61] ss:$2 sm:$0xff] }
 0x394   : > { %3993 = vst [vmem:[#allocation3 + $0x109] sm:$0xff] %v3960_v43  ;;  %3994 = vst [vmem:[#allocation3 + $0x111] sm:$0xff] %v3961_v44  ;;  %v3831_v4 = vadd.f32 %v10070_v58, %v3643_v0  ;;  %v3862_v13 = vmax.f32 %v3830_v45, 0.0  ;;  %v4178_v18 = vpack.c.bf16 %v4168_v55, %v4166_v16  ;;  %v4179_v23 = vpack.c.bf16 %v4172_v15, %v4170_v19  ;;  %v4338_v31 = vld [vmem:[#allocation3 + $0x32] ss:$2 sm:$0xff]  ;;  %v9157_v36 = vld [vmem:[#allocation6 + $0x98] sm:$0xff]  }
 0x395   : > { %v3865_v12 = vmax.f32 %v3833_v59, 0.0  ;;  %8321 = vmatprep.mubr.bf16.mxu1 %v4022_v60  ;;  %v9158_v42 = vld [vmem:[#allocation6 + $0xa0] sm:$0xff]   ;;  %v9159_v43 = vld [vmem:[#allocation6 + $0xa8] sm:$0xff]   ;;  %v9160_v44 = vld [vmem:[#allocation6 + $0xb0] sm:$0xff]  }
 0x396   : > { %v3863_v20 = vmax.f32 %v3831_v4, 0.0  ;;  %8334 = vmatpush3.bf16.msra.mxu1 %v9150_v30  ;;  %v4336_v30 = vld [vmem:[#allocation3 + $0x2] ss:$2 sm:$0xff]  ;;  %v4342_v47 = vld [vmem:[#allocation3 + $0x92] ss:$2 sm:$0xff] }
 0x397   : > { %v3883_v22 = vpack.c.bf16 %v3865_v12, %v3864_v5  ;;  %8335 = vmatprep.subr.bf16.mxu1 %v9151_v61  ;;  %v4351_v38 = vpack.c.bf16 %v4338_v31, %v4336_v30  ;;  %v9161_v45 = vld [vmem:[#allocation6 + $0xb8] sm:$0xff]   ;;  %v9162_v25 = vld [vmem:[#allocation6 + $0xc0] sm:$0xff]   ;;  %v9164_v5 = vld [vmem:[#allocation6 + $0xd0] sm:$0xff]  }
 0x398   : > { %v3882_v34 = vpack.c.bf16 %v3863_v20, %v3862_v13  ;;  %v8299_v35 = vpop.f32.mrb[28].mxu0  ;;  %v4346_v51 = vld [vmem:[#allocation3 + $0xf2] ss:$2 sm:$0xff]  ;;  %v4340_v59 = vld [vmem:[#allocation3 + $0x62] ss:$2 sm:$0xff] }
 0x399   : > { %v3966_v40 = vunpack.c.l.bf16 %v3883_v22  ;;  %v3967_v41 = vunpack.c.h.bf16 %v3883_v22  ;;  %v3836_v46 = vadd.f32 %v8299_v35, %v10070_v58  ;;  %v3656_v48 = vpop.f32.mrb[29].mxu0  ;;  %v4352_v0 = vpack.c.bf16 %v4342_v47, %v4340_v59  ;;  %v4344_v60 = vld [vmem:[#allocation3 + $0xc2] ss:$2 sm:$0xff]  ;;  %v4691_v55 = vld [vmem:[#allocation3 + $0xd9] ss:$2 sm:$0xff] }
 0x39a   : > { %v3964_v49 = vunpack.c.l.bf16 %v3882_v34  ;;  %v3965_v53 = vunpack.c.h.bf16 %v3882_v34  ;;  %v3834_v56 = vadd.f32 %v10070_v58, %v3656_v48  ;;  %v8300_v57 = vpop.f32.mrb[30].mxu0  ;;  %8336 = vmatpush3.bf16.msra.mxu1 %v9151_v61  ;;  %v4017_v10 = vld [vmem:[#allocation3 + $0x120] ss:$2 sm:$0xff]  ;;  %v4174_v32 = vld [vmem:[#allocation3 + $0x121] ss:$2 sm:$0xff]  ;;  %v9163_v61 = vld [vmem:[#allocation6 + $0xc8] sm:$0xff]   ;;  %v4353_v4 = vpack.c.bf16 %v4346_v51, %v4344_v60 }
 0x39b   : > { %3999 = vst [vmem:[#allocation3 + $0x151] sm:$0xff] %v3966_v40  ;;  %4000 = vst [vmem:[#allocation3 + $0x159] sm:$0xff] %v3967_v41  ;;  %v3837_v52 = vadd.f32 %v8300_v57, %v10070_v58  ;;  %v3659_v62 = vpop.f32.mrb[31].mxu0  ;;  %8337 = vmatprep.subr.bf16.mxu1 %v9152_v29  ;;  %v3868_v3 = vmax.f32 %v3836_v46, 0.0  ;;  %v4511_v13 = vld [vmem:[#allocation3 + $0x48] ss:$2 sm:$0xff] }
 0x39c   : > { %3997 = vst [vmem:[#allocation3 + $0x139] sm:$0xff] %v3964_v49  ;;  %3998 = vst [vmem:[#allocation3 + $0x141] sm:$0xff] %v3965_v53  ;;  %v3835_v2 = vadd.f32 %v10070_v58, %v3659_v62  ;;  %v3866_v7 = vmax.f32 %v3834_v56, 0.0  ;;  %v4348_v20 = vld [vmem:[#allocation3 + $0x122] ss:$2 sm:$0xff]  ;;  %v9167_v41 = vld [vmem:[#allocation6 + $0xe8] sm:$0xff]  }
 0x39d   : > { %v3869_v6 = vmax.f32 %v3837_v52, 0.0  ;;  %v9165_v34 = vld [vmem:[#allocation6 + $0xd8] sm:$0xff]   ;;  %v9166_v40 = vld [vmem:[#allocation6 + $0xe0] sm:$0xff]   ;;  %v9168_v46 = vld [vmem:[#allocation6 + $0xf0] sm:$0xff]  }
 0x39e   : > { %v3867_v8 = vmax.f32 %v3835_v2, 0.0  ;;  %8338 = vmatpush3.bf16.msra.mxu1 %v9152_v29  ;;  %v4509_v29 = vld [vmem:[#allocation3 + $0x18] ss:$2 sm:$0xff]  ;;  %v9169_v48 = vld [vmem:[#allocation6 + $0xf8] sm:$0xff]   ;;  %v9170_v49 = vld [vmem:[#allocation6 + $0x100] sm:$0xff]  }
 0x39f   : > { %v3885_v9 = vpack.c.bf16 %v3869_v6, %v3868_v3  ;;  %8339 = vmatprep.subr.bf16.mxu1 %v9153_v63  ;;  %v4524_v35 = vpack.c.bf16 %v4511_v13, %v4509_v29  ;;  %v4515_v53 = vld [vmem:[#allocation3 + $0xa8] ss:$2 sm:$0xff]  ;;  %v4513_v57 = vld [vmem:[#allocation3 + $0x78] ss:$2 sm:$0xff] }
 0x3a0   : > { %v3884_v17 = vpack.c.bf16 %v3867_v8, %v3866_v7  ;;  %v4519_v56 = vld [vmem:[#allocation3 + $0x108] ss:$2 sm:$0xff]  ;;  %v4525_v52 = vpack.c.bf16 %v4515_v53, %v4513_v57  ;;  %v4517_v62 = vld [vmem:[#allocation3 + $0xd8] ss:$2 sm:$0xff]  ;;  %v4685_v7 = vld [vmem:[#allocation3 + $0x49] ss:$2 sm:$0xff] }
 0x3a1   : > { %v3970_v27 = vunpack.c.l.bf16 %v3885_v9  ;;  %v3971_v37 = vunpack.c.h.bf16 %v3885_v9  ;;  %v4526_v2 = vpack.c.bf16 %v4519_v56, %v4517_v62  ;;  %v9172_v3 = vld [vmem:[#allocation6 + $0x110] sm:$0xff]   ;;  %v9179_v15 = vld [vmem:[#allocation6 + $0x148] sm:$0xff]   ;;  %v9181_v30 = vld [vmem:[#allocation6 + $0x158] sm:$0xff]  }
 0x3a2   : > { %v3968_v54 = vunpack.c.l.bf16 %v3884_v17  ;;  %v3969_v1 = vunpack.c.h.bf16 %v3884_v17  ;;  %v4019_v11 = vld [vmem:[#allocation3 + $0x150] ss:$2 sm:$0xff]  ;;  %8340 = vmatpush3.bf16.msra.mxu1 %v9153_v63  ;;  %v4176_v26 = vld [vmem:[#allocation3 + $0x151] ss:$2 sm:$0xff]  ;;  %v9173_v17 = vld [vmem:[#allocation6 + $0x118] sm:$0xff]  }
 0x3a3   : > { %4003 = vst [vmem:[#allocation3 + $0x181] sm:$0xff] %v3970_v27  ;;  %4004 = vst [vmem:[#allocation3 + $0x189] sm:$0xff] %v3971_v37  ;;  %v4023_v58 = vpack.c.bf16 %v4019_v11, %v4017_v10  ;;  %8349 = vmatprep.subr.bf16.mxu1 %v9154_v28  ;;  %v4180_v33 = vpack.c.bf16 %v4176_v26, %v4174_v32  ;;  %v4350_v12 = vld [vmem:[#allocation3 + $0x152] ss:$2 sm:$0xff]  ;;  %v4689_v10 = vld [vmem:[#allocation3 + $0xa9] ss:$2 sm:$0xff] }
 0x3a4   : > { %4001 = vst [vmem:[#allocation3 + $0x169] sm:$0xff] %v3968_v54  ;;  %4002 = vst [vmem:[#allocation3 + $0x171] sm:$0xff] %v3969_v1  ;;  %v4354_v22 = vpack.c.bf16 %v4350_v12, %v4348_v20  ;;  %v9171_v63 = vld [vmem:[#allocation6 + $0x108] sm:$0xff]   ;;  %v9174_v37 = vld [vmem:[#allocation6 + $0x120] sm:$0xff]  }
 0x3a5   : > { %8322 = vmatmul.mubr.bf16.gmra.mrb[4].mxu1 %v4023_v58  ;;  %v4521_v8 = vld [vmem:[#allocation3 + $0x138] ss:$2 sm:$0xff]  ;;  %v9177_v54 = vld [vmem:[#allocation6 + $0x138] sm:$0xff]   ;;  %v9178_v1 = vld [vmem:[#allocation6 + $0x140] sm:$0xff]  }
 0x3a6   : > { %8341 = vmatprep.mubr.bf16.mxu1 %v4177_v14  ;;  %v4693_v11 = vld [vmem:[#allocation3 + $0x109] ss:$2 sm:$0xff]  ;;  %v4687_v58 = vld [vmem:[#allocation3 + $0x79] ss:$2 sm:$0xff]  ;;  %v4857_v26 = vld [vmem:[#allocation3 + $0x1a] ss:$2 sm:$0xff] }
 0x3a7   : > { %v4699_v14 = vpack.c.bf16 %v4689_v10, %v4687_v58  ;;  %v4700_v16 = vpack.c.bf16 %v4693_v11, %v4691_v55  ;;  %v9182_v32 = vld [vmem:[#allocation6 + $0x160] sm:$0xff]   ;;  %v4865_v47 = vld [vmem:[#allocation3 + $0xda] ss:$2 sm:$0xff] }
 0x3a8   : > { %v9187_v51 = vld [vmem:[#allocation6 + $0x188] sm:$0xff]   ;;  %v9189_v13 = vld [vmem:[#allocation6 + $0x198] sm:$0xff]  }
 0x3a9   : > { %v5031_v12 = vld [vmem:[#allocation3 + $0x30] ss:$2 sm:$0xff]  ;;  %v5213_v10 = vld [vmem:[#allocation3 + $0xf1] ss:$2 sm:$0xff] }
 0x3aa   : > { %v9191_v29 = vld [vmem:[#allocation6 + $0x1a8] sm:$0xff]   ;;  %v5045_v62 = vld [vmem:[#allocation3 + $0x180] ss:$2 sm:$0xff]  ;;  %v5219_v55 = vld [vmem:[#allocation3 + $0x181] ss:$2 sm:$0xff] }
 0x3ab   : > { %v4523_v6 = vld [vmem:[#allocation3 + $0x168] ss:$2 sm:$0xff]  ;;  %v4697_v19 = vld [vmem:[#allocation3 + $0x169] ss:$2 sm:$0xff]  ;;  %v9195_v56 = vld [vmem:[#allocation6 + $0x1c8] sm:$0xff]  }
 0x3ac   : > { %v4527_v9 = vpack.c.bf16 %v4523_v6, %v4521_v8  ;;  %v4871_v60 = vld [vmem:[#allocation3 + $0x16a] ss:$2 sm:$0xff]  ;;  %v5205_v6 = vld [vmem:[#allocation3 + $0x31] ss:$2 sm:$0xff] }
 0x3ad   : > { %8342 = vmatmul.mubr.bf16.vlgmr.msra.gmra.mrb[0].mxu1 %v4178_v18  ;;  %v9180_v18 = vld [vmem:[#allocation6 + $0x150] sm:$0xff]   ;;  %v5039_v53 = vld [vmem:[#allocation3 + $0xf0] ss:$2 sm:$0xff] }
 0x3ae   : > { %8350 = vmatpush3.bf16.msra.mxu1 %v9154_v28  ;;  %8345 = vmatprep.mubr.bf16.mxu1 %v4179_v23  ;;  %v4683_v28 = vld [vmem:[#allocation3 + $0x19] ss:$2 sm:$0xff] }
 0x3af   : > { %8351 = vmatprep.subr.bf16.mxu1 %v9155_v21  ;;  %v4698_v27 = vpack.c.bf16 %v4685_v7, %v4683_v28  ;;  %v4695_v23 = vld [vmem:[#allocation3 + $0x139] ss:$2 sm:$0xff]  ;;  %v9197_v7 = vld [vmem:[#allocation6 + $0x1d8] sm:$0xff]  }
 0x3b0   : > { %v9199_v28 = vld [vmem:[#allocation6 + $0x1e8] sm:$0xff]  }
 0x3b1   : > { %v9203_v11 = vld [vmem:[#allocation6 + $0x208] sm:$0xff]  }
 0x3b2   : > { %8352 = vmatpush3.bf16.msra.mxu1 %v9155_v21  ;;  %v4859_v21 = vld [vmem:[#allocation3 + $0x4a] ss:$2 sm:$0xff] }
 0x3b3   : > { %8353 = vmatprep.subr.bf16.mxu1 %v9156_v24  ;;  %v4872_v31 = vpack.c.bf16 %v4859_v21, %v4857_v26  ;;  %v9205_v21 = vld [vmem:[#allocation6 + $0x218] sm:$0xff]   ;;  %v9207_v26 = vld [vmem:[#allocation6 + $0x228] sm:$0xff]  }
 0x3b5   : > { %8346 = vmatmul.mubr.bf16.gmra.mrb[4].mxu1 %v4180_v33  ;;  %v9183_v33 = vld [vmem:[#allocation6 + $0x168] sm:$0xff]  }
 0x3b6   : > { %8354 = vmatpush3.bf16.msra.mxu1 %v9156_v24  ;;  %8365 = vmatprep.mubr.bf16.mxu1 %v4351_v38  ;;  %v4701_v24 = vpack.c.bf16 %v4697_v19, %v4695_v23  ;;  %v9185_v38 = vld [vmem:[#allocation6 + $0x178] sm:$0xff]   ;;  %v5379_v19 = vld [vmem:[#allocation3 + $0x32] ss:$2 sm:$0xff] }
 0x3b7   : > { %8355 = vmatprep.subr.bf16.mxu1 %v9157_v36 }
 0x3ba   : > { %8356 = vmatpush3.bf16.msra.mxu1 %v9157_v36  ;;  %v9184_v36 = vld [vmem:[#allocation6 + $0x170] sm:$0xff]  }
 0x3bb   : > { %8357 = vmatprep.subr.bf16.mxu1 %v9158_v42 }
 0x3be   : > { %8358 = vmatpush3.bf16.msra.mxu1 %v9158_v42  ;;  %v9186_v42 = vld [vmem:[#allocation6 + $0x180] sm:$0xff]  }
 0x3bf   : > { %8359 = vmatprep.subr.bf16.mxu1 %v9159_v43 }
 0x3c2   : > { %8360 = vmatpush3.bf16.msra.mxu1 %v9159_v43  ;;  %v4863_v43 = vld [vmem:[#allocation3 + $0xaa] ss:$2 sm:$0xff] }
 0x3c3   : > { %8361 = vmatprep.subr.bf16.mxu1 %v9160_v44 }
 0x3c6   : > { %8362 = vmatpush3.bf16.msra.mxu1 %v9160_v44  ;;  %v4867_v44 = vld [vmem:[#allocation3 + $0x10a] ss:$2 sm:$0xff] }
 0x3c7   : > { %8363 = vmatprep.subr.bf16.mxu1 %v9161_v45  ;;  %v4874_v59 = vpack.c.bf16 %v4867_v44, %v4865_v47 }
 0x3ca   : > { %8364 = vmatpush3.bf16.msra.mxu1 %v9161_v45  ;;  %v4861_v45 = vld [vmem:[#allocation3 + $0x7a] ss:$2 sm:$0xff] }
 0x3cb   : > { %8373 = vmatprep.subr.bf16.mxu1 %v9162_v25 }
 0x3cd   : > { %8366 = vmatmul.mubr.bf16.vlgmr.msra.gmra.mrb[0].mxu1 %v4352_v0  ;;  %v9188_v0 = vld [vmem:[#allocation6 + $0x190] sm:$0xff]  }
 0x3ce   : > { %8369 = vmatprep.mubr.bf16.mxu1 %v4353_v4  ;;  %8374 = vmatpush3.bf16.msra.mxu1 %v9162_v25  ;;  %v4873_v25 = vpack.c.bf16 %v4863_v43, %v4861_v45  ;;  %v4869_v4 = vld [vmem:[#allocation3 + $0x13a] ss:$2 sm:$0xff] }
 0x3cf   : > { %8375 = vmatprep.subr.bf16.mxu1 %v9163_v61  ;;  %v10105_v43 = vld [vmem:[#allocation3 + $0x198] sm:$0xff]  ;;  %v5393_v45 = vld [vmem:[#allocation3 + $0x182] ss:$2 sm:$0xff] }
 0x3d2   : > { %8376 = vmatpush3.bf16.msra.mxu1 %v9163_v61  ;;  %v5033_v61 = vld [vmem:[#allocation3 + $0x60] ss:$2 sm:$0xff] }
 0x3d3   : > { %8377 = vmatprep.subr.bf16.mxu1 %v9164_v5  ;;  %v5046_v20 = vpack.c.bf16 %v5033_v61, %v5031_v12  ;;  %v9214_v61 = vld [vmem:[#allocation8 + $0x20] sm:$0xff]   ;;  %v9217_v12 = vld [vmem:[#allocation8 + $0x38] sm:$0xff]  }
 0x3d5   : > { %8370 = vmatmul.mubr.bf16.gmra.mrb[4].mxu1 %v4354_v22  ;;  %v9190_v22 = vld [vmem:[#allocation6 + $0x1a0] sm:$0xff]  }
 0x3d6   : > { %8378 = vmatpush3.bf16.msra.mxu1 %v9164_v5  ;;  %8389 = vmatprep.mubr.bf16.mxu1 %v4524_v35  ;;  %v4875_v5 = vpack.c.bf16 %v4871_v60, %v4869_v4  ;;  %v9193_v35 = vld [vmem:[#allocation6 + $0x1b8] sm:$0xff]   ;;  %v9215_v4 = vld [vmem:[#allocation8 + $0x28] sm:$0xff]  }
 0x3d7   : > { %8379 = vmatprep.subr.bf16.mxu1 %v9165_v34  ;;  %v9213_v60 = vld [vmem:[#allocation8 + $0x18] sm:$0xff]  }
 0x3da   : > { %8380 = vmatpush3.bf16.msra.mxu1 %v9165_v34  ;;  %v9192_v34 = vld [vmem:[#allocation6 + $0x1b0] sm:$0xff]  }
 0x3db   : > { %8381 = vmatprep.subr.bf16.mxu1 %v9166_v40 }
 0x3de   : > { %8382 = vmatpush3.bf16.msra.mxu1 %v9166_v40  ;;  %v9194_v40 = vld [vmem:[#allocation6 + $0x1c0] sm:$0xff]  }
 0x3df   : > { %8383 = vmatprep.subr.bf16.mxu1 %v9167_v41 }
 0x3e2   : > { %8384 = vmatpush3.bf16.msra.mxu1 %v9167_v41  ;;  %v5037_v41 = vld [vmem:[#allocation3 + $0xc0] ss:$2 sm:$0xff] }
 0x3e3   : > { %8385 = vmatprep.subr.bf16.mxu1 %v9168_v46 }
 0x3e6   : > { %8386 = vmatpush3.bf16.msra.mxu1 %v9168_v46  ;;  %v5041_v46 = vld [vmem:[#allocation3 + $0x120] ss:$2 sm:$0xff] }
 0x3e7   : > { %8387 = vmatprep.subr.bf16.mxu1 %v9169_v48  ;;  %v5048_v57 = vpack.c.bf16 %v5041_v46, %v5039_v53 }
 0x3ea   : > { %8388 = vmatpush3.bf16.msra.mxu1 %v9169_v48  ;;  %v5035_v48 = vld [vmem:[#allocation3 + $0x90] ss:$2 sm:$0xff] }
 0x3eb   : > { %8397 = vmatprep.subr.bf16.mxu1 %v9170_v49 }
 0x3ed   : > { %8390 = vmatmul.mubr.bf16.vlgmr.msra.gmra.mrb[0].mxu1 %v4525_v52  ;;  %v9196_v52 = vld [vmem:[#allocation6 + $0x1d0] sm:$0xff]  }
 0x3ee   : > { %8393 = vmatprep.mubr.bf16.mxu1 %v4526_v2  ;;  %8398 = vmatpush3.bf16.msra.mxu1 %v9170_v49  ;;  %v5047_v49 = vpack.c.bf16 %v5037_v41, %v5035_v48  ;;  %v5043_v2 = vld [vmem:[#allocation3 + $0x150] ss:$2 sm:$0xff] }
 0x3ef   : > { %8399 = vmatprep.subr.bf16.mxu1 %v9171_v63 }
 0x3f2   : > { %8400 = vmatpush3.bf16.msra.mxu1 %v9171_v63  ;;  %v5207_v63 = vld [vmem:[#allocation3 + $0x61] ss:$2 sm:$0xff] }
 0x3f3   : > { %8401 = vmatprep.subr.bf16.mxu1 %v9172_v3  ;;  %v5220_v8 = vpack.c.bf16 %v5207_v63, %v5205_v6 }
 0x3f5   : > { %8394 = vmatmul.mubr.bf16.gmra.mrb[4].mxu1 %v4527_v9  ;;  %v9198_v9 = vld [vmem:[#allocation6 + $0x1e0] sm:$0xff]  }
 0x3f6   : > { %8402 = vmatpush3.bf16.msra.mxu1 %v9172_v3  ;;  %8413 = vmatprep.mubr.bf16.mxu1 %v4698_v27  ;;  %v5049_v3 = vpack.c.bf16 %v5045_v62, %v5043_v2  ;;  %v9201_v27 = vld [vmem:[#allocation6 + $0x1f8] sm:$0xff]  }
 0x3f7   : > { %8403 = vmatprep.subr.bf16.mxu1 %v9173_v17 }
 0x3fa   : > { %8404 = vmatpush3.bf16.msra.mxu1 %v9173_v17  ;;  %v9200_v17 = vld [vmem:[#allocation6 + $0x1f0] sm:$0xff]  }
 0x3fb   : > { %8405 = vmatprep.subr.bf16.mxu1 %v9174_v37 }
 0x3fe   : > { %8406 = vmatpush3.bf16.msra.mxu1 %v9174_v37  ;;  %v9202_v37 = vld [vmem:[#allocation6 + $0x200] sm:$0xff]  }
 0x3ff   : > { %8407 = vmatprep.subr.bf16.mxu1 %v9175_v39 }
 0x402   : > { %8408 = vmatpush3.bf16.msra.mxu1 %v9175_v39  ;;  %v5211_v39 = vld [vmem:[#allocation3 + $0xc1] ss:$2 sm:$0xff] }
 0x403   : > { %8409 = vmatprep.subr.bf16.mxu1 %v9176_v50 }
 0x406   : > { %8410 = vmatpush3.bf16.msra.mxu1 %v9176_v50  ;;  %v5215_v50 = vld [vmem:[#allocation3 + $0x121] ss:$2 sm:$0xff] }
 0x407   : > { %8411 = vmatprep.subr.bf16.mxu1 %v9177_v54  ;;  %v5222_v58 = vpack.c.bf16 %v5215_v50, %v5213_v10 }
 0x40a   : > { %8412 = vmatpush3.bf16.msra.mxu1 %v9177_v54  ;;  %v5209_v54 = vld [vmem:[#allocation3 + $0x91] ss:$2 sm:$0xff] }
 0x40b   : > { %8421 = vmatprep.subr.bf16.mxu1 %v9178_v1 }
 0x40d   : > { %8414 = vmatmul.mubr.bf16.vlgmr.msra.gmra.mrb[0].mxu1 %v4699_v14  ;;  %v9204_v14 = vld [vmem:[#allocation6 + $0x210] sm:$0xff]  }
 0x40e   : > { %8417 = vmatprep.mubr.bf16.mxu1 %v4700_v16  ;;  %8422 = vmatpush3.bf16.msra.mxu1 %v9178_v1  ;;  %v5221_v1 = vpack.c.bf16 %v5211_v39, %v5209_v54  ;;  %v5217_v16 = vld [vmem:[#allocation3 + $0x151] ss:$2 sm:$0xff] }
 0x40f   : > { %8423 = vmatprep.subr.bf16.mxu1 %v9179_v15 }
 0x412   : > { %8424 = vmatpush3.bf16.msra.mxu1 %v9179_v15  ;;  %v5381_v15 = vld [vmem:[#allocation3 + $0x62] ss:$2 sm:$0xff] }
 0x413   : > { %8425 = vmatprep.subr.bf16.mxu1 %v9180_v18  ;;  %v5394_v23 = vpack.c.bf16 %v5381_v15, %v5379_v19 }
 0x415   : > { %8418 = vmatmul.mubr.bf16.gmra.mrb[4].mxu1 %v4701_v24  ;;  %v9206_v24 = vld [vmem:[#allocation6 + $0x220] sm:$0xff]  }
 0x416   : > { %8426 = vmatpush3.bf16.msra.mxu1 %v9180_v18  ;;  %8437 = vmatprep.mubr.bf16.mxu1 %v4872_v31  ;;  %v5223_v18 = vpack.c.bf16 %v5219_v55, %v5217_v16  ;;  %v9209_v31 = vld [vmem:[#allocation6 + $0x238] sm:$0xff]  }
 0x417   : > { %8427 = vmatprep.subr.bf16.mxu1 %v9181_v30 }
 0x41a   : > { %8428 = vmatpush3.bf16.msra.mxu1 %v9181_v30  ;;  %v9208_v30 = vld [vmem:[#allocation6 + $0x230] sm:$0xff]  }
 0x41b   : > { %8429 = vmatprep.subr.bf16.mxu1 %v9182_v32 }
 0x41e   : > { %8430 = vmatpush3.bf16.msra.mxu1 %v9182_v32  ;;  %v5385_v32 = vld [vmem:[#allocation3 + $0xc2] ss:$2 sm:$0xff] }
 0x41f   : > { %8431 = vmatprep.subr.bf16.mxu1 %v9183_v33 }
 0x422   : > { %8432 = vmatpush3.bf16.msra.mxu1 %v9183_v33  ;;  %v5389_v33 = vld [vmem:[#allocation3 + $0x122] ss:$2 sm:$0xff] }
 0x423   : > { %8433 = vmatprep.subr.bf16.mxu1 %v9184_v36 }
 0x426   : > { %8434 = vmatpush3.bf16.msra.mxu1 %v9184_v36  ;;  %v5383_v36 = vld [vmem:[#allocation3 + $0x92] ss:$2 sm:$0xff] }
 0x427   : > { %8435 = vmatprep.subr.bf16.mxu1 %v9185_v38 }
 0x42a   : > { %8436 = vmatpush3.bf16.msra.mxu1 %v9185_v38  ;;  %v5395_v38 = vpack.c.bf16 %v5385_v32, %v5383_v36 }
 0x42b   : > { %8445 = vmatprep.subr.bf16.mxu1 %v9186_v42 }
 0x42d   : > { %8438 = vmatmul.mubr.bf16.vlgmr.msra.gmra.mrb[0].mxu1 %v4873_v25  ;;  %v5391_v25 = vld [vmem:[#allocation3 + $0x152] ss:$2 sm:$0xff] }
 0x42e   : > { %8441 = vmatprep.mubr.bf16.mxu1 %v4874_v59  ;;  %8446 = vmatpush3.bf16.msra.mxu1 %v9186_v42  ;;  %v5387_v42 = vld [vmem:[#allocation3 + $0xf2] ss:$2 sm:$0xff]  ;;  %v5397_v47 = vpack.c.bf16 %v5393_v45, %v5391_v25 }
 0x42f   : > { %8447 = vmatprep.subr.bf16.mxu1 %v9187_v51  ;;  %v5396_v44 = vpack.c.bf16 %v5389_v33, %v5387_v42  ;;  %v9211_v59 = vld [vmem:[#allocation8 + $0x8] sm:$0xff]  }
 0x430   : > { %v9219_v25 = vld [vmem:[#allocation8 + $0x48] sm:$0xff]  }
 0x432   : > { %8448 = vmatpush3.bf16.msra.mxu1 %v9187_v51  ;;  %v9210_v51 = vld [vmem:[#allocation8] sm:$0xff]  }
 0x433   : > { %8449 = vmatprep.subr.bf16.mxu1 %v9188_v0 }
 0x435   : > { %8442 = vmatmul.mubr.bf16.gmra.mrb[4].mxu1 %v4875_v5  ;;  %v9216_v5 = vld [vmem:[#allocation8 + $0x30] sm:$0xff]  }
 0x436   : > { %8450 = vmatpush3.bf16.msra.mxu1 %v9188_v0  ;;  %8461 = vmatprep.mubr.bf16.mxu1 %v5046_v20  ;;  %v9212_v0 = vld [vmem:[#allocation8 + $0x10] sm:$0xff]  }
 0x437   : > { %8451 = vmatprep.subr.bf16.mxu1 %v9189_v13 }
 0x43a   : > { %8452 = vmatpush3.bf16.msra.mxu1 %v9189_v13  ;;  %v7283_v13 = vld [vmem:[%s10225_s5] ss:$0 sm:$0xff] }
 0x43b   : > { %8453 = vmatprep.subr.bf16.mxu1 %v9190_v22 }
 0x43e   : > { %8454 = vmatpush3.bf16.msra.mxu1 %v9190_v22 }
 0x43f   : > { %8455 = vmatprep.subr.bf16.mxu1 %v9191_v29 }
 0x442   : > { %8456 = vmatpush3.bf16.msra.mxu1 %v9191_v29 }
 0x443   : > { %8457 = vmatprep.subr.bf16.mxu1 %v9192_v34 }
 0x446   : > { %8458 = vmatpush3.bf16.msra.mxu1 %v9192_v34 }
 0x447   : > { %8459 = vmatprep.subr.bf16.mxu1 %v9193_v35 }
 0x44a   : > { %8460 = vmatpush3.bf16.msra.mxu1 %v9193_v35 }
 0x44b   : > { %8469 = vmatprep.subr.bf16.mxu1 %v9194_v40 }
 0x44d   : > { %8462 = vmatmul.mubr.bf16.vlgmr.msra.gmra.mrb[0].mxu1 %v5047_v49 }
 0x44e   : > { %8465 = vmatprep.mubr.bf16.mxu1 %v5048_v57  ;;  %8470 = vmatpush3.bf16.msra.mxu1 %v9194_v40 }
 0x44f   : > { %8471 = vmatprep.subr.bf16.mxu1 %v9195_v56 }
 0x452   : > { %8472 = vmatpush3.bf16.msra.mxu1 %v9195_v56 }
 0x453   : > { %8473 = vmatprep.subr.bf16.mxu1 %v9196_v52 }
 0x455   : > { %8466 = vmatmul.mubr.bf16.gmra.mrb[4].mxu1 %v5049_v3 }
 0x456   : > { %8474 = vmatpush3.bf16.msra.mxu1 %v9196_v52  ;;  %8485 = vmatprep.mubr.bf16.mxu1 %v5220_v8 }
 0x457   : > { %8475 = vmatprep.subr.bf16.mxu1 %v9197_v7 }
 0x45a   : > { %8476 = vmatpush3.bf16.msra.mxu1 %v9197_v7 }
 0x45b   : > { %8477 = vmatprep.subr.bf16.mxu1 %v9198_v9 }
 0x45e   : > { %8478 = vmatpush3.bf16.msra.mxu1 %v9198_v9 }
 0x45f   : > { %8479 = vmatprep.subr.bf16.mxu1 %v9199_v28 }
 0x462   : > { %8480 = vmatpush3.bf16.msra.mxu1 %v9199_v28 }
 0x463   : > { %8481 = vmatprep.subr.bf16.mxu1 %v9200_v17 }
 0x466   : > { %8482 = vmatpush3.bf16.msra.mxu1 %v9200_v17 }
 0x467   : > { %8483 = vmatprep.subr.bf16.mxu1 %v9201_v27 }
 0x46a   : > { %8484 = vmatpush3.bf16.msra.mxu1 %v9201_v27 }
 0x46b   : > { %8493 = vmatprep.subr.bf16.mxu1 %v9202_v37 }
 0x46d   : > { %8486 = vmatmul.mubr.bf16.vlgmr.msra.gmra.mrb[0].mxu1 %v5221_v1 }
 0x46e   : > { %8489 = vmatprep.mubr.bf16.mxu1 %v5222_v58  ;;  %8494 = vmatpush3.bf16.msra.mxu1 %v9202_v37 }
 0x46f   : > { %8495 = vmatprep.subr.bf16.mxu1 %v9203_v11 }
 0x472   : > { %8496 = vmatpush3.bf16.msra.mxu1 %v9203_v11 }
 0x473   : > { %8497 = vmatprep.subr.bf16.mxu1 %v9204_v14 }
 0x475   : > { %8490 = vmatmul.mubr.bf16.gmra.mrb[4].mxu1 %v5223_v18 }
 0x476   : > { %8498 = vmatpush3.bf16.msra.mxu1 %v9204_v14  ;;  %8509 = vmatprep.mubr.bf16.mxu1 %v5394_v23 }
 0x477   : > { %8499 = vmatprep.subr.bf16.mxu1 %v9205_v21 }
 0x47a   : > { %8500 = vmatpush3.bf16.msra.mxu1 %v9205_v21 }
 0x47b   : > { %8501 = vmatprep.subr.bf16.mxu1 %v9206_v24 }
 0x47e   : > { %8502 = vmatpush3.bf16.msra.mxu1 %v9206_v24 }
 0x47f   : > { %8503 = vmatprep.subr.bf16.mxu1 %v9207_v26 }
 0x482   : > { %8504 = vmatpush3.bf16.msra.mxu1 %v9207_v26 }
 0x483   : > { %8505 = vmatprep.subr.bf16.mxu1 %v9208_v30 }
 0x486   : > { %8506 = vmatpush3.bf16.msra.mxu1 %v9208_v30 }
 0x487   : > { %8507 = vmatprep.subr.bf16.mxu1 %v9209_v31 }
 0x48a   : > { %8508 = vmatpush3.bf16.msra.mxu1 %v9209_v31  ;;  %v5636_v31 = vld [vmem:[#allocation4] ss:$2 sm:$0xf] }
 0x48b   : > { %8517 = vmatprep.subr.bf16.mxu1 %v10105_v43 }
 0x48d   : > { %8510 = vmatmul.mubr.bf16.vlgmr.msra.gmra.mrb[0].mxu1 %v5395_v38 }
 0x48e   : > { %8513 = vmatprep.mubr.bf16.mxu1 %v5396_v44  ;;  %8518 = vmatpush3.bf16.msra.mxu1 %v9210_v51  ;;  %v9218_v44 = vld [vmem:[#allocation8 + $0x40] sm:$0xff]   ;;  %v9221_v51 = vld [vmem:[#allocation8 + $0x58] sm:$0xff]  }
 0x48f   : > { %8519 = vmatprep.subr.bf16.mxu1 %v10105_v43 }
 0x492   : > { %8520 = vmatpush3.bf16.msra.mxu1 %v9211_v59  ;;  %v9222_v59 = vld [vmem:[#allocation8 + $0x60] sm:$0xff]  }
 0x493   : > { %8521 = vmatprep.subr.bf16.mxu1 %v10105_v43 }
 0x495   : > { %8514 = vmatmul.mubr.bf16.gmra.mrb[4].mxu1 %v5397_v47  ;;  %v9220_v47 = vld [vmem:[#allocation8 + $0x50] sm:$0xff]  }
 0x496   : > { %8522 = vmatpush3.bf16.msra.mxu1 %v9212_v0  ;;  %8533 = vmatprep.mubr.msk.bf16.mxu1 %vm9362_vm0, %v10105_v43  ;;  %v9223_v0 = vld [vmem:[#allocation8 + $0x68] sm:$0xff]  }
 0x497   : > { %8523 = vmatprep.subr.bf16.mxu1 %v10105_v43 }
 0x49a   : > { %8524 = vmatpush3.bf16.msra.mxu1 %v9213_v60  ;;  %v9224_v60 = vld [vmem:[#allocation8 + $0x70] sm:$0xff]  }
 0x49b   : > { %8525 = vmatprep.subr.bf16.mxu1 %v10105_v43 }
 0x49e   : > { %8526 = vmatpush3.bf16.msra.mxu1 %v9214_v61 }
 0x49f   : > { %8527 = vmatprep.subr.bf16.mxu1 %v10105_v43 }
 0x4a2   : > { %8528 = vmatpush3.bf16.msra.mxu1 %v9215_v4  ;;  %v9225_v4 = vld [vmem:[#allocation8 + $0x78] sm:$0xff]  }
 0x4a3   : > { %8529 = vmatprep.subr.bf16.mxu1 %v10105_v43 }
 0x4a6   : > { %8530 = vmatpush3.bf16.msra.mxu1 %v9216_v5  ;;  %v5760_v5 = vld [vmem:[#allocation4 + $0x1] ss:$2 sm:$0xf] }
 0x4a7   : > { %8531 = vmatprep.subr.bf16.mxu1 %v10105_v43 }
 0x4aa   : > { %8532 = vmatpush3.bf16.msra.mxu1 %v9217_v12 }
 0x4ab   : > { %8537 = vmatprep.subr.bf16.mxu1 %v10105_v43 }
 0x560   : > { %v8511_v20 = vpop.f32.mrb[0].mxu1 }
 0x561   : > { %v5569_v22 = vadd.f32 %v8511_v20, %v7283_v13  ;;  %v5497_v29 = vpop.f32.mrb[1].mxu1 }
 0x562   : > { %v5567_v34 = vadd.f32 %v7283_v13, %v5497_v29  ;;  %v8512_v35 = vpop.f32.mrb[2].mxu1  ;;  %v9226_v29 = vld [vmem:[#allocation8 + $0x80] sm:$0xff]  }
 0x563   : > { %v5577_v40 = vmax.f32 %v5569_v22, 0.0  ;;  %v5570_v41 = vadd.f32 %v8512_v35, %v7283_v13  ;;  %v5500_v46 = vpop.f32.mrb[3].mxu1  ;;  %v9227_v35 = vld [vmem:[#allocation8 + $0x88] sm:$0xff]  }
 0x564   : > { %v5575_v48 = vmax.f32 %v5567_v34, 0.0  ;;  %v5568_v49 = vadd.f32 %v7283_v13, %v5500_v46  ;;  %v9230_v46 = vld [vmem:[#allocation8 + $0xa0] sm:$0xff]  }
 0x565   : > { %v5585_v53 = vpack.c.bf16 %v5577_v40, %v5577_v40  ;;  %v5578_v56 = vmax.f32 %v5570_v41, 0.0  ;;  %v9229_v41 = vld [vmem:[#allocation8 + $0x98] sm:$0xff]  }
 0x566   : > { %v5583_v57 = vpack.c.bf16 %v5575_v48, %v5575_v48  ;;  %v5576_v52 = vmax.f32 %v5568_v49, 0.0  ;;  %v9232_v49 = vld [vmem:[#allocation8 + $0xb0] sm:$0xff]  }
 0x567   : > { %v5621_v62 = vunpack.c.l.bf16 %v5585_v53  ;;  %v5586_v63 = vpack.c.bf16 %v5578_v56, %v5578_v56  ;;  %v7434_v2 = vpack.c.bf16 %v5578_v56, %v5577_v40  ;;  %v9228_v40 = vld [vmem:[#allocation8 + $0x90] sm:$0xff]   ;;  %v9233_v56 = vld [vmem:[#allocation8 + $0xb8] sm:$0xff]  }
 0x568   : > { %v5619_v3 = vunpack.c.l.bf16 %v5583_v57  ;;  %v5584_v6 = vpack.c.bf16 %v5576_v52, %v5576_v52  ;;  %v7429_v7 = vpack.c.bf16 %v5576_v52, %v5575_v48  ;;  %v8515_v8 = vpop.f32.mrb[4].mxu1  ;;  %v9231_v48 = vld [vmem:[#allocation8 + $0xa8] sm:$0xff]  }
 0x569   : > { %5630 = vst [vmem:[#allocation4 + $0x31] sm:$0xff] %v5621_v62  ;;  %7461 = vst [vmem:[%s10125_s17 + $0x8] sm:$0xff] %v7434_v2   ;;  %v5622_v9 = vunpack.c.l.bf16 %v5586_v63  ;;  %v5573_v28 = vadd.f32 %v8515_v8, %v7283_v13  ;;  %v5513_v17 = vpop.f32.mrb[5].mxu1  ;;  %v5889_v57 = vld [vmem:[#allocation4 + $0x2] ss:$2 sm:$0xf] }
 0x56a   : > { %5628 = vst [vmem:[#allocation4 + $0x11] sm:$0xff] %v5619_v3  ;;  %7430 = vst [vmem:[%s10125_s17] sm:$0xff] %v7429_v7   ;;  %v5620_v27 = vunpack.c.l.bf16 %v5584_v6  ;;  %v5571_v37 = vadd.f32 %v7283_v13, %v5513_v17  ;;  %v8516_v39 = vpop.f32.mrb[6].mxu1  ;;  %v9234_v3 = vld [vmem:[#allocation8 + $0xc0] sm:$0xff]   ;;  %v9235_v7 = vld [vmem:[#allocation8 + $0xc8] sm:$0xff]  }
 0x56b   : > { %5631 = vst [vmem:[#allocation4 + $0x41] sm:$0xff] %v5622_v9  ;;  %v5581_v50 = vmax.f32 %v5573_v28, 0.0  ;;  %v5574_v54 = vadd.f32 %v8516_v39, %v7283_v13  ;;  %v5516_v1 = vpop.f32.mrb[7].mxu1  ;;  %v9236_v8 = vld [vmem:[#allocation8 + $0xd0] sm:$0xff]   ;;  %v9237_v9 = vld [vmem:[#allocation8 + $0xd8] sm:$0xff]   ;;  %v9238_v28 = vld [vmem:[#allocation8 + $0xe0] sm:$0xff]  }
 0x56c   : > { %5629 = vst [vmem:[#allocation4 + $0x21] sm:$0xff] %v5620_v27  ;;  %v5579_v10 = vmax.f32 %v5571_v37, 0.0  ;;  %v5572_v11 = vadd.f32 %v7283_v13, %v5516_v1  ;;  %v9239_v17 = vld [vmem:[#allocation8 + $0xe8] sm:$0xff]   ;;  %v9240_v27 = vld [vmem:[#allocation8 + $0xf0] sm:$0xff]  }
 0x56d   : > { %v5589_v58 = vpack.c.bf16 %v5581_v50, %v5581_v50  ;;  %v5582_v14 = vmax.f32 %v5574_v54, 0.0 }
 0x56e   : > { %v5587_v55 = vpack.c.bf16 %v5579_v10, %v5579_v10  ;;  %v5580_v15 = vmax.f32 %v5572_v11, 0.0 }
 0x56f   : > { %v5625_v16 = vunpack.c.l.bf16 %v5589_v58  ;;  %v5590_v18 = vpack.c.bf16 %v5582_v14, %v5582_v14  ;;  %v7444_v19 = vpack.c.bf16 %v5582_v14, %v5581_v50  ;;  %v9241_v50 = vld [vmem:[#allocation8 + $0xf8] sm:$0xff]   ;;  %v9242_v58 = vld [vmem:[#allocation8 + $0x100] sm:$0xff]  }
 0x570   : > { %v5623_v21 = vunpack.c.l.bf16 %v5587_v55  ;;  %v5588_v23 = vpack.c.bf16 %v5580_v15, %v5580_v15  ;;  %v7439_v24 = vpack.c.bf16 %v5580_v15, %v5579_v10  ;;  %v6019_v1 = vld [vmem:[#allocation4 + $0x30] ss:$2 sm:$0xf]  ;;  %v9243_v55 = vld [vmem:[#allocation8 + $0x108] sm:$0xff]  }
 0x571   : > { %5634 = vst [vmem:[#allocation4 + $0x71] sm:$0xff] %v5625_v16  ;;  %7463 = vst [vmem:[%s10125_s17 + $0x18] sm:$0xff] %v7444_v19   ;;  %v5626_v26 = vunpack.c.l.bf16 %v5590_v18  ;;  %v6017_v54 = vld [vmem:[#allocation4 + $0x10] ss:$2 sm:$0xf]  ;;  %v9245_v16 = vld [vmem:[#allocation8 + $0x118] sm:$0xff]  }
 0x572   : > { %5632 = vst [vmem:[#allocation4 + $0x51] sm:$0xff] %v5623_v21  ;;  %7462 = vst [vmem:[%s10125_s17 + $0x10] sm:$0xff] %v7439_v24   ;;  %v5624_v30 = vunpack.c.l.bf16 %v5588_v23  ;;  %v5640_v33 = vld [vmem:[#allocation4 + $0x40] ss:$2 sm:$0xf]  ;;  %v6028_v11 = vcombine.low %v6017_v54, %v6019_v1  ;;  %v9244_v15 = vld [vmem:[#allocation8 + $0x110] sm:$0xff]  }
 0x573   : > { %5635 = vst [vmem:[#allocation4 + $0x81] sm:$0xff] %v5626_v26  ;;  %v5638_v32 = vld [vmem:[#allocation4 + $0x20] ss:$2 sm:$0xf]  ;;  %v9247_v19 = vld [vmem:[#allocation8 + $0x128] sm:$0xff]   ;;  %v9248_v21 = vld [vmem:[#allocation8 + $0x130] sm:$0xff]  }
 0x574   : > { %5633 = vst [vmem:[#allocation4 + $0x61] sm:$0xff] %v5624_v30  ;;  %v5647_v38 = vcombine.low %v5636_v31, %v5638_v32  ;;  %v5762_v12 = vld [vmem:[#allocation4 + $0x21] ss:$2 sm:$0xf]  ;;  %v9249_v30 = vld [vmem:[#allocation8 + $0x138] sm:$0xff]  }
 0x575   : > { %v5764_v13 = vld [vmem:[#allocation4 + $0x41] ss:$2 sm:$0xf]  ;;  %v5771_v22 = vcombine.low %v5760_v5, %v5762_v12  ;;  %v5891_v52 = vld [vmem:[#allocation4 + $0x22] ss:$2 sm:$0xf] }
 0x576   : > { %v5893_v62 = vld [vmem:[#allocation4 + $0x42] ss:$2 sm:$0xf]  ;;  %v5900_v2 = vcombine.low %v5889_v57, %v5891_v52  ;;  %v6148_v26 = vld [vmem:[#allocation4 + $0x31] ss:$2 sm:$0xf] }
 0x577   : > { %v9246_v18 = vld [vmem:[#allocation8 + $0x120] sm:$0xff]   ;;  %v6146_v31 = vld [vmem:[#allocation4 + $0x11] ss:$2 sm:$0xf]  ;;  %v9273_v1 = vld [vmem:[#allocation8 + $0x1f8] sm:$0xff]  }
 0x578   : > { %v6023_v39 = vld [vmem:[#allocation4 + $0x70] ss:$2 sm:$0xf]  ;;  %v6152_v24 = vld [vmem:[#allocation4 + $0x71] ss:$2 sm:$0xf] }
 0x579   : > { %v6021_v37 = vld [vmem:[#allocation4 + $0x50] ss:$2 sm:$0xf]  ;;  %v6150_v23 = vld [vmem:[#allocation4 + $0x51] ss:$2 sm:$0xf] }
 0x57a   : > { %v6029_v10 = vcombine.low %v6021_v37, %v6023_v39  ;;  %v6158_v32 = vcombine.low %v6150_v23, %v6152_v24  ;;  %v6533_v54 = vld [vmem:[#allocation4 + $0x21] ss:$2 sm:$0xf] }
 0x57b   : > { %v5642_v36 = vld [vmem:[#allocation4 + $0x60] ss:$2 sm:$0xf]  ;;  %v5766_v61 = vld [vmem:[#allocation4 + $0x61] ss:$2 sm:$0xf] }
 0x57c   : > { %v5648_v42 = vcombine.low %v5640_v33, %v5642_v36  ;;  %v5772_v20 = vcombine.low %v5764_v13, %v5766_v61  ;;  %v5895_v53 = vld [vmem:[#allocation4 + $0x62] ss:$2 sm:$0xf]  ;;  %v6032_v14 = vpack.c.bf16 %v6029_v10, %v6028_v11  ;;  %v6157_v33 = vcombine.low %v6146_v31, %v6148_v26  ;;  %v9257_v61 = vld [vmem:[#allocation8 + $0x178] sm:$0xff]   ;;  %v9280_v31 = vld [vmem:[#allocation8 + $0x230] sm:$0xff]  }
 0x57d   : > { %v5901_v63 = vcombine.low %v5893_v62, %v5895_v53  ;;  %v9250_v36 = vld [vmem:[#allocation8 + $0x140] sm:$0xff]   ;;  %v9265_v53 = vld [vmem:[#allocation8 + $0x1b8] sm:$0xff]  }
 0x57e   : > { %v5651_v45 = vpack.c.bf16 %v5648_v42, %v5647_v38  ;;  %v5775_v34 = vpack.c.bf16 %v5772_v20, %v5771_v22  ;;  %v6161_v38 = vpack.c.bf16 %v6158_v32, %v6157_v33  ;;  %v9251_v42 = vld [vmem:[#allocation8 + $0x148] sm:$0xff]   ;;  %v9258_v13 = vld [vmem:[#allocation8 + $0x180] sm:$0xff]  }
 0x57f   : > { %v5904_v6 = vpack.c.bf16 %v5901_v63, %v5900_v2  ;;  %v9259_v22 = vld [vmem:[#allocation8 + $0x188] sm:$0xff]   ;;  %v9266_v62 = vld [vmem:[#allocation8 + $0x1c0] sm:$0xff]  }
 0x580   : > { %8534 = vmatmul.mubr.bf16.vlgmr.msra.gmra.mrb[8].mxu1 %v5651_v45  ;;  %v9253_v45 = vld [vmem:[#allocation8 + $0x158] sm:$0xff]   ;;  %v9267_v2 = vld [vmem:[#allocation8 + $0x1c8] sm:$0xff]   ;;  %v6537_v39 = vld [vmem:[#allocation4 + $0x61] ss:$2 sm:$0xf] }
 0x581   : > { %8538 = vmatpush3.bf16.msra.mxu1 %v9218_v44  ;;  %8553 = vmatprep.mubr.msk.bf16.mxu1 %vm9362_vm0, %v10105_v43  ;;  %v9252_v44 = vld [vmem:[#allocation8 + $0x150] sm:$0xff]   ;;  %v6535_v10 = vld [vmem:[#allocation4 + $0x41] ss:$2 sm:$0xf] }
 0x582   : > { %8539 = vmatprep.subr.bf16.mxu1 %v10105_v43 }
 0x585   : > { %8540 = vmatpush3.bf16.msra.mxu1 %v9219_v25  ;;  %v9254_v25 = vld [vmem:[#allocation8 + $0x160] sm:$0xff]  }
 0x586   : > { %8541 = vmatprep.subr.bf16.mxu1 %v10105_v43 }
 0x589   : > { %8542 = vmatpush3.bf16.msra.mxu1 %v9220_v47  ;;  %v9255_v47 = vld [vmem:[#allocation8 + $0x168] sm:$0xff]  }
 0x58a   : > { %8543 = vmatprep.subr.bf16.mxu1 %v10105_v43 }
 0x58d   : > { %8544 = vmatpush3.bf16.msra.mxu1 %v9221_v51  ;;  %v9256_v51 = vld [vmem:[#allocation8 + $0x170] sm:$0xff]  }
 0x58e   : > { %8545 = vmatprep.subr.bf16.mxu1 %v10105_v43 }
 0x591   : > { %8546 = vmatpush3.bf16.msra.mxu1 %v9222_v59  ;;  %v6279_v59 = vld [vmem:[#allocation4 + $0x52] ss:$2 sm:$0xf] }
 0x592   : > { %8547 = vmatprep.subr.bf16.mxu1 %v10105_v43 }
 0x595   : > { %8548 = vmatpush3.bf16.msra.mxu1 %v9223_v0  ;;  %v6281_v0 = vld [vmem:[#allocation4 + $0x72] ss:$2 sm:$0xf] }
 0x596   : > { %8549 = vmatprep.subr.bf16.mxu1 %v10105_v43  ;;  %v6287_v5 = vcombine.low %v6279_v59, %v6281_v0 }
 0x599   : > { %8550 = vmatpush3.bf16.msra.mxu1 %v9224_v60  ;;  %v6275_v60 = vld [vmem:[#allocation4 + $0x12] ss:$2 sm:$0xf] }
 0x59a   : > { %8551 = vmatprep.subr.bf16.mxu1 %v10105_v43 }
 0x59d   : > { %8552 = vmatpush3.bf16.msra.mxu1 %v9225_v4  ;;  %v6277_v4 = vld [vmem:[#allocation4 + $0x32] ss:$2 sm:$0xf] }
 0x59e   : > { %8557 = vmatprep.subr.bf16.mxu1 %v10105_v43  ;;  %v6286_v12 = vcombine.low %v6275_v60, %v6277_v4 }
 0x5a0   : > { %8554 = vmatmul.mubr.bf16.vlgmr.msra.gmra.mrb[12].mxu1 %v5775_v34  ;;  %v6290_v20 = vpack.c.bf16 %v6287_v5, %v6286_v12  ;;  %v9261_v34 = vld [vmem:[#allocation8 + $0x198] sm:$0xff]  }
 0x5a1   : > { %8558 = vmatpush3.bf16.msra.mxu1 %v9226_v29  ;;  %8573 = vmatprep.mubr.msk.bf16.mxu1 %vm9362_vm0, %v10105_v43  ;;  %v9260_v29 = vld [vmem:[#allocation8 + $0x190] sm:$0xff]  }
 0x5a2   : > { %8559 = vmatprep.subr.bf16.mxu1 %v10105_v43 }
 0x5a5   : > { %8560 = vmatpush3.bf16.msra.mxu1 %v9227_v35  ;;  %v9262_v35 = vld [vmem:[#allocation8 + $0x1a0] sm:$0xff]  }
 0x5a6   : > { %8561 = vmatprep.subr.bf16.mxu1 %v10105_v43 }
 0x5a9   : > { %8562 = vmatpush3.bf16.msra.mxu1 %v9228_v40  ;;  %v9263_v40 = vld [vmem:[#allocation8 + $0x1a8] sm:$0xff]  }
 0x5aa   : > { %8563 = vmatprep.subr.bf16.mxu1 %v10105_v43 }
 0x5ad   : > { %8564 = vmatpush3.bf16.msra.mxu1 %v9229_v41  ;;  %v9264_v41 = vld [vmem:[#allocation8 + $0x1b0] sm:$0xff]  }
 0x5ae   : > { %8565 = vmatprep.subr.bf16.mxu1 %v10105_v43 }
 0x5b1   : > { %8566 = vmatpush3.bf16.msra.mxu1 %v9230_v46  ;;  %v6408_v46 = vld [vmem:[#allocation4 + $0x60] ss:$2 sm:$0xf] }
 0x5b2   : > { %8567 = vmatprep.subr.bf16.mxu1 %v10105_v43 }
 0x5b5   : > { %8568 = vmatpush3.bf16.msra.mxu1 %v9231_v48  ;;  %v6410_v48 = vld [vmem:[#allocation4 + $0x80] ss:$2 sm:$0xf] }
 0x5b6   : > { %8569 = vmatprep.subr.bf16.mxu1 %v10105_v43  ;;  %v6416_v57 = vcombine.low %v6408_v46, %v6410_v48 }
 0x5b9   : > { %8570 = vmatpush3.bf16.msra.mxu1 %v9232_v49  ;;  %v6404_v49 = vld [vmem:[#allocation4 + $0x20] ss:$2 sm:$0xf] }
 0x5ba   : > { %8571 = vmatprep.subr.bf16.mxu1 %v10105_v43 }
 0x5bd   : > { %8572 = vmatpush3.bf16.msra.mxu1 %v9233_v56  ;;  %v6406_v56 = vld [vmem:[#allocation4 + $0x40] ss:$2 sm:$0xf] }
 0x5be   : > { %8577 = vmatprep.subr.bf16.mxu1 %v10105_v43  ;;  %v6415_v52 = vcombine.low %v6404_v49, %v6406_v56 }
 0x5c0   : > { %8574 = vmatmul.mubr.bf16.vlgmr.msra.gmra.mrb[16].mxu1 %v5904_v6  ;;  %v6419_v63 = vpack.c.bf16 %v6416_v57, %v6415_v52  ;;  %v9269_v6 = vld [vmem:[#allocation8 + $0x1d8] sm:$0xff]  }
 0x5c1   : > { %8578 = vmatpush3.bf16.msra.mxu1 %v9234_v3  ;;  %8593 = vmatprep.mubr.msk.bf16.mxu1 %vm9362_vm0, %v10105_v43  ;;  %v9268_v3 = vld [vmem:[#allocation8 + $0x1d0] sm:$0xff]  }
 0x5c2   : > { %8579 = vmatprep.subr.bf16.mxu1 %v10105_v43 }
 0x5c5   : > { %8580 = vmatpush3.bf16.msra.mxu1 %v9235_v7  ;;  %v9270_v7 = vld [vmem:[#allocation8 + $0x1e0] sm:$0xff]  }
 0x5c6   : > { %8581 = vmatprep.subr.bf16.mxu1 %v10105_v43 }
 0x5c9   : > { %8582 = vmatpush3.bf16.msra.mxu1 %v9236_v8  ;;  %v9271_v8 = vld [vmem:[#allocation8 + $0x1e8] sm:$0xff]  }
 0x5ca   : > { %8583 = vmatprep.subr.bf16.mxu1 %v10105_v43 }
 0x5cd   : > { %8584 = vmatpush3.bf16.msra.mxu1 %v9237_v9 }
 0x5ce   : > { %8585 = vmatprep.subr.bf16.mxu1 %v10105_v43 }
 0x5d1   : > { %8586 = vmatpush3.bf16.msra.mxu1 %v9238_v28 }
 0x5d2   : > { %8587 = vmatprep.subr.bf16.mxu1 %v10105_v43 }
 0x5d5   : > { %8588 = vmatpush3.bf16.msra.mxu1 %v9239_v17 }
 0x5d6   : > { %8589 = vmatprep.subr.bf16.mxu1 %v10105_v43 }
 0x5d9   : > { %8590 = vmatpush3.bf16.msra.mxu1 %v9240_v27  ;;  %v9272_v27 = vld [vmem:[#allocation8 + $0x1f0] sm:$0xff]  }
 0x5da   : > { %8591 = vmatprep.subr.bf16.mxu1 %v10105_v43 }
 0x5dd   : > { %8592 = vmatpush3.bf16.msra.mxu1 %v9241_v50  ;;  %v6539_v50 = vld [vmem:[#allocation4 + $0x81] ss:$2 sm:$0xf] }
 0x5de   : > { %8597 = vmatprep.subr.bf16.mxu1 %v10105_v43  ;;  %v6545_v11 = vcombine.low %v6537_v39, %v6539_v50 }
 0x5e0   : > { %8594 = vmatmul.mubr.bf16.vlgmr.msra.gmra.mrb[20].mxu1 %v6032_v14  ;;  %v9274_v14 = vld [vmem:[#allocation8 + $0x200] sm:$0xff]  }
 0x5e1   : > { %8598 = vmatpush3.bf16.msra.mxu1 %v9242_v58  ;;  %8613 = vmatprep.mubr.msk.bf16.mxu1 %vm9362_vm0, %v10105_v43  ;;  %v6544_v58 = vcombine.low %v6533_v54, %v6535_v10  ;;  %v7356_v54 = vld [vmem:[%s10226_s6] ss:$0 sm:$0xff] }
 0x5e2   : > { %8599 = vmatprep.subr.bf16.mxu1 %v10105_v43 }
 0x5e5   : > { %8600 = vmatpush3.bf16.msra.mxu1 %v9243_v55  ;;  %v6548_v55 = vpack.c.bf16 %v6545_v11, %v6544_v58 }
 0x5e6   : > { %8601 = vmatprep.subr.bf16.mxu1 %v10105_v43 }
 0x5e9   : > { %8602 = vmatpush3.bf16.msra.mxu1 %v9244_v15  ;;  %v9275_v15 = vld [vmem:[#allocation8 + $0x208] sm:$0xff]  }
 0x5ea   : > { %8603 = vmatprep.subr.bf16.mxu1 %v10105_v43 }
 0x5ed   : > { %8604 = vmatpush3.bf16.msra.mxu1 %v9245_v16  ;;  %v9276_v16 = vld [vmem:[#allocation8 + $0x210] sm:$0xff]  }
 0x5ee   : > { %8605 = vmatprep.subr.bf16.mxu1 %v10105_v43 }
 0x5f1   : > { %8606 = vmatpush3.bf16.msra.mxu1 %v9246_v18  ;;  %v9277_v18 = vld [vmem:[#allocation8 + $0x218] sm:$0xff]  }
 0x5f2   : > { %8607 = vmatprep.subr.bf16.mxu1 %v10105_v43 }
 0x5f5   : > { %8608 = vmatpush3.bf16.msra.mxu1 %v9247_v19  ;;  %v9278_v19 = vld [vmem:[#allocation8 + $0x220] sm:$0xff]  }
 0x5f6   : > { %8609 = vmatprep.subr.bf16.mxu1 %v10105_v43 }
 0x5f9   : > { %8610 = vmatpush3.bf16.msra.mxu1 %v9248_v21  ;;  %v9279_v21 = vld [vmem:[#allocation8 + $0x228] sm:$0xff]  }
 0x5fa   : > { %8611 = vmatprep.subr.bf16.mxu1 %v10105_v43 }
 0x5fd   : > { %8612 = vmatpush3.bf16.msra.mxu1 %v9249_v30 }
 0x5fe   : > { %8617 = vmatprep.subr.bf16.mxu1 %v10105_v43 }
 0x600   : > { %8614 = vmatmul.mubr.bf16.vlgmr.msra.gmra.mrb[24].mxu1 %v6161_v38  ;;  %v6668_v38 = vld [vmem:[#allocation4 + $0x82] ss:$2 sm:$0xf] }
 0x601   : > { %8618 = vmatpush3.bf16.msra.mxu1 %v9250_v36  ;;  %8633 = vmatprep.mubr.msk.bf16.mxu1 %vm9362_vm0, %v10105_v43  ;;  %v6666_v36 = vld [vmem:[#allocation4 + $0x62] ss:$2 sm:$0xf] }
 0x602   : > { %8619 = vmatprep.subr.bf16.mxu1 %v10105_v43 }
 0x605   : > { %8620 = vmatpush3.bf16.msra.mxu1 %v9251_v42  ;;  %v6662_v42 = vld [vmem:[#allocation4 + $0x22] ss:$2 sm:$0xf] }
 0x606   : > { %8621 = vmatprep.subr.bf16.mxu1 %v10105_v43 }
 0x609   : > { %8622 = vmatpush3.bf16.msra.mxu1 %v9252_v44  ;;  %v9281_v44 = vld [vmem:[#allocation8 + $0x238] sm:$0xff]  }
 0x60a   : > { %8623 = vmatprep.subr.bf16.mxu1 %v10105_v43 }
 0x60d   : > { %8624 = vmatpush3.bf16.msra.mxu1 %v9253_v45  ;;  %v6664_v45 = vld [vmem:[#allocation4 + $0x42] ss:$2 sm:$0xf] }
 0x60e   : > { %8625 = vmatprep.subr.bf16.mxu1 %v10105_v43 }
 0x611   : > { %8626 = vmatpush3.bf16.msra.mxu1 %v9254_v25  ;;  %v6674_v25 = vcombine.low %v6666_v36, %v6668_v38 }
 0x612   : > { %8627 = vmatprep.subr.bf16.mxu1 %v10105_v43 }
 0x615   : > { %8628 = vmatpush3.bf16.msra.mxu1 %v9255_v47  ;;  %v6673_v47 = vcombine.low %v6662_v42, %v6664_v45 }
 0x616   : > { %8629 = vmatprep.subr.bf16.mxu1 %v10105_v43 }
 0x619   : > { %8630 = vmatpush3.bf16.msra.mxu1 %v9256_v51  ;;  %v6677_v51 = vpack.c.bf16 %v6674_v25, %v6673_v47 }
 0x61a   : > { %8631 = vmatprep.subr.bf16.mxu1 %v10105_v43 }
 0x61d   : > { %8632 = vmatpush3.bf16.msra.mxu1 %v9257_v61 }
 0x61e   : > { %8637 = vmatprep.subr.bf16.mxu1 %v10105_v43 }
 0x620   : > { %8634 = vmatmul.mubr.bf16.vlgmr.msra.gmra.mrb[28].mxu1 %v6290_v20 }
 0x621   : > { %8638 = vmatpush3.bf16.msra.mxu1 %v9258_v13  ;;  %8653 = vmatprep.mubr.msk.bf16.mxu1 %vm9362_vm0, %v10105_v43 }
 0x622   : > { %8639 = vmatprep.subr.bf16.mxu1 %v10105_v43 }
 0x625   : > { %8640 = vmatpush3.bf16.msra.mxu1 %v9259_v22 }
 0x626   : > { %8641 = vmatprep.subr.bf16.mxu1 %v10105_v43 }
 0x629   : > { %8642 = vmatpush3.bf16.msra.mxu1 %v9260_v29 }
 0x62a   : > { %8643 = vmatprep.subr.bf16.mxu1 %v10105_v43 }
 0x62d   : > { %8644 = vmatpush3.bf16.msra.mxu1 %v9261_v34 }
 0x62e   : > { %8645 = vmatprep.subr.bf16.mxu1 %v10105_v43 }
 0x631   : > { %8646 = vmatpush3.bf16.msra.mxu1 %v9262_v35 }
 0x632   : > { %8647 = vmatprep.subr.bf16.mxu1 %v10105_v43 }
 0x635   : > { %8648 = vmatpush3.bf16.msra.mxu1 %v9263_v40 }
 0x636   : > { %8649 = vmatprep.subr.bf16.mxu1 %v10105_v43 }
 0x639   : > { %8650 = vmatpush3.bf16.msra.mxu1 %v9264_v41 }
 0x63a   : > { %8651 = vmatprep.subr.bf16.mxu1 %v10105_v43 }
 0x63d   : > { %8652 = vmatpush3.bf16.msra.mxu1 %v9265_v53 }
 0x63e   : > { %8657 = vmatprep.subr.bf16.mxu1 %v10105_v43 }
 0x640   : > { %8654 = vmatmul.mubr.bf16.vlgmr.msra.gmra.mrb[32].mxu1 %v6419_v63 }
 0x641   : > { %8658 = vmatpush3.bf16.msra.mxu1 %v9266_v62  ;;  %8673 = vmatprep.mubr.msk.bf16.mxu1 %vm9362_vm0, %v10105_v43 }
 0x642   : > { %8659 = vmatprep.subr.bf16.mxu1 %v10105_v43 }
 0x645   : > { %8660 = vmatpush3.bf16.msra.mxu1 %v9267_v2 }
 0x646   : > { %8661 = vmatprep.subr.bf16.mxu1 %v10105_v43 }
 0x649   : > { %8662 = vmatpush3.bf16.msra.mxu1 %v9268_v3 }
 0x64a   : > { %8663 = vmatprep.subr.bf16.mxu1 %v10105_v43 }
 0x64d   : > { %8664 = vmatpush3.bf16.msra.mxu1 %v9269_v6 }
 0x64e   : > { %8665 = vmatprep.subr.bf16.mxu1 %v10105_v43 }
 0x651   : > { %8666 = vmatpush3.bf16.msra.mxu1 %v9270_v7 }
 0x652   : > { %8667 = vmatprep.subr.bf16.mxu1 %v10105_v43 }
 0x653   : > { %v5750_v9 = vpop.f32.mrb[8].mxu1 }
 0x654   : > { %v8535_v28 = vpop.f32.mrb[9].mxu1 }
 0x655   : > { %8668 = vmatpush3.bf16.msra.mxu1 %v9271_v8  ;;  %v5753_v17 = vpop.f32.mrb[10].mxu1 }
 0x656   : > { %v8536_v37 = vpop.f32.mrb[11].mxu1  ;;  %8669 = vmatprep.subr.bf16.mxu1 %v10105_v43 }
 0x659   : > { %8670 = vmatpush3.bf16.msra.mxu1 %v9272_v27 }
 0x65a   : > { %8671 = vmatprep.subr.bf16.mxu1 %v10105_v43 }
 0x65d   : > { %8672 = vmatpush3.bf16.msra.mxu1 %v9273_v1 }
 0x65e   : > { %8677 = vmatprep.subr.bf16.mxu1 %v10105_v43 }
 0x660   : > { %8674 = vmatmul.mubr.bf16.vlgmr.msra.gmra.mrb[36].mxu1 %v6548_v55 }
 0x661   : > { %8678 = vmatpush3.bf16.msra.mxu1 %v9274_v14  ;;  %8693 = vmatprep.mubr.msk.bf16.mxu1 %vm9362_vm0, %v10105_v43 }
 0x662   : > { %8679 = vmatprep.subr.bf16.mxu1 %v10105_v43 }
 0x665   : > { %8680 = vmatpush3.bf16.msra.mxu1 %v9275_v15 }
 0x666   : > { %8681 = vmatprep.subr.bf16.mxu1 %v10105_v43 }
 0x669   : > { %8682 = vmatpush3.bf16.msra.mxu1 %v9276_v16 }
 0x66a   : > { %8683 = vmatprep.subr.bf16.mxu1 %v10105_v43 }
 0x66d   : > { %8684 = vmatpush3.bf16.msra.mxu1 %v9277_v18 }
 0x66e   : > { %8685 = vmatprep.subr.bf16.mxu1 %v10105_v43 }
 0x671   : > { %8686 = vmatpush3.bf16.msra.mxu1 %v9278_v19 }
 0x672   : > { %8687 = vmatprep.subr.bf16.mxu1 %v10105_v43 }
 0x673   : > { %v5875_v23 = vpop.f32.mrb[12].mxu1 }
 0x674   : > { %v5884_v24 = vadd.f32 %v5875_v23, %v5750_v9  ;;  %v8555_v26 = vpop.f32.mrb[13].mxu1 }
 0x675   : > { %v5878_v30 = vpop.f32.mrb[14].mxu1  ;;  %8688 = vmatpush3.bf16.msra.mxu1 %v9279_v21 }
 0x676   : > { %v5885_v32 = vadd.f32 %v5878_v30, %v5753_v17  ;;  %v8556_v33 = vpop.f32.mrb[15].mxu1  ;;  %8689 = vmatprep.subr.bf16.mxu1 %v10105_v43 }
 0x679   : > { %8690 = vmatpush3.bf16.msra.mxu1 %v9280_v31 }
 0x67a   : > { %8691 = vmatprep.subr.bf16.mxu1 %v10105_v43 }
 0x67d   : > { %8692 = vmatpush3.bf16.msra.mxu1 %v9281_v44 }
 0x680   : > { %8694 = vmatmul.mubr.bf16.vlgmr.msra.gmra.mrb[40].mxu1 %v6677_v51 }
 0x693   : > { %v6004_v59 = vpop.f32.mrb[16].mxu1 }
 0x694   : > { %v6013_v0 = vadd.f32 %v6004_v59, %v5884_v24  ;;  %v8575_v60 = vpop.f32.mrb[17].mxu1 }
 0x695   : > { %v6007_v61 = vpop.f32.mrb[18].mxu1 }
 0x696   : > { %v6014_v4 = vadd.f32 %v6007_v61, %v5885_v32  ;;  %v8576_v5 = vpop.f32.mrb[19].mxu1 }
 0x6b3   : > { %v6132_v12 = vpop.f32.mrb[20].mxu1 }
 0x6b4   : > { %v6141_v13 = vadd.f32 %v6132_v12, %v6013_v0  ;;  %v8595_v20 = vpop.f32.mrb[21].mxu1 }
 0x6b5   : > { %v6135_v22 = vpop.f32.mrb[22].mxu1 }
 0x6b6   : > { %v6142_v29 = vadd.f32 %v6135_v22, %v6014_v4  ;;  %v8596_v34 = vpop.f32.mrb[23].mxu1 }
 0x6d3   : > { %v6261_v35 = vpop.f32.mrb[24].mxu1 }
 0x6d4   : > { %v6270_v40 = vadd.f32 %v6261_v35, %v6141_v13  ;;  %v8615_v43 = vpop.f32.mrb[25].mxu1 }
 0x6d5   : > { %v6264_v41 = vpop.f32.mrb[26].mxu1 }
 0x6d6   : > { %v6271_v46 = vadd.f32 %v6264_v41, %v6142_v29  ;;  %v8616_v48 = vpop.f32.mrb[27].mxu1 }
 0x6f3   : > { %v6390_v49 = vpop.f32.mrb[28].mxu1 }
 0x6f4   : > { %v6399_v53 = vadd.f32 %v6390_v49, %v6270_v40  ;;  %v8635_v56 = vpop.f32.mrb[29].mxu1 }
 0x6f5   : > { %v6393_v57 = vpop.f32.mrb[30].mxu1 }
 0x6f6   : > { %v6400_v52 = vadd.f32 %v6393_v57, %v6271_v46  ;;  %v8636_v62 = vpop.f32.mrb[31].mxu1 }
 0x713   : > { %v6519_v63 = vpop.f32.mrb[32].mxu1 }
 0x714   : > { %v6528_v2 = vadd.f32 %v6519_v63, %v6399_v53  ;;  %v8655_v3 = vpop.f32.mrb[33].mxu1 }
 0x715   : > { %v6522_v6 = vpop.f32.mrb[34].mxu1 }
 0x716   : > { %v6529_v7 = vadd.f32 %v6522_v6, %v6400_v52  ;;  %v8656_v8 = vpop.f32.mrb[35].mxu1 }
 0x733   : > { %v6648_v9 = vpop.f32.mrb[36].mxu1 }
 0x734   : > { %v6657_v28 = vadd.f32 %v6648_v9, %v6528_v2  ;;  %v8675_v17 = vpop.f32.mrb[37].mxu1 }
 0x735   : > { %v6651_v27 = vpop.f32.mrb[38].mxu1 }
 0x736   : > { %v6658_v37 = vadd.f32 %v6651_v27, %v6529_v7  ;;  %v8676_v39 = vpop.f32.mrb[39].mxu1 }
 0x753   : > { %v6777_v50 = vpop.f32.mrb[40].mxu1 }
 0x754   : > { %v6786_v1 = vadd.f32 %v6777_v50, %v6657_v28  ;;  %v8695_v10 = vpop.f32.mrb[41].mxu1 }
 0x755   : > { %v6780_v11 = vpop.f32.mrb[42].mxu1 }
 0x756   : > { %v6799_v58 = vadd.f32 %v7356_v54, %v6786_v1  ;;  %v6787_v14 = vadd.f32 %v6780_v11, %v6658_v37  ;;  %v8696_v55 = vpop.f32.mrb[43].mxu1 }
 0x758   : > { %v6801_v15 = vmax.f32 %v6799_v58, 0.0  ;;  %v6800_v16 = vadd.f32 %v7356_v54, %v6787_v14 }
 0x75a   : > { %v6805_v18 = vcombine.high %v6801_v15, %v6801_v15  ;;  %v6809_v19 = vpack.c.bf16 %v6801_v15, %v6801_v15  ;;  %v6802_v21 = vmax.f32 %v6800_v16, 0.0 }
 0x75c   : > { %v6810_v23 = vpack.c.bf16 %v6805_v18, %v6805_v18  ;;  %6813 = vst [vmem:[%s348_s20] sm:$0x3] %v6809_v19  ;;  %v6806_v24 = vcombine.high %v6802_v21, %v6802_v21  ;;  %v6811_v26 = vpack.c.bf16 %v6802_v21, %v6802_v21 }
 0x75e   : > { %6814 = vst [vmem:[%s348_s20 + $0x2] sm:$0x3] %v6810_v23  ;;  %v6812_v30 = vpack.c.bf16 %v6806_v24, %v6806_v24  ;;  %6815 = vst [vmem:[%s348_s20 + $0x4] sm:$0x3] %v6811_v26 }
 0x760   : > { %6816 = vst [vmem:[%s348_s20 + $0x6] sm:$0x3] %v6812_v30 }
 0x761 PF: > { %s21_s27 = sadd.s32 1, %s9354_s27  }
 0x762   : > { %p18_p9 = scmp.ge.s32.totalorder %s21_s27, 4  }
 0x764   :  { %20 = sbr.rel (!%p18_p9) target bundleno = 2 (0x2), region = 231 }
 0x76b   :  { %6854 = vsyncpa [#allocation7], 1 }
 0x76c   :  { %6856 = vsyncpa [#allocation7 + $0x1], 1 }
 0x76d   :  { %6857 = vsyncpa [#allocation9], 1 }

</bundles_post_ra>
